<compile_context>
chip_gen: v7x
topology: tpu7x:2x2x1
jax: 0.10.0
libtpu: 0.0.40
codegen_flags: <defaults>
</compile_context>

<pallas_src>
import functools
import math

import jax
import jax.numpy as jnp
from jax.experimental import pallas as pl
from jax.experimental.pallas import tpu as pltpu

LANE = 128
SUBLANE = 8
STEM_STRIDES = (1, 1, 2, 2)          # static: conv stem strides


# ------------------------------ helpers ------------------------------

def _round_up(x, m):
    return (x + m - 1) // m * m


def _pad2(a, rows, cols):
    r, c = a.shape
    if r == rows and c == cols:
        return a
    return jnp.pad(a, ((0, rows - r), (0, cols - c)))


def _pad_last(a, n):
    if a.shape[-1] == n:
        return a
    pad = [(0, 0)] * (a.ndim - 1) + [(0, n - a.shape[-1])]
    return jnp.pad(a, pad)


def _pick_tile_m(M):
    # 512-row tiles reach ~85% of HBM roofline on v6e; small M -> one block.
    m8 = _round_up(max(M, SUBLANE), SUBLANE)
    return m8 if m8 <= 512 else 512


def _cparams():
    return pltpu.CompilerParams(
        dimension_semantics=("parallel",),
        vmem_limit_bytes=32 * 1024 * 1024)


# ----------------------------- Pallas kernels -----------------------------

def fused_linear(x, w, b=None, *, pre=None, pre_mode=None, activation=None,
                 residual=None, out_dtype=jnp.bfloat16, k_real=None,
                 ln_eps=1e-5, compute_stats=False):
    """y = act( pre(x) @ w + b ) (+ residual), bf16 MXU inputs / f32 accumulate.

    pre_mode:
      None                -> pre(x) = x
      "ln"                -> LayerNorm over the first k_real features
                             (padded feature columns must be zero), * g + b
      "scale_shift_relu"  -> relu(x * pre[0] + pre[1])     (folded BatchNorm)

    Weights arrive pre-padded (N multiple of 128) and pre-cast to bf16.
    If compute_stats, also returns per-output-column sum / sum-of-squares over
    the (unpadded) M rows — used for in-kernel BatchNorm batch statistics.
    """
    M, K = x.shape
    Kw, N_pad = w.shape
    assert Kw == K and N_pad % LANE == 0
    tile_m = _pick_tile_m(M)
    M_pad = _round_up(M, tile_m)
    n_tiles = M_pad // tile_m

    has_bias = b is not None
    has_pre = pre is not None
    has_res = residual is not None
    kr = float(k_real if k_real is not None else K)

    operands = [_pad2(x, M_pad, K), w]
    in_specs = [pl.BlockSpec((tile_m, K), lambda i: (i, 0)),
                pl.BlockSpec((K, N_pad), lambda i: (0, 0))]
    # TODO(synk): mark the grid-invariant operands (w/b/pre) with
    # pipeline_mode=pl.Buffered(1) and add K/N grid tiling with an f32
    # accumulator scratch before scaling to production dims (v7x 64 MiB VMEM).
    if has_bias:
        operands.append(b.reshape(1, N_pad).astype(jnp.float32))
        in_specs.append(pl.BlockSpec((1, N_pad), lambda i: (0, 0)))
    if has_pre:
        operands.append(pre[0].reshape(1, K).astype(jnp.float32))
        operands.append(pre[1].reshape(1, K).astype(jnp.float32))
        in_specs.append(pl.BlockSpec((1, K), lambda i: (0, 0)))
        in_specs.append(pl.BlockSpec((1, K), lambda i: (0, 0)))
    if has_res:
        operands.append(_pad2(residual, M_pad, N_pad))
        in_specs.append(pl.BlockSpec((tile_m, N_pad), lambda i: (i, 0)))

    def kernel(*refs):
        if compute_stats:
            o_ref, st_ref = refs[-2], refs[-1]
            in_refs = refs[:-2]
        else:
            o_ref, st_ref = refs[-1], None
            in_refs = refs[:-1]
        it = iter(in_refs)
        x_ref = next(it)
        w_ref = next(it)
        b_ref = next(it) if has_bias else None
        p1_ref = next(it) if has_pre else None
        p2_ref = next(it) if has_pre else None
        r_ref = next(it) if has_res else None

        xv = x_ref[...]
        if pre_mode == "ln":
            xf = xv.astype(jnp.float32)
            s1 = jnp.sum(xf, axis=-1, keepdims=True)
            s2 = jnp.sum(xf * xf, axis=-1, keepdims=True)
            mean = s1 / kr
            var = jnp.maximum(s2 / kr - mean * mean, 0.0)
            xf = (xf - mean) * jax.lax.rsqrt(var + ln_eps)
            xf = xf * p1_ref[...] + p2_ref[...]
            xb = xf.astype(jnp.bfloat16)
        elif pre_mode == "scale_shift_relu":
            xf = xv.astype(jnp.float32)
            xf = jnp.maximum(xf * p1_ref[...] + p2_ref[...], 0.0)
            xb = xf.astype(jnp.bfloat16)
        else:
            xb = xv.astype(jnp.bfloat16)

        acc = jnp.dot(xb, w_ref[...], preferred_element_type=jnp.float32)
        if has_bias:
            acc = acc + b_ref[...]
        if activation == "relu":
            acc = jnp.maximum(acc, 0.0)
        if has_res:
            acc = acc + r_ref[...].astype(jnp.float32)
        o_ref[...] = acc.astype(o_ref.dtype)

        if compute_stats:
            row = (pl.program_id(0) * tile_m
                   + jax.lax.broadcasted_iota(jnp.int32, (tile_m, N_pad), 0))
            accm = jnp.where(row < M, acc, 0.0)          # mask padded M rows
            s1 = jnp.sum(accm, axis=0, keepdims=True)
            s2 = jnp.sum(accm * accm, axis=0, keepdims=True)
            rid = jax.lax.broadcasted_iota(jnp.int32, (SUBLANE, N_pad), 0)
            st = jnp.where(rid == 0, jnp.broadcast_to(s1, (SUBLANE, N_pad)),
                           jnp.where(rid == 1,
                                     jnp.broadcast_to(s2, (SUBLANE, N_pad)),
                                     0.0))
            st_ref[...] = st

    main_shape = jax.ShapeDtypeStruct((M_pad, N_pad), out_dtype)
    main_spec = pl.BlockSpec((tile_m, N_pad), lambda i: (i, 0))

    if compute_stats:
        out, stats = pl.pallas_call(
            kernel,
            out_shape=(main_shape,
                       jax.ShapeDtypeStruct((n_tiles, SUBLANE, N_pad),
                                            jnp.float32)),
            grid=(n_tiles,),
            in_specs=in_specs,
            out_specs=(main_spec,
                       pl.BlockSpec((None, SUBLANE, N_pad),
                                    lambda i: (i, 0, 0))),
            compiler_params=_cparams(),
        )(*operands)
        return out, stats[:, 0, :], stats[:, 1, :]

    out = pl.pallas_call(
        kernel,
        out_shape=main_shape,
        grid=(n_tiles,),
        in_specs=in_specs,
        out_specs=main_spec,
        compiler_params=_cparams(),
    )(*operands)
    return out


def attention(qkv, *, heads, dim_head, n_real, scale):
    """Fused multi-head attention on a lane-padded (B, n_pad, F) qkv slab.

    Last-dim layout of qkv is [q | k | v], each flattened as (heads, dim_head);
    columns >= 3*heads*dim_head are zero padding.  Key/value tokens with index
    >= n_real are masked out of the softmax (padded token rows).  Output is a
    (B, n_pad, out_F) token-major slab ready for the output projection.
    """
    B, n_pad, F = qkv.shape
    inner = heads * dim_head
    out_F = _round_up(inner, LANE)

    def kernel(qkv_ref, o_ref):
        x = qkv_ref[...].astype(jnp.float32)
        kmask = jax.lax.broadcasted_iota(jnp.int32, (n_pad, n_pad), 1) < n_real
        o_ref[...] = jnp.zeros_like(o_ref)
        # TODO(synk): dim_head=8 starves the MXU; for production use
        # dim_head >= 64 and a finer (B, q-tile) grid / flash-style KV tiling.
        for h in range(heads):
            q = x[:, h * dim_head:(h + 1) * dim_head]
            k = x[:, inner + h * dim_head:inner + (h + 1) * dim_head]
            v = x[:, 2 * inner + h * dim_head:2 * inner + (h + 1) * dim_head]
            s = jax.lax.dot_general(q, k, (((1,), (1,)), ((), ())),
                                    preferred_element_type=jnp.float32) * scale
            s = jnp.where(kmask, s, -1e30)
            m = jnp.max(s, axis=-1, keepdims=True)
            p = jnp.exp(s - m)
            l = jnp.sum(p, axis=-1, keepdims=True)
            o = jnp.dot(p, v, preferred_element_type=jnp.float32)
            o_ref[:, h * dim_head:(h + 1) * dim_head] = (
                o * pl.reciprocal(l, approx=True)).astype(o_ref.dtype)

    in_spec = pl.BlockSpec((None, n_pad, F), lambda b: (b, 0, 0))
    out_spec = pl.BlockSpec((None, n_pad, out_F), lambda b: (b, 0, 0))
    return pl.pallas_call(
        kernel,
        out_shape=jax.ShapeDtypeStruct((B, n_pad, out_F), jnp.float32),
        grid=(B,),
        in_specs=[in_spec],
        out_specs=out_spec,
        compiler_params=_cparams(),
    )(qkv)


# ------------------------------ JAX glue ------------------------------

def im2col(x, k=3, stride=1, pad=1):
    """x: (N, H, W, C) -> (N*Ho*Wo, k*k*C); column order (kh, kw, c).

    TODO(synk): replace with in-kernel tap accumulation (grid over the 9 taps
    with an f32 VMEM accumulator) to avoid materializing the 9x-expanded patch
    buffer in HBM for production-size stems.
    """
    N, H, W, C = x.shape
    xp = jnp.pad(x, ((0, 0), (pad, pad), (pad, pad), (0, 0)))
    Ho = (H + 2 * pad - k) // stride + 1
    Wo = (W + 2 * pad - k) // stride + 1
    cols = []
    for di in range(k):
        for dj in range(k):
            cols.append(xp[:, di:di + Ho * stride:stride,
                           dj:dj + Wo * stride:stride, :])
    patches = jnp.stack(cols, axis=-2)                 # (N, Ho, Wo, k*k, C)
    return patches.reshape(N * Ho * Wo, k * k * C), (N, Ho, Wo)


def init_params(key, *, channels, conv, conv1, dim, depth, heads, dim_head,
                mlp_dim, num_classes, num_patches):
    inner = heads * dim_head
    keys = iter(jax.random.split(key, 128))

    def nrm(shape, s):
        return jax.random.normal(next(keys), shape, jnp.float32) * s

    params = {}
    stem = []
    cins = [channels, conv, conv, conv1]
    couts = [conv, conv, conv1, conv1]
    for cin, cout in zip(cins, couts):
        stem.append(dict(
            w=nrm((9 * cin, cout), 1.0 / math.sqrt(9 * cin)),
            b=jnp.zeros((cout,), jnp.float32),
            gamma=jnp.ones((cout,), jnp.float32),
            beta=jnp.zeros((cout,), jnp.float32)))
    params["stem"] = stem
    params["w_pe"] = nrm((conv1, dim), 1.0 / math.sqrt(conv1))
    params["b_pe"] = jnp.zeros((dim,), jnp.float32)
    params["pos"] = nrm((1, num_patches + 1, dim), 1.0)
    params["cls"] = nrm((1, 1, dim), 1.0)
    layers = []
    for _ in range(depth):
        layers.append(dict(
            ln1_g=jnp.ones((dim,), jnp.float32), ln1_b=jnp.zeros((dim,), jnp.float32),
            w_qkv=nrm((dim, 3 * inner), 1.0 / math.sqrt(dim)),   # bias=False
            w_out=nrm((inner, dim), 1.0 / math.sqrt(inner)),
            b_out=jnp.zeros((dim,), jnp.float32),
            ln2_g=jnp.ones((dim,), jnp.float32), ln2_b=jnp.zeros((dim,), jnp.float32),
            w_ff1=nrm((dim, mlp_dim), 1.0 / math.sqrt(dim)),
            b_ff1=jnp.zeros((mlp_dim,), jnp.float32),
            w_ff2=nrm((mlp_dim, dim), 1.0 / math.sqrt(mlp_dim)),
            b_ff2=jnp.zeros((dim,), jnp.float32)))
    params["layers"] = layers
    params["head_ln_g"] = jnp.ones((dim,), jnp.float32)
    params["head_ln_b"] = jnp.zeros((dim,), jnp.float32)
    params["w_head"] = nrm((dim, num_classes), 1.0 / math.sqrt(dim))
    params["b_head"] = jnp.zeros((num_classes,), jnp.float32)
    return params


def prepare_params(params, *, heads, dim_head, dim, n_pad):
    """One-time: cast weights to bf16 and zero-pad to lane multiples."""
    D_pad = _round_up(dim, LANE)
    inner = heads * dim_head

    def pad_mat(w, kp, np_):
        K, N = w.shape
        return jnp.pad(w, ((0, kp - K), (0, np_ - N))).astype(jnp.bfloat16)

    def pad_vec(v, n):
        return jnp.pad(v, (0, n - v.shape[0])).reshape(1, n).astype(jnp.float32)

    out = {}
    stem = []
    for p in params["stem"]:
        K, C = p["w"].shape
        stem.append(dict(
            w=pad_mat(p["w"], K, _round_up(C, LANE)),
            b=pad_vec(p["b"], _round_up(C, LANE)),
            gamma=p["gamma"], beta=p["beta"]))
    out["stem"] = stem
    conv1 = params["w_pe"].shape[0]
    out["w_pe"] = pad_mat(params["w_pe"], _round_up(conv1, LANE), D_pad)
    out["b_pe"] = pad_vec(params["b_pe"], D_pad)
    pos = params["pos"]
    out["pos"] = jnp.pad(pos, ((0, 0), (0, n_pad - pos.shape[1]),
                               (0, D_pad - dim))).astype(jnp.bfloat16)
    out["cls"] = jnp.pad(params["cls"],
                         ((0, 0), (0, 0), (0, D_pad - dim))).astype(jnp.bfloat16)
    layers = []
    for lp in params["layers"]:
        layers.append(dict(
            ln1_g=pad_vec(lp["ln1_g"], D_pad), ln1_b=pad_vec(lp["ln1_b"], D_pad),
            w_qkv=pad_mat(lp["w_qkv"], D_pad, _round_up(3 * inner, LANE)),
            w_out=pad_mat(lp["w_out"], _round_up(inner, LANE), D_pad),
            b_out=pad_vec(lp["b_out"], D_pad),
            ln2_g=pad_vec(lp["ln2_g"], D_pad), ln2_b=pad_vec(lp["ln2_b"], D_pad),
            w_ff1=pad_mat(lp["w_ff1"], D_pad,
                          _round_up(lp["w_ff1"].shape[1], LANE)),
            b_ff1=pad_vec(lp["b_ff1"], _round_up(lp["b_ff1"].shape[0], LANE)),
            w_ff2=pad_mat(lp["w_ff2"], _round_up(lp["w_ff2"].shape[0], LANE),
                          D_pad),
            b_ff2=pad_vec(lp["b_ff2"], D_pad)))
    out["layers"] = layers
    out["head_ln_g"] = pad_vec(params["head_ln_g"], D_pad)
    out["head_ln_b"] = pad_vec(params["head_ln_b"], D_pad)
    nc = params["w_head"].shape[1]
    out["w_head"] = pad_mat(params["w_head"], D_pad, _round_up(nc, LANE))
    out["b_head"] = pad_vec(params["b_head"], _round_up(nc, LANE))
    return out


def vit_forward(img, pparams, *, heads, dim_head, dim, num_classes,
                n_real, n_pad, pool="cls"):
    B = img.shape[0]
    x = jnp.transpose(img, (0, 2, 3, 1)).astype(jnp.float32)   # NCHW -> NHWC

    # --- conv stem: (conv3x3 -> BN -> ReLU) x4, strides 1,1,2,2 ---
    # BN of layer i is folded into the prologue of layer i+1's conv matmul:
    # the conv input is centered (y - mean) before zero-padding, so the padded
    # border still maps to ReLU(0)=0 exactly (requires beta == 0, true here).
    # BN batch statistics come from in-kernel per-tile sums (no extra HBM pass).
    stem = pparams["stem"]
    pre = None
    y_last = last_pre = None
    hn = wn = None
    for idx, (p, st) in enumerate(zip(stem, STEM_STRIDES)):
        cols, (nb, ho, wo) = im2col(x, stride=st)
        y, s1, s2 = fused_linear(
            cols, p["w"], p["b"],
            pre=pre, pre_mode=None if pre is None else "scale_shift_relu",
            compute_stats=True)
        C = p["gamma"].shape[0]
        Ms = cols.shape[0]
        mean = jnp.sum(s1[:, :C], axis=0) / Ms
        var = jnp.maximum(jnp.sum(s2[:, :C], axis=0) / Ms - mean * mean, 0.0)
        scale = p["gamma"] / jnp.sqrt(var + 1e-5)
        if idx < len(stem) - 1:
            y_nhwc = y[:Ms, :C].reshape(nb, ho, wo, C)
            x = y_nhwc - mean.astype(y_nhwc.dtype)          # centered for pad
            pre = (jnp.tile(scale, 9), jnp.tile(p["beta"], 9))
        else:
            shift = p["beta"] - mean * scale
            last_pre = (_pad_last(scale, y.shape[1]),
                        _pad_last(shift, y.shape[1]))
            y_last, hn, wn = y[:Ms], ho, wo

    # to_patch_embedding: 'b c h w -> b (h w) c' + Linear(conv1, dim), with the
    # final BN+ReLU folded in as the matmul prologue (lane-padded slab in/out).
    tokens = fused_linear(y_last, pparams["w_pe"], pparams["b_pe"],
                          pre=last_pre, pre_mode="scale_shift_relu")
    D_pad = pparams["w_pe"].shape[1]
    tokens = tokens[:B * hn * wn].reshape(B, hn * wn, D_pad)

    cls = jnp.broadcast_to(pparams["cls"], (B, 1, D_pad))
    xt = jnp.concatenate([cls, tokens], axis=1)              # (B, n_real, D_pad)
    xt = jnp.pad(xt, ((0, 0), (0, n_pad - n_real), (0, 0)))  # pad tokens ONCE
    xt = (xt + pparams["pos"]).astype(jnp.bfloat16)
    # emb_dropout = 0.0 -> identity

    inner = heads * dim_head
    att_scale = dim_head ** -0.5
    M = B * n_pad
    x2d = xt.reshape(M, D_pad)
    for lp in pparams["layers"]:
        # PreNorm + Attention + residual (LN fused into QKV matmul, head
        # split/merge fused into the attention kernel, residual into w_out).
        qkv = fused_linear(x2d, lp["w_qkv"], None,
                           pre=(lp["ln1_g"], lp["ln1_b"]), pre_mode="ln",
                           k_real=dim)
        o = attention(qkv.reshape(B, n_pad, -1), heads=heads,
                      dim_head=dim_head, n_real=n_real, scale=att_scale)
        x2d = fused_linear(o.reshape(M, -1), lp["w_out"], lp["b_out"],
                           residual=x2d)
        # PreNorm + FeedForward + residual (LN fused into FF1, residual into FF2).
        h = fused_linear(x2d, lp["w_ff1"], lp["b_ff1"],
                         pre=(lp["ln2_g"], lp["ln2_b"]), pre_mode="ln",
                         k_real=dim, activation="relu")
        x2d = fused_linear(h, lp["w_ff2"], lp["b_ff2"], residual=x2d)

    xt = x2d.reshape(B, n_pad, D_pad)
    if pool == "mean":
        pooled = jnp.sum(xt[:, :n_real], axis=1) / n_real
    else:
        pooled = xt[:, 0]
    # mlp_head: LayerNorm fused into the classifier matmul.
    logits = fused_linear(pooled, pparams["w_head"], pparams["b_head"],
                          pre=(pparams["head_ln_g"], pparams["head_ln_b"]),
                          pre_mode="ln", k_real=dim, out_dtype=jnp.float32)
    return logits[:B, :num_classes]


if __name__ == "__main__":
    # Small ViT config: image 16x16, /4 conv stem -> 4x4 = 16 patches (+cls).
    image_size = 16
    channels = 3
    conv, conv1 = 8, 16
    dim, depth, heads, dim_head, mlp_dim = 32, 2, 4, 8, 64
    num_classes = 10
    batch = 2
    num_patches = (image_size // 4) ** 2
    n_real = num_patches + 1
    n_pad = _round_up(n_real, SUBLANE)

    key = jax.random.PRNGKey(0)
    k_img, k_par = jax.random.split(key)
    img = jax.random.normal(k_img, (batch, channels, image_size, image_size),
                            jnp.float32)
    params = init_params(k_par, channels=channels, conv=conv, conv1=conv1,
                         dim=dim, depth=depth, heads=heads, dim_head=dim_head,
                         mlp_dim=mlp_dim, num_classes=num_classes,
                         num_patches=num_patches)
    pparams = prepare_params(params, heads=heads, dim_head=dim_head, dim=dim,
                             n_pad=n_pad)

    fwd = jax.jit(functools.partial(vit_forward, heads=heads,
                                    dim_head=dim_head, dim=dim,
                                    num_classes=num_classes, n_real=n_real,
                                    n_pad=n_pad, pool="cls"))
    logits = fwd(img, pparams)
    logits = jax.block_until_ready(logits)
    assert logits.shape == (batch, num_classes)
    assert bool(jnp.all(jnp.isfinite(logits)))
    print("KERNEL_OK")
</pallas_src>

<mosaic_0001>
module attributes {stable_mosaic.version = 11 : i64} {
  func.func @kernel(%arg0: i32, %arg1: memref<512x27xf32, #tpu.memory_space<vmem>>, %arg2: memref<27x128xbf16, #tpu.memory_space<vmem>>, %arg3: memref<1x128xf32, #tpu.memory_space<vmem>>, %arg4: memref<512x128xbf16, #tpu.memory_space<vmem>>, %arg5: memref<1x8x128xf32, #tpu.memory_space<vmem>>) attributes {dimension_semantics = [#tpu.dimension_semantics<parallel>], iteration_bounds = array<i64: 1>, scalar_prefetch = 0 : i64, scratch_operands = 0 : i64, tpu.core_type = #tpu.core_type<tc>, window_params = [{transform_indices = @transform_0, window_bounds = array<i64: 512, 27>}, {pipeline_mode = #tpu.pipeline_mode<synchronous>, transform_indices = @transform_1, window_bounds = array<i64: 27, 128>}, {pipeline_mode = #tpu.pipeline_mode<synchronous>, transform_indices = @transform_2, window_bounds = array<i64: 1, 128>}, {transform_indices = @transform_3, window_bounds = array<i64: 512, 128>}, {transform_indices = @transform_4, window_bounds = array<i64: 1, 8, 128>}]} {
    %c0 = arith.constant 0 : index
    %c0_0 = arith.constant 0 : index
    %0 = vector.load %arg1[%c0, %c0_0] : memref<512x27xf32, #tpu.memory_space<vmem>>, vector<512x27xf32>
    %1 = arith.truncf %0 : vector<512x27xf32> to vector<512x27xbf16>
    %c0_1 = arith.constant 0 : index
    %c0_2 = arith.constant 0 : index
    %2 = vector.load %arg2[%c0_1, %c0_2] : memref<27x128xbf16, #tpu.memory_space<vmem>>, vector<27x128xbf16>
    %cst = arith.constant dense<0.000000e+00> : vector<512x128xf32>
    %3 = tpu.matmul %1, %2, %cst {dimension_numbers = #tpu.dot_dimension_numbers<[1], [0], [0], [1], [0, 0, 1, 1], [], []>} : vector<512x27xbf16>, vector<27x128xbf16>, vector<512x128xf32> -> vector<512x128xf32>
    %c0_3 = arith.constant 0 : index
    %c0_4 = arith.constant 0 : index
    %4 = vector.load %arg3[%c0_3, %c0_4] : memref<1x128xf32, #tpu.memory_space<vmem>>, vector<1x128xf32>
    %5 = vector.broadcast %4 : vector<1x128xf32> to vector<512x128xf32>
    %6 = arith.addf %3, %5 : vector<512x128xf32>
    %7 = arith.truncf %6 : vector<512x128xf32> to vector<512x128xbf16>
    %c0_5 = arith.constant 0 : index
    %c0_6 = arith.constant 0 : index
    %8 = vector.load %arg4[%c0_5, %c0_6] : memref<512x128xbf16, #tpu.memory_space<vmem>>, vector<512x128xbf16>
    tpu.vector_store %arg4[%c0_5, %c0_6], %7 {strides = array<i32>} : memref<512x128xbf16, #tpu.memory_space<vmem>>, vector<512x128xbf16>,
    %c512_i32 = arith.constant 512 : i32
    %9 = arith.muli %arg0, %c512_i32 : i32
    %10 = tpu.iota {dimensions = array<i32: 0>} : vector<512x128xi32>
    %11 = vector.broadcast %9 : i32 to vector<512x128xi32>
    %12 = arith.addi %11, %10 : vector<512x128xi32>
    %c512_i32_7 = arith.constant 512 : i32
    %13 = vector.broadcast %c512_i32_7 : i32 to vector<512x128xi32>
    %14 = arith.cmpi slt, %12, %13 : vector<512x128xi32>
    %cst_8 = arith.constant 0.000000e+00 : f32
    %15 = vector.broadcast %cst_8 : f32 to vector<512x128xf32>
    %16 = arith.select %14, %6, %15 : vector<512x128xi1>, vector<512x128xf32>
    %cst_9 = arith.constant dense<0.000000e+00> : vector<128xf32>
    %17 = vector.multi_reduction <add>, %16, %cst_9 [0] : vector<512x128xf32> to vector<128xf32>
    %18 = vector.shape_cast %17 : vector<128xf32> to vector<1x128xf32>
    %19 = arith.mulf %16, %16 : vector<512x128xf32>
    %cst_10 = arith.constant dense<0.000000e+00> : vector<128xf32>
    %20 = vector.multi_reduction <add>, %19, %cst_10 [0] : vector<512x128xf32> to vector<128xf32>
    %21 = vector.shape_cast %20 : vector<128xf32> to vector<1x128xf32>
    %22 = tpu.iota {dimensions = array<i32: 0>} : vector<8x128xi32>
    %c0_i32 = arith.constant 0 : i32
    %23 = vector.broadcast %c0_i32 : i32 to vector<8x128xi32>
    %24 = arith.cmpi eq, %22, %23 : vector<8x128xi32>
    %25 = vector.shape_cast %18 : vector<1x128xf32> to vector<1x128xf32>
    %26 = vector.broadcast %25 : vector<1x128xf32> to vector<8x128xf32>
    %c1_i32 = arith.constant 1 : i32
    %27 = vector.broadcast %c1_i32 : i32 to vector<8x128xi32>
    %28 = arith.cmpi eq, %22, %27 : vector<8x128xi32>
    %29 = vector.shape_cast %21 : vector<1x128xf32> to vector<1x128xf32>
    %30 = vector.broadcast %29 : vector<1x128xf32> to vector<8x128xf32>
    %cst_11 = arith.constant 0.000000e+00 : f32
    %31 = vector.broadcast %cst_11 : f32 to vector<8x128xf32>
    %32 = arith.select %28, %30, %31 : vector<8x128xi1>, vector<8x128xf32>
    %33 = arith.select %24, %26, %32 : vector<8x128xi1>, vector<8x128xf32>
    %c0_12 = arith.constant 0 : index
    %c0_13 = arith.constant 0 : index
    %c0_14 = arith.constant 0 : index
    %34 = vector.load %arg5[%c0_12, %c0_13, %c0_14] : memref<1x8x128xf32, #tpu.memory_space<vmem>>, vector<1x8x128xf32>
    %35 = vector.shape_cast %34 : vector<1x8x128xf32> to vector<8x128xf32>
    %36 = vector.shape_cast %33 : vector<8x128xf32> to vector<1x8x128xf32>
    tpu.vector_store %arg5[%c0_12, %c0_13, %c0_14], %36 {strides = array<i32>} : memref<1x8x128xf32, #tpu.memory_space<vmem>>, vector<1x8x128xf32>,
    return
  }
  func.func @transform_0(%arg0: i32) -> (i32, i32) {
    %c0_i32 = arith.constant 0 : i32
    %c0_i32_0 = arith.constant 0 : i32
    return %arg0, %c0_i32 : i32, i32
  }
  func.func @transform_1(%arg0: i32) -> (i32, i32) {
    %c0_i32 = arith.constant 0 : i32
    %c0_i32_0 = arith.constant 0 : i32
    %c0_i32_1 = arith.constant 0 : i32
    return %c0_i32, %c0_i32_0 : i32, i32
  }
  func.func @transform_2(%arg0: i32) -> (i32, i32) {
    %c0_i32 = arith.constant 0 : i32
    %c0_i32_0 = arith.constant 0 : i32
    %c0_i32_1 = arith.constant 0 : i32
    return %c0_i32, %c0_i32_0 : i32, i32
  }
  func.func @transform_3(%arg0: i32) -> (i32, i32) {
    %c0_i32 = arith.constant 0 : i32
    %c0_i32_0 = arith.constant 0 : i32
    return %arg0, %c0_i32 : i32, i32
  }
  func.func @transform_4(%arg0: i32) -> (i32, i32, i32) {
    %c0_i32 = arith.constant 0 : i32
    %c0_i32_0 = arith.constant 0 : i32
    %c0_i32_1 = arith.constant 0 : i32
    return %arg0, %c0_i32, %c0_i32_0 : i32, i32, i32
  }
}

module attributes {stable_mosaic.version = 11 : i64} {
  func.func @kernel(%arg0: i32, %arg1: memref<512x72xbf16, #tpu.memory_space<vmem>>, %arg2: memref<72x128xbf16, #tpu.memory_space<vmem>>, %arg3: memref<1x128xf32, #tpu.memory_space<vmem>>, %arg4: memref<1x72xf32, #tpu.memory_space<vmem>>, %arg5: memref<1x72xf32, #tpu.memory_space<vmem>>, %arg6: memref<512x128xbf16, #tpu.memory_space<vmem>>, %arg7: memref<1x8x128xf32, #tpu.memory_space<vmem>>) attributes {dimension_semantics = [#tpu.dimension_semantics<parallel>], iteration_bounds = array<i64: 1>, scalar_prefetch = 0 : i64, scratch_operands = 0 : i64, tpu.core_type = #tpu.core_type<tc>, window_params = [{transform_indices = @transform_0, window_bounds = array<i64: 512, 72>}, {pipeline_mode = #tpu.pipeline_mode<synchronous>, transform_indices = @transform_1, window_bounds = array<i64: 72, 128>}, {pipeline_mode = #tpu.pipeline_mode<synchronous>, transform_indices = @transform_2, window_bounds = array<i64: 1, 128>}, {pipeline_mode = #tpu.pipeline_mode<synchronous>, transform_indices = @transform_3, window_bounds = array<i64: 1, 72>}, {pipeline_mode = #tpu.pipeline_mode<synchronous>, transform_indices = @transform_4, window_bounds = array<i64: 1, 72>}, {transform_indices = @transform_5, window_bounds = array<i64: 512, 128>}, {transform_indices = @transform_6, window_bounds = array<i64: 1, 8, 128>}]} {
    %c0 = arith.constant 0 : index
    %c0_0 = arith.constant 0 : index
    %0 = vector.load %arg1[%c0, %c0_0] : memref<512x72xbf16, #tpu.memory_space<vmem>>, vector<512x72xbf16>
    %1 = arith.extf %0 : vector<512x72xbf16> to vector<512x72xf32>
    %c0_1 = arith.constant 0 : index
    %c0_2 = arith.constant 0 : index
    %2 = vector.load %arg4[%c0_1, %c0_2] : memref<1x72xf32, #tpu.memory_space<vmem>>, vector<1x72xf32>
    %3 = vector.broadcast %2 : vector<1x72xf32> to vector<512x72xf32>
    %4 = arith.mulf %1, %3 : vector<512x72xf32>
    %c0_3 = arith.constant 0 : index
    %c0_4 = arith.constant 0 : index
    %5 = vector.load %arg5[%c0_3, %c0_4] : memref<1x72xf32, #tpu.memory_space<vmem>>, vector<1x72xf32>
    %6 = vector.broadcast %5 : vector<1x72xf32> to vector<512x72xf32>
    %7 = arith.addf %4, %6 : vector<512x72xf32>
    %cst = arith.constant 0.000000e+00 : f32
    %8 = vector.broadcast %cst : f32 to vector<512x72xf32>
    %9 = arith.maximumf %7, %8 : vector<512x72xf32>
    %10 = arith.truncf %9 : vector<512x72xf32> to vector<512x72xbf16>
    %c0_5 = arith.constant 0 : index
    %c0_6 = arith.constant 0 : index
    %11 = vector.load %arg2[%c0_5, %c0_6] : memref<72x128xbf16, #tpu.memory_space<vmem>>, vector<72x128xbf16>
    %cst_7 = arith.constant dense<0.000000e+00> : vector<512x128xf32>
    %12 = tpu.matmul %10, %11, %cst_7 {dimension_numbers = #tpu.dot_dimension_numbers<[1], [0], [0], [1], [0, 0, 1, 1], [], []>} : vector<512x72xbf16>, vector<72x128xbf16>, vector<512x128xf32> -> vector<512x128xf32>
    %c0_8 = arith.constant 0 : index
    %c0_9 = arith.constant 0 : index
    %13 = vector.load %arg3[%c0_8, %c0_9] : memref<1x128xf32, #tpu.memory_space<vmem>>, vector<1x128xf32>
    %14 = vector.broadcast %13 : vector<1x128xf32> to vector<512x128xf32>
    %15 = arith.addf %12, %14 : vector<512x128xf32>
    %16 = arith.truncf %15 : vector<512x128xf32> to vector<512x128xbf16>
    %c0_10 = arith.constant 0 : index
    %c0_11 = arith.constant 0 : index
    %17 = vector.load %arg6[%c0_10, %c0_11] : memref<512x128xbf16, #tpu.memory_space<vmem>>, vector<512x128xbf16>
    tpu.vector_store %arg6[%c0_10, %c0_11], %16 {strides = array<i32>} : memref<512x128xbf16, #tpu.memory_space<vmem>>, vector<512x128xbf16>,
    %c512_i32 = arith.constant 512 : i32
    %18 = arith.muli %arg0, %c512_i32 : i32
    %19 = tpu.iota {dimensions = array<i32: 0>} : vector<512x128xi32>
    %20 = vector.broadcast %18 : i32 to vector<512x128xi32>
    %21 = arith.addi %20, %19 : vector<512x128xi32>
    %c512_i32_12 = arith.constant 512 : i32
    %22 = vector.broadcast %c512_i32_12 : i32 to vector<512x128xi32>
    %23 = arith.cmpi slt, %21, %22 : vector<512x128xi32>
    %cst_13 = arith.constant 0.000000e+00 : f32
    %24 = vector.broadcast %cst_13 : f32 to vector<512x128xf32>
    %25 = arith.select %23, %15, %24 : vector<512x128xi1>, vector<512x128xf32>
    %cst_14 = arith.constant dense<0.000000e+00> : vector<128xf32>
    %26 = vector.multi_reduction <add>, %25, %cst_14 [0] : vector<512x128xf32> to vector<128xf32>
    %27 = vector.shape_cast %26 : vector<128xf32> to vector<1x128xf32>
    %28 = arith.mulf %25, %25 : vector<512x128xf32>
    %cst_15 = arith.constant dense<0.000000e+00> : vector<128xf32>
    %29 = vector.multi_reduction <add>, %28, %cst_15 [0] : vector<512x128xf32> to vector<128xf32>
    %30 = vector.shape_cast %29 : vector<128xf32> to vector<1x128xf32>
    %31 = tpu.iota {dimensions = array<i32: 0>} : vector<8x128xi32>
    %c0_i32 = arith.constant 0 : i32
    %32 = vector.broadcast %c0_i32 : i32 to vector<8x128xi32>
    %33 = arith.cmpi eq, %31, %32 : vector<8x128xi32>
    %34 = vector.shape_cast %27 : vector<1x128xf32> to vector<1x128xf32>
    %35 = vector.broadcast %34 : vector<1x128xf32> to vector<8x128xf32>
    %c1_i32 = arith.constant 1 : i32
    %36 = vector.broadcast %c1_i32 : i32 to vector<8x128xi32>
    %37 = arith.cmpi eq, %31, %36 : vector<8x128xi32>
    %38 = vector.shape_cast %30 : vector<1x128xf32> to vector<1x128xf32>
    %39 = vector.broadcast %38 : vector<1x128xf32> to vector<8x128xf32>
    %cst_16 = arith.constant 0.000000e+00 : f32
    %40 = vector.broadcast %cst_16 : f32 to vector<8x128xf32>
    %41 = arith.select %37, %39, %40 : vector<8x128xi1>, vector<8x128xf32>
    %42 = arith.select %33, %35, %41 : vector<8x128xi1>, vector<8x128xf32>
    %c0_17 = arith.constant 0 : index
    %c0_18 = arith.constant 0 : index
    %c0_19 = arith.constant 0 : index
    %43 = vector.load %arg7[%c0_17, %c0_18, %c0_19] : memref<1x8x128xf32, #tpu.memory_space<vmem>>, vector<1x8x128xf32>
    %44 = vector.shape_cast %43 : vector<1x8x128xf32> to vector<8x128xf32>
    %45 = vector.shape_cast %42 : vector<8x128xf32> to vector<1x8x128xf32>
    tpu.vector_store %arg7[%c0_17, %c0_18, %c0_19], %45 {strides = array<i32>} : memref<1x8x128xf32, #tpu.memory_space<vmem>>, vector<1x8x128xf32>,
    return
  }
  func.func @transform_0(%arg0: i32) -> (i32, i32) {
    %c0_i32 = arith.constant 0 : i32
    %c0_i32_0 = arith.constant 0 : i32
    return %arg0, %c0_i32 : i32, i32
  }
  func.func @transform_1(%arg0: i32) -> (i32, i32) {
    %c0_i32 = arith.constant 0 : i32
    %c0_i32_0 = arith.constant 0 : i32
    %c0_i32_1 = arith.constant 0 : i32
    return %c0_i32, %c0_i32_0 : i32, i32
  }
  func.func @transform_2(%arg0: i32) -> (i32, i32) {
    %c0_i32 = arith.constant 0 : i32
    %c0_i32_0 = arith.constant 0 : i32
    %c0_i32_1 = arith.constant 0 : i32
    return %c0_i32, %c0_i32_0 : i32, i32
  }
  func.func @transform_3(%arg0: i32) -> (i32, i32) {
    %c0_i32 = arith.constant 0 : i32
    %c0_i32_0 = arith.constant 0 : i32
    %c0_i32_1 = arith.constant 0 : i32
    return %c0_i32, %c0_i32_0 : i32, i32
  }
  func.func @transform_4(%arg0: i32) -> (i32, i32) {
    %c0_i32 = arith.constant 0 : i32
    %c0_i32_0 = arith.constant 0 : i32
    %c0_i32_1 = arith.constant 0 : i32
    return %c0_i32, %c0_i32_0 : i32, i32
  }
  func.func @transform_5(%arg0: i32) -> (i32, i32) {
    %c0_i32 = arith.constant 0 : i32
    %c0_i32_0 = arith.constant 0 : i32
    return %arg0, %c0_i32 : i32, i32
  }
  func.func @transform_6(%arg0: i32) -> (i32, i32, i32) {
    %c0_i32 = arith.constant 0 : i32
    %c0_i32_0 = arith.constant 0 : i32
    %c0_i32_1 = arith.constant 0 : i32
    return %arg0, %c0_i32, %c0_i32_0 : i32, i32, i32
  }
}

module attributes {stable_mosaic.version = 11 : i64} {
  func.func @kernel(%arg0: i32, %arg1: memref<128x72xbf16, #tpu.memory_space<vmem>>, %arg2: memref<72x128xbf16, #tpu.memory_space<vmem>>, %arg3: memref<1x128xf32, #tpu.memory_space<vmem>>, %arg4: memref<1x72xf32, #tpu.memory_space<vmem>>, %arg5: memref<1x72xf32, #tpu.memory_space<vmem>>, %arg6: memref<128x128xbf16, #tpu.memory_space<vmem>>, %arg7: memref<1x8x128xf32, #tpu.memory_space<vmem>>) attributes {dimension_semantics = [#tpu.dimension_semantics<parallel>], iteration_bounds = array<i64: 1>, scalar_prefetch = 0 : i64, scratch_operands = 0 : i64, tpu.core_type = #tpu.core_type<tc>, window_params = [{transform_indices = @transform_0, window_bounds = array<i64: 128, 72>}, {pipeline_mode = #tpu.pipeline_mode<synchronous>, transform_indices = @transform_1, window_bounds = array<i64: 72, 128>}, {pipeline_mode = #tpu.pipeline_mode<synchronous>, transform_indices = @transform_2, window_bounds = array<i64: 1, 128>}, {pipeline_mode = #tpu.pipeline_mode<synchronous>, transform_indices = @transform_3, window_bounds = array<i64: 1, 72>}, {pipeline_mode = #tpu.pipeline_mode<synchronous>, transform_indices = @transform_4, window_bounds = array<i64: 1, 72>}, {transform_indices = @transform_5, window_bounds = array<i64: 128, 128>}, {transform_indices = @transform_6, window_bounds = array<i64: 1, 8, 128>}]} {
    %c0 = arith.constant 0 : index
    %c0_0 = arith.constant 0 : index
    %0 = vector.load %arg1[%c0, %c0_0] : memref<128x72xbf16, #tpu.memory_space<vmem>>, vector<128x72xbf16>
    %1 = arith.extf %0 : vector<128x72xbf16> to vector<128x72xf32>
    %c0_1 = arith.constant 0 : index
    %c0_2 = arith.constant 0 : index
    %2 = vector.load %arg4[%c0_1, %c0_2] : memref<1x72xf32, #tpu.memory_space<vmem>>, vector<1x72xf32>
    %3 = vector.broadcast %2 : vector<1x72xf32> to vector<128x72xf32>
    %4 = arith.mulf %1, %3 : vector<128x72xf32>
    %c0_3 = arith.constant 0 : index
    %c0_4 = arith.constant 0 : index
    %5 = vector.load %arg5[%c0_3, %c0_4] : memref<1x72xf32, #tpu.memory_space<vmem>>, vector<1x72xf32>
    %6 = vector.broadcast %5 : vector<1x72xf32> to vector<128x72xf32>
    %7 = arith.addf %4, %6 : vector<128x72xf32>
    %cst = arith.constant 0.000000e+00 : f32
    %8 = vector.broadcast %cst : f32 to vector<128x72xf32>
    %9 = arith.maximumf %7, %8 : vector<128x72xf32>
    %10 = arith.truncf %9 : vector<128x72xf32> to vector<128x72xbf16>
    %c0_5 = arith.constant 0 : index
    %c0_6 = arith.constant 0 : index
    %11 = vector.load %arg2[%c0_5, %c0_6] : memref<72x128xbf16, #tpu.memory_space<vmem>>, vector<72x128xbf16>
    %cst_7 = arith.constant dense<0.000000e+00> : vector<128x128xf32>
    %12 = tpu.matmul %10, %11, %cst_7 {dimension_numbers = #tpu.dot_dimension_numbers<[1], [0], [0], [1], [0, 0, 1, 1], [], []>} : vector<128x72xbf16>, vector<72x128xbf16>, vector<128x128xf32> -> vector<128x128xf32>
    %c0_8 = arith.constant 0 : index
    %c0_9 = arith.constant 0 : index
    %13 = vector.load %arg3[%c0_8, %c0_9] : memref<1x128xf32, #tpu.memory_space<vmem>>, vector<1x128xf32>
    %14 = vector.broadcast %13 : vector<1x128xf32> to vector<128x128xf32>
    %15 = arith.addf %12, %14 : vector<128x128xf32>
    %16 = arith.truncf %15 : vector<128x128xf32> to vector<128x128xbf16>
    %c0_10 = arith.constant 0 : index
    %c0_11 = arith.constant 0 : index
    %17 = vector.load %arg6[%c0_10, %c0_11] : memref<128x128xbf16, #tpu.memory_space<vmem>>, vector<128x128xbf16>
    tpu.vector_store %arg6[%c0_10, %c0_11], %16 {strides = array<i32>} : memref<128x128xbf16, #tpu.memory_space<vmem>>, vector<128x128xbf16>,
    %c128_i32 = arith.constant 128 : i32
    %18 = arith.muli %arg0, %c128_i32 : i32
    %19 = tpu.iota {dimensions = array<i32: 0>} : vector<128x128xi32>
    %20 = vector.broadcast %18 : i32 to vector<128x128xi32>
    %21 = arith.addi %20, %19 : vector<128x128xi32>
    %c128_i32_12 = arith.constant 128 : i32
    %22 = vector.broadcast %c128_i32_12 : i32 to vector<128x128xi32>
    %23 = arith.cmpi slt, %21, %22 : vector<128x128xi32>
    %cst_13 = arith.constant 0.000000e+00 : f32
    %24 = vector.broadcast %cst_13 : f32 to vector<128x128xf32>
    %25 = arith.select %23, %15, %24 : vector<128x128xi1>, vector<128x128xf32>
    %cst_14 = arith.constant dense<0.000000e+00> : vector<128xf32>
    %26 = vector.multi_reduction <add>, %25, %cst_14 [0] : vector<128x128xf32> to vector<128xf32>
    %27 = vector.shape_cast %26 : vector<128xf32> to vector<1x128xf32>
    %28 = arith.mulf %25, %25 : vector<128x128xf32>
    %cst_15 = arith.constant dense<0.000000e+00> : vector<128xf32>
    %29 = vector.multi_reduction <add>, %28, %cst_15 [0] : vector<128x128xf32> to vector<128xf32>
    %30 = vector.shape_cast %29 : vector<128xf32> to vector<1x128xf32>
    %31 = tpu.iota {dimensions = array<i32: 0>} : vector<8x128xi32>
    %c0_i32 = arith.constant 0 : i32
    %32 = vector.broadcast %c0_i32 : i32 to vector<8x128xi32>
    %33 = arith.cmpi eq, %31, %32 : vector<8x128xi32>
    %34 = vector.shape_cast %27 : vector<1x128xf32> to vector<1x128xf32>
    %35 = vector.broadcast %34 : vector<1x128xf32> to vector<8x128xf32>
    %c1_i32 = arith.constant 1 : i32
    %36 = vector.broadcast %c1_i32 : i32 to vector<8x128xi32>
    %37 = arith.cmpi eq, %31, %36 : vector<8x128xi32>
    %38 = vector.shape_cast %30 : vector<1x128xf32> to vector<1x128xf32>
    %39 = vector.broadcast %38 : vector<1x128xf32> to vector<8x128xf32>
    %cst_16 = arith.constant 0.000000e+00 : f32
    %40 = vector.broadcast %cst_16 : f32 to vector<8x128xf32>
    %41 = arith.select %37, %39, %40 : vector<8x128xi1>, vector<8x128xf32>
    %42 = arith.select %33, %35, %41 : vector<8x128xi1>, vector<8x128xf32>
    %c0_17 = arith.constant 0 : index
    %c0_18 = arith.constant 0 : index
    %c0_19 = arith.constant 0 : index
    %43 = vector.load %arg7[%c0_17, %c0_18, %c0_19] : memref<1x8x128xf32, #tpu.memory_space<vmem>>, vector<1x8x128xf32>
    %44 = vector.shape_cast %43 : vector<1x8x128xf32> to vector<8x128xf32>
    %45 = vector.shape_cast %42 : vector<8x128xf32> to vector<1x8x128xf32>
    tpu.vector_store %arg7[%c0_17, %c0_18, %c0_19], %45 {strides = array<i32>} : memref<1x8x128xf32, #tpu.memory_space<vmem>>, vector<1x8x128xf32>,
    return
  }
  func.func @transform_0(%arg0: i32) -> (i32, i32) {
    %c0_i32 = arith.constant 0 : i32
    %c0_i32_0 = arith.constant 0 : i32
    return %arg0, %c0_i32 : i32, i32
  }
  func.func @transform_1(%arg0: i32) -> (i32, i32) {
    %c0_i32 = arith.constant 0 : i32
    %c0_i32_0 = arith.constant 0 : i32
    %c0_i32_1 = arith.constant 0 : i32
    return %c0_i32, %c0_i32_0 : i32, i32
  }
  func.func @transform_2(%arg0: i32) -> (i32, i32) {
    %c0_i32 = arith.constant 0 : i32
    %c0_i32_0 = arith.constant 0 : i32
    %c0_i32_1 = arith.constant 0 : i32
    return %c0_i32, %c0_i32_0 : i32, i32
  }
  func.func @transform_3(%arg0: i32) -> (i32, i32) {
    %c0_i32 = arith.constant 0 : i32
    %c0_i32_0 = arith.constant 0 : i32
    %c0_i32_1 = arith.constant 0 : i32
    return %c0_i32, %c0_i32_0 : i32, i32
  }
  func.func @transform_4(%arg0: i32) -> (i32, i32) {
    %c0_i32 = arith.constant 0 : i32
    %c0_i32_0 = arith.constant 0 : i32
    %c0_i32_1 = arith.constant 0 : i32
    return %c0_i32, %c0_i32_0 : i32, i32
  }
  func.func @transform_5(%arg0: i32) -> (i32, i32) {
    %c0_i32 = arith.constant 0 : i32
    %c0_i32_0 = arith.constant 0 : i32
    return %arg0, %c0_i32 : i32, i32
  }
  func.func @transform_6(%arg0: i32) -> (i32, i32, i32) {
    %c0_i32 = arith.constant 0 : i32
    %c0_i32_0 = arith.constant 0 : i32
    %c0_i32_1 = arith.constant 0 : i32
    return %arg0, %c0_i32, %c0_i32_0 : i32, i32, i32
  }
}

module attributes {stable_mosaic.version = 11 : i64} {
  func.func @kernel(%arg0: i32, %arg1: memref<32x144xbf16, #tpu.memory_space<vmem>>, %arg2: memref<144x128xbf16, #tpu.memory_space<vmem>>, %arg3: memref<1x128xf32, #tpu.memory_space<vmem>>, %arg4: memref<1x144xf32, #tpu.memory_space<vmem>>, %arg5: memref<1x144xf32, #tpu.memory_space<vmem>>, %arg6: memref<32x128xbf16, #tpu.memory_space<vmem>>, %arg7: memref<1x8x128xf32, #tpu.memory_space<vmem>>) attributes {dimension_semantics = [#tpu.dimension_semantics<parallel>], iteration_bounds = array<i64: 1>, scalar_prefetch = 0 : i64, scratch_operands = 0 : i64, tpu.core_type = #tpu.core_type<tc>, window_params = [{transform_indices = @transform_0, window_bounds = array<i64: 32, 144>}, {pipeline_mode = #tpu.pipeline_mode<synchronous>, transform_indices = @transform_1, window_bounds = array<i64: 144, 128>}, {pipeline_mode = #tpu.pipeline_mode<synchronous>, transform_indices = @transform_2, window_bounds = array<i64: 1, 128>}, {pipeline_mode = #tpu.pipeline_mode<synchronous>, transform_indices = @transform_3, window_bounds = array<i64: 1, 144>}, {pipeline_mode = #tpu.pipeline_mode<synchronous>, transform_indices = @transform_4, window_bounds = array<i64: 1, 144>}, {transform_indices = @transform_5, window_bounds = array<i64: 32, 128>}, {transform_indices = @transform_6, window_bounds = array<i64: 1, 8, 128>}]} {
    %c0 = arith.constant 0 : index
    %c0_0 = arith.constant 0 : index
    %0 = vector.load %arg1[%c0, %c0_0] : memref<32x144xbf16, #tpu.memory_space<vmem>>, vector<32x144xbf16>
    %1 = arith.extf %0 : vector<32x144xbf16> to vector<32x144xf32>
    %c0_1 = arith.constant 0 : index
    %c0_2 = arith.constant 0 : index
    %2 = vector.load %arg4[%c0_1, %c0_2] : memref<1x144xf32, #tpu.memory_space<vmem>>, vector<1x144xf32>
    %3 = vector.broadcast %2 : vector<1x144xf32> to vector<32x144xf32>
    %4 = arith.mulf %1, %3 : vector<32x144xf32>
    %c0_3 = arith.constant 0 : index
    %c0_4 = arith.constant 0 : index
    %5 = vector.load %arg5[%c0_3, %c0_4] : memref<1x144xf32, #tpu.memory_space<vmem>>, vector<1x144xf32>
    %6 = vector.broadcast %5 : vector<1x144xf32> to vector<32x144xf32>
    %7 = arith.addf %4, %6 : vector<32x144xf32>
    %cst = arith.constant 0.000000e+00 : f32
    %8 = vector.broadcast %cst : f32 to vector<32x144xf32>
    %9 = arith.maximumf %7, %8 : vector<32x144xf32>
    %10 = arith.truncf %9 : vector<32x144xf32> to vector<32x144xbf16>
    %c0_5 = arith.constant 0 : index
    %c0_6 = arith.constant 0 : index
    %11 = vector.load %arg2[%c0_5, %c0_6] : memref<144x128xbf16, #tpu.memory_space<vmem>>, vector<144x128xbf16>
    %cst_7 = arith.constant dense<0.000000e+00> : vector<32x128xf32>
    %12 = tpu.matmul %10, %11, %cst_7 {dimension_numbers = #tpu.dot_dimension_numbers<[1], [0], [0], [1], [0, 0, 1, 1], [], []>} : vector<32x144xbf16>, vector<144x128xbf16>, vector<32x128xf32> -> vector<32x128xf32>
    %c0_8 = arith.constant 0 : index
    %c0_9 = arith.constant 0 : index
    %13 = vector.load %arg3[%c0_8, %c0_9] : memref<1x128xf32, #tpu.memory_space<vmem>>, vector<1x128xf32>
    %14 = vector.broadcast %13 : vector<1x128xf32> to vector<32x128xf32>
    %15 = arith.addf %12, %14 : vector<32x128xf32>
    %16 = arith.truncf %15 : vector<32x128xf32> to vector<32x128xbf16>
    %c0_10 = arith.constant 0 : index
    %c0_11 = arith.constant 0 : index
    %17 = vector.load %arg6[%c0_10, %c0_11] : memref<32x128xbf16, #tpu.memory_space<vmem>>, vector<32x128xbf16>
    tpu.vector_store %arg6[%c0_10, %c0_11], %16 {strides = array<i32>} : memref<32x128xbf16, #tpu.memory_space<vmem>>, vector<32x128xbf16>,
    %c32_i32 = arith.constant 32 : i32
    %18 = arith.muli %arg0, %c32_i32 : i32
    %19 = tpu.iota {dimensions = array<i32: 0>} : vector<32x128xi32>
    %20 = vector.broadcast %18 : i32 to vector<32x128xi32>
    %21 = arith.addi %20, %19 : vector<32x128xi32>
    %c32_i32_12 = arith.constant 32 : i32
    %22 = vector.broadcast %c32_i32_12 : i32 to vector<32x128xi32>
    %23 = arith.cmpi slt, %21, %22 : vector<32x128xi32>
    %cst_13 = arith.constant 0.000000e+00 : f32
    %24 = vector.broadcast %cst_13 : f32 to vector<32x128xf32>
    %25 = arith.select %23, %15, %24 : vector<32x128xi1>, vector<32x128xf32>
    %cst_14 = arith.constant dense<0.000000e+00> : vector<128xf32>
    %26 = vector.multi_reduction <add>, %25, %cst_14 [0] : vector<32x128xf32> to vector<128xf32>
    %27 = vector.shape_cast %26 : vector<128xf32> to vector<1x128xf32>
    %28 = arith.mulf %25, %25 : vector<32x128xf32>
    %cst_15 = arith.constant dense<0.000000e+00> : vector<128xf32>
    %29 = vector.multi_reduction <add>, %28, %cst_15 [0] : vector<32x128xf32> to vector<128xf32>
    %30 = vector.shape_cast %29 : vector<128xf32> to vector<1x128xf32>
    %31 = tpu.iota {dimensions = array<i32: 0>} : vector<8x128xi32>
    %c0_i32 = arith.constant 0 : i32
    %32 = vector.broadcast %c0_i32 : i32 to vector<8x128xi32>
    %33 = arith.cmpi eq, %31, %32 : vector<8x128xi32>
    %34 = vector.shape_cast %27 : vector<1x128xf32> to vector<1x128xf32>
    %35 = vector.broadcast %34 : vector<1x128xf32> to vector<8x128xf32>
    %c1_i32 = arith.constant 1 : i32
    %36 = vector.broadcast %c1_i32 : i32 to vector<8x128xi32>
    %37 = arith.cmpi eq, %31, %36 : vector<8x128xi32>
    %38 = vector.shape_cast %30 : vector<1x128xf32> to vector<1x128xf32>
    %39 = vector.broadcast %38 : vector<1x128xf32> to vector<8x128xf32>
    %cst_16 = arith.constant 0.000000e+00 : f32
    %40 = vector.broadcast %cst_16 : f32 to vector<8x128xf32>
    %41 = arith.select %37, %39, %40 : vector<8x128xi1>, vector<8x128xf32>
    %42 = arith.select %33, %35, %41 : vector<8x128xi1>, vector<8x128xf32>
    %c0_17 = arith.constant 0 : index
    %c0_18 = arith.constant 0 : index
    %c0_19 = arith.constant 0 : index
    %43 = vector.load %arg7[%c0_17, %c0_18, %c0_19] : memref<1x8x128xf32, #tpu.memory_space<vmem>>, vector<1x8x128xf32>
    %44 = vector.shape_cast %43 : vector<1x8x128xf32> to vector<8x128xf32>
    %45 = vector.shape_cast %42 : vector<8x128xf32> to vector<1x8x128xf32>
    tpu.vector_store %arg7[%c0_17, %c0_18, %c0_19], %45 {strides = array<i32>} : memref<1x8x128xf32, #tpu.memory_space<vmem>>, vector<1x8x128xf32>,
    return
  }
  func.func @transform_0(%arg0: i32) -> (i32, i32) {
    %c0_i32 = arith.constant 0 : i32
    %c0_i32_0 = arith.constant 0 : i32
    return %arg0, %c0_i32 : i32, i32
  }
  func.func @transform_1(%arg0: i32) -> (i32, i32) {
    %c0_i32 = arith.constant 0 : i32
    %c0_i32_0 = arith.constant 0 : i32
    %c0_i32_1 = arith.constant 0 : i32
    return %c0_i32, %c0_i32_0 : i32, i32
  }
  func.func @transform_2(%arg0: i32) -> (i32, i32) {
    %c0_i32 = arith.constant 0 : i32
    %c0_i32_0 = arith.constant 0 : i32
    %c0_i32_1 = arith.constant 0 : i32
    return %c0_i32, %c0_i32_0 : i32, i32
  }
  func.func @transform_3(%arg0: i32) -> (i32, i32) {
    %c0_i32 = arith.constant 0 : i32
    %c0_i32_0 = arith.constant 0 : i32
    %c0_i32_1 = arith.constant 0 : i32
    return %c0_i32, %c0_i32_0 : i32, i32
  }
  func.func @transform_4(%arg0: i32) -> (i32, i32) {
    %c0_i32 = arith.constant 0 : i32
    %c0_i32_0 = arith.constant 0 : i32
    %c0_i32_1 = arith.constant 0 : i32
    return %c0_i32, %c0_i32_0 : i32, i32
  }
  func.func @transform_5(%arg0: i32) -> (i32, i32) {
    %c0_i32 = arith.constant 0 : i32
    %c0_i32_0 = arith.constant 0 : i32
    return %arg0, %c0_i32 : i32, i32
  }
  func.func @transform_6(%arg0: i32) -> (i32, i32, i32) {
    %c0_i32 = arith.constant 0 : i32
    %c0_i32_0 = arith.constant 0 : i32
    %c0_i32_1 = arith.constant 0 : i32
    return %arg0, %c0_i32, %c0_i32_0 : i32, i32, i32
  }
}

module attributes {stable_mosaic.version = 11 : i64} {
  func.func @kernel(%arg0: i32, %arg1: memref<32x128xbf16, #tpu.memory_space<vmem>>, %arg2: memref<128x128xbf16, #tpu.memory_space<vmem>>, %arg3: memref<1x128xf32, #tpu.memory_space<vmem>>, %arg4: memref<1x128xf32, #tpu.memory_space<vmem>>, %arg5: memref<1x128xf32, #tpu.memory_space<vmem>>, %arg6: memref<32x128xbf16, #tpu.memory_space<vmem>>) attributes {dimension_semantics = [#tpu.dimension_semantics<parallel>], iteration_bounds = array<i64: 1>, scalar_prefetch = 0 : i64, scratch_operands = 0 : i64, tpu.core_type = #tpu.core_type<tc>, window_params = [{transform_indices = @transform_0, window_bounds = array<i64: 32, 128>}, {pipeline_mode = #tpu.pipeline_mode<synchronous>, transform_indices = @transform_1, window_bounds = array<i64: 128, 128>}, {pipeline_mode = #tpu.pipeline_mode<synchronous>, transform_indices = @transform_2, window_bounds = array<i64: 1, 128>}, {pipeline_mode = #tpu.pipeline_mode<synchronous>, transform_indices = @transform_3, window_bounds = array<i64: 1, 128>}, {pipeline_mode = #tpu.pipeline_mode<synchronous>, transform_indices = @transform_4, window_bounds = array<i64: 1, 128>}, {transform_indices = @transform_5, window_bounds = array<i64: 32, 128>}]} {
    %c0 = arith.constant 0 : index
    %c0_0 = arith.constant 0 : index
    %0 = vector.load %arg1[%c0, %c0_0] : memref<32x128xbf16, #tpu.memory_space<vmem>>, vector<32x128xbf16>
    %1 = arith.extf %0 : vector<32x128xbf16> to vector<32x128xf32>
    %c0_1 = arith.constant 0 : index
    %c0_2 = arith.constant 0 : index
    %2 = vector.load %arg4[%c0_1, %c0_2] : memref<1x128xf32, #tpu.memory_space<vmem>>, vector<1x128xf32>
    %3 = vector.broadcast %2 : vector<1x128xf32> to vector<32x128xf32>
    %4 = arith.mulf %1, %3 : vector<32x128xf32>
    %c0_3 = arith.constant 0 : index
    %c0_4 = arith.constant 0 : index
    %5 = vector.load %arg5[%c0_3, %c0_4] : memref<1x128xf32, #tpu.memory_space<vmem>>, vector<1x128xf32>
    %6 = vector.broadcast %5 : vector<1x128xf32> to vector<32x128xf32>
    %7 = arith.addf %4, %6 : vector<32x128xf32>
    %cst = arith.constant 0.000000e+00 : f32
    %8 = vector.broadcast %cst : f32 to vector<32x128xf32>
    %9 = arith.maximumf %7, %8 : vector<32x128xf32>
    %10 = arith.truncf %9 : vector<32x128xf32> to vector<32x128xbf16>
    %c0_5 = arith.constant 0 : index
    %c0_6 = arith.constant 0 : index
    %11 = vector.load %arg2[%c0_5, %c0_6] : memref<128x128xbf16, #tpu.memory_space<vmem>>, vector<128x128xbf16>
    %cst_7 = arith.constant dense<0.000000e+00> : vector<32x128xf32>
    %12 = tpu.matmul %10, %11, %cst_7 {dimension_numbers = #tpu.dot_dimension_numbers<[1], [0], [0], [1], [0, 0, 1, 1], [], []>} : vector<32x128xbf16>, vector<128x128xbf16>, vector<32x128xf32> -> vector<32x128xf32>
    %c0_8 = arith.constant 0 : index
    %c0_9 = arith.constant 0 : index
    %13 = vector.load %arg3[%c0_8, %c0_9] : memref<1x128xf32, #tpu.memory_space<vmem>>, vector<1x128xf32>
    %14 = vector.broadcast %13 : vector<1x128xf32> to vector<32x128xf32>
    %15 = arith.addf %12, %14 : vector<32x128xf32>
    %16 = arith.truncf %15 : vector<32x128xf32> to vector<32x128xbf16>
    %c0_10 = arith.constant 0 : index
    %c0_11 = arith.constant 0 : index
    %17 = vector.load %arg6[%c0_10, %c0_11] : memref<32x128xbf16, #tpu.memory_space<vmem>>, vector<32x128xbf16>
    tpu.vector_store %arg6[%c0_10, %c0_11], %16 {strides = array<i32>} : memref<32x128xbf16, #tpu.memory_space<vmem>>, vector<32x128xbf16>,
    return
  }
  func.func @transform_0(%arg0: i32) -> (i32, i32) {
    %c0_i32 = arith.constant 0 : i32
    %c0_i32_0 = arith.constant 0 : i32
    return %arg0, %c0_i32 : i32, i32
  }
  func.func @transform_1(%arg0: i32) -> (i32, i32) {
    %c0_i32 = arith.constant 0 : i32
    %c0_i32_0 = arith.constant 0 : i32
    %c0_i32_1 = arith.constant 0 : i32
    return %c0_i32, %c0_i32_0 : i32, i32
  }
  func.func @transform_2(%arg0: i32) -> (i32, i32) {
    %c0_i32 = arith.constant 0 : i32
    %c0_i32_0 = arith.constant 0 : i32
    %c0_i32_1 = arith.constant 0 : i32
    return %c0_i32, %c0_i32_0 : i32, i32
  }
  func.func @transform_3(%arg0: i32) -> (i32, i32) {
    %c0_i32 = arith.constant 0 : i32
    %c0_i32_0 = arith.constant 0 : i32
    %c0_i32_1 = arith.constant 0 : i32
    return %c0_i32, %c0_i32_0 : i32, i32
  }
  func.func @transform_4(%arg0: i32) -> (i32, i32) {
    %c0_i32 = arith.constant 0 : i32
    %c0_i32_0 = arith.constant 0 : i32
    %c0_i32_1 = arith.constant 0 : i32
    return %c0_i32, %c0_i32_0 : i32, i32
  }
  func.func @transform_5(%arg0: i32) -> (i32, i32) {
    %c0_i32 = arith.constant 0 : i32
    %c0_i32_0 = arith.constant 0 : i32
    return %arg0, %c0_i32 : i32, i32
  }
}

module attributes {stable_mosaic.version = 11 : i64} {
  func.func @kernel(%arg0: i32, %arg1: memref<48x128xbf16, #tpu.memory_space<vmem>>, %arg2: memref<128x128xbf16, #tpu.memory_space<vmem>>, %arg3: memref<1x128xf32, #tpu.memory_space<vmem>>, %arg4: memref<1x128xf32, #tpu.memory_space<vmem>>, %arg5: memref<48x128xbf16, #tpu.memory_space<vmem>>) attributes {dimension_semantics = [#tpu.dimension_semantics<parallel>], iteration_bounds = array<i64: 1>, scalar_prefetch = 0 : i64, scratch_operands = 0 : i64, tpu.core_type = #tpu.core_type<tc>, window_params = [{transform_indices = @transform_0, window_bounds = array<i64: 48, 128>}, {pipeline_mode = #tpu.pipeline_mode<synchronous>, transform_indices = @transform_1, window_bounds = array<i64: 128, 128>}, {pipeline_mode = #tpu.pipeline_mode<synchronous>, transform_indices = @transform_2, window_bounds = array<i64: 1, 128>}, {pipeline_mode = #tpu.pipeline_mode<synchronous>, transform_indices = @transform_3, window_bounds = array<i64: 1, 128>}, {transform_indices = @transform_4, window_bounds = array<i64: 48, 128>}]} {
    %c0 = arith.constant 0 : index
    %c0_0 = arith.constant 0 : index
    %0 = vector.load %arg1[%c0, %c0_0] : memref<48x128xbf16, #tpu.memory_space<vmem>>, vector<48x128xbf16>
    %1 = arith.extf %0 : vector<48x128xbf16> to vector<48x128xf32>
    %cst = arith.constant dense<0.000000e+00> : vector<48xf32>
    %2 = vector.multi_reduction <add>, %1, %cst [1] : vector<48x128xf32> to vector<48xf32>
    %3 = vector.shape_cast %2 : vector<48xf32> to vector<48x1xf32>
    %4 = arith.mulf %1, %1 : vector<48x128xf32>
    %cst_1 = arith.constant dense<0.000000e+00> : vector<48xf32>
    %5 = vector.multi_reduction <add>, %4, %cst_1 [1] : vector<48x128xf32> to vector<48xf32>
    %6 = vector.shape_cast %5 : vector<48xf32> to vector<48x1xf32>
    %cst_2 = arith.constant 3.200000e+01 : f32
    %7 = vector.broadcast %cst_2 : f32 to vector<48x1xf32>
    %8 = arith.divf %3, %7 : vector<48x1xf32>
    %cst_3 = arith.constant 3.200000e+01 : f32
    %9 = vector.broadcast %cst_3 : f32 to vector<48x1xf32>
    %10 = arith.divf %6, %9 : vector<48x1xf32>
    %11 = arith.mulf %8, %8 : vector<48x1xf32>
    %12 = arith.subf %10, %11 : vector<48x1xf32>
    %cst_4 = arith.constant 0.000000e+00 : f32
    %13 = vector.broadcast %cst_4 : f32 to vector<48x1xf32>
    %14 = arith.maximumf %12, %13 : vector<48x1xf32>
    %15 = vector.broadcast %8 : vector<48x1xf32> to vector<48x128xf32>
    %16 = arith.subf %1, %15 : vector<48x128xf32>
    %cst_5 = arith.constant 9.99999974E-6 : f32
    %17 = vector.broadcast %cst_5 : f32 to vector<48x1xf32>
    %18 = arith.addf %14, %17 : vector<48x1xf32>
    %19 = math.rsqrt %18 : vector<48x1xf32>
    %20 = vector.broadcast %19 : vector<48x1xf32> to vector<48x128xf32>
    %21 = arith.mulf %16, %20 : vector<48x128xf32>
    %c0_6 = arith.constant 0 : index
    %c0_7 = arith.constant 0 : index
    %22 = vector.load %arg3[%c0_6, %c0_7] : memref<1x128xf32, #tpu.memory_space<vmem>>, vector<1x128xf32>
    %23 = vector.broadcast %22 : vector<1x128xf32> to vector<48x128xf32>
    %24 = arith.mulf %21, %23 : vector<48x128xf32>
    %c0_8 = arith.constant 0 : index
    %c0_9 = arith.constant 0 : index
    %25 = vector.load %arg4[%c0_8, %c0_9] : memref<1x128xf32, #tpu.memory_space<vmem>>, vector<1x128xf32>
    %26 = vector.broadcast %25 : vector<1x128xf32> to vector<48x128xf32>
    %27 = arith.addf %24, %26 : vector<48x128xf32>
    %28 = arith.truncf %27 : vector<48x128xf32> to vector<48x128xbf16>
    %c0_10 = arith.constant 0 : index
    %c0_11 = arith.constant 0 : index
    %29 = vector.load %arg2[%c0_10, %c0_11] : memref<128x128xbf16, #tpu.memory_space<vmem>>, vector<128x128xbf16>
    %cst_12 = arith.constant dense<0.000000e+00> : vector<48x128xf32>
    %30 = tpu.matmul %28, %29, %cst_12 {dimension_numbers = #tpu.dot_dimension_numbers<[1], [0], [0], [1], [0, 0, 1, 1], [], []>} : vector<48x128xbf16>, vector<128x128xbf16>, vector<48x128xf32> -> vector<48x128xf32>
    %31 = arith.truncf %30 : vector<48x128xf32> to vector<48x128xbf16>
    %c0_13 = arith.constant 0 : index
    %c0_14 = arith.constant 0 : index
    %32 = vector.load %arg5[%c0_13, %c0_14] : memref<48x128xbf16, #tpu.memory_space<vmem>>, vector<48x128xbf16>
    tpu.vector_store %arg5[%c0_13, %c0_14], %31 {strides = array<i32>} : memref<48x128xbf16, #tpu.memory_space<vmem>>, vector<48x128xbf16>,
    return
  }
  func.func @transform_0(%arg0: i32) -> (i32, i32) {
    %c0_i32 = arith.constant 0 : i32
    %c0_i32_0 = arith.constant 0 : i32
    return %arg0, %c0_i32 : i32, i32
  }
  func.func @transform_1(%arg0: i32) -> (i32, i32) {
    %c0_i32 = arith.constant 0 : i32
    %c0_i32_0 = arith.constant 0 : i32
    %c0_i32_1 = arith.constant 0 : i32
    return %c0_i32, %c0_i32_0 : i32, i32
  }
  func.func @transform_2(%arg0: i32) -> (i32, i32) {
    %c0_i32 = arith.constant 0 : i32
    %c0_i32_0 = arith.constant 0 : i32
    %c0_i32_1 = arith.constant 0 : i32
    return %c0_i32, %c0_i32_0 : i32, i32
  }
  func.func @transform_3(%arg0: i32) -> (i32, i32) {
    %c0_i32 = arith.constant 0 : i32
    %c0_i32_0 = arith.constant 0 : i32
    %c0_i32_1 = arith.constant 0 : i32
    return %c0_i32, %c0_i32_0 : i32, i32
  }
  func.func @transform_4(%arg0: i32) -> (i32, i32) {
    %c0_i32 = arith.constant 0 : i32
    %c0_i32_0 = arith.constant 0 : i32
    return %arg0, %c0_i32 : i32, i32
  }
}

module attributes {stable_mosaic.version = 11 : i64} {
  func.func @kernel(%arg0: i32, %arg1: memref<1x24x128xbf16, #tpu.memory_space<vmem>>, %arg2: memref<1x24x128xf32, #tpu.memory_space<vmem>>) attributes {dimension_semantics = [#tpu.dimension_semantics<parallel>], iteration_bounds = array<i64: 2>, scalar_prefetch = 0 : i64, scratch_operands = 0 : i64, tpu.core_type = #tpu.core_type<tc>, window_params = [{transform_indices = @transform_0, window_bounds = array<i64: 1, 24, 128>}, {transform_indices = @transform_1, window_bounds = array<i64: 1, 24, 128>}]} {
    %c0 = arith.constant 0 : index
    %c0_0 = arith.constant 0 : index
    %c0_1 = arith.constant 0 : index
    %0 = vector.load %arg1[%c0, %c0_0, %c0_1] : memref<1x24x128xbf16, #tpu.memory_space<vmem>>, vector<1x24x128xbf16>
    %1 = vector.shape_cast %0 : vector<1x24x128xbf16> to vector<24x128xbf16>
    %2 = arith.extf %1 : vector<24x128xbf16> to vector<24x128xf32>
    %3 = tpu.iota {dimensions = array<i32: 1>} : vector<24x24xi32>
    %c17_i32 = arith.constant 17 : i32
    %4 = vector.broadcast %c17_i32 : i32 to vector<24x24xi32>
    %5 = arith.cmpi slt, %3, %4 : vector<24x24xi32>
    %cst = arith.constant 0.000000e+00 : f32
    %6 = vector.broadcast %cst : f32 to vector<24x128xf32>
    %c0_2 = arith.constant 0 : index
    %c0_3 = arith.constant 0 : index
    %c0_4 = arith.constant 0 : index
    %7 = vector.load %arg2[%c0_2, %c0_3, %c0_4] : memref<1x24x128xf32, #tpu.memory_space<vmem>>, vector<1x24x128xf32>
    %8 = vector.shape_cast %7 : vector<1x24x128xf32> to vector<24x128xf32>
    %9 = vector.shape_cast %6 : vector<24x128xf32> to vector<1x24x128xf32>
    tpu.vector_store %arg2[%c0_2, %c0_3, %c0_4], %9 {strides = array<i32>} : memref<1x24x128xf32, #tpu.memory_space<vmem>>, vector<1x24x128xf32>,
    %10 = vector.extract_strided_slice %2 {offsets = [0, 0], sizes = [24, 8], strides = [1, 1]} : vector<24x128xf32> to vector<24x8xf32>
    %11 = vector.extract_strided_slice %2 {offsets = [0, 32], sizes = [24, 8], strides = [1, 1]} : vector<24x128xf32> to vector<24x8xf32>
    %12 = vector.extract_strided_slice %2 {offsets = [0, 64], sizes = [24, 8], strides = [1, 1]} : vector<24x128xf32> to vector<24x8xf32>
    %cst_5 = arith.constant dense<0.000000e+00> : vector<24x24xf32>
    %13 = tpu.matmul %10, %11, %cst_5 {dimension_numbers = #tpu.dot_dimension_numbers<[1], [1], [0], [0], [0, 0, 1, 0], [], []>} : vector<24x8xf32>, vector<24x8xf32>, vector<24x24xf32> -> vector<24x24xf32>
    %cst_6 = arith.constant 0.353553385 : f32
    %14 = vector.broadcast %cst_6 : f32 to vector<24x24xf32>
    %15 = arith.mulf %13, %14 : vector<24x24xf32>
    %cst_7 = arith.constant -1.000000e+30 : f32
    %16 = vector.broadcast %cst_7 : f32 to vector<24x24xf32>
    %17 = arith.select %5, %15, %16 : vector<24x24xi1>, vector<24x24xf32>
    %cst_8 = arith.constant dense<0xFF800000> : vector<24xf32>
    %18 = vector.multi_reduction <maximumf>, %17, %cst_8 [1] : vector<24x24xf32> to vector<24xf32>
    %19 = vector.shape_cast %18 : vector<24xf32> to vector<24x1xf32>
    %20 = vector.broadcast %19 : vector<24x1xf32> to vector<24x24xf32>
    %21 = arith.subf %17, %20 : vector<24x24xf32>
    %22 = math.exp %21 : vector<24x24xf32>
    %cst_9 = arith.constant dense<0.000000e+00> : vector<24xf32>
    %23 = vector.multi_reduction <add>, %22, %cst_9 [1] : vector<24x24xf32> to vector<24xf32>
    %24 = vector.shape_cast %23 : vector<24xf32> to vector<24x1xf32>
    %cst_10 = arith.constant dense<0.000000e+00> : vector<24x8xf32>
    %25 = tpu.matmul %22, %12, %cst_10 {dimension_numbers = #tpu.dot_dimension_numbers<[1], [0], [0], [1], [0, 0, 1, 1], [], []>} : vector<24x24xf32>, vector<24x8xf32>, vector<24x8xf32> -> vector<24x8xf32>
    %26 = tpu.reciprocal %24 {approx = true} : vector<24x1xf32> -> vector<24x1xf32>
    %27 = vector.broadcast %26 : vector<24x1xf32> to vector<24x8xf32>
    %28 = arith.mulf %25, %27 : vector<24x8xf32>
    %c0_11 = arith.constant 0 : index
    %c0_12 = arith.constant 0 : index
    %c0_13 = arith.constant 0 : index
    %29 = vector.load %arg2[%c0_11, %c0_12, %c0_13] : memref<1x24x128xf32, #tpu.memory_space<vmem>>, vector<1x24x8xf32>
    %30 = vector.shape_cast %29 : vector<1x24x8xf32> to vector<24x8xf32>
    %31 = vector.shape_cast %28 : vector<24x8xf32> to vector<1x24x8xf32>
    tpu.vector_store %arg2[%c0_11, %c0_12, %c0_13], %31 {strides = array<i32>} : memref<1x24x128xf32, #tpu.memory_space<vmem>>, vector<1x24x8xf32>,
    %32 = vector.extract_strided_slice %2 {offsets = [0, 8], sizes = [24, 8], strides = [1, 1]} : vector<24x128xf32> to vector<24x8xf32>
    %33 = vector.extract_strided_slice %2 {offsets = [0, 40], sizes = [24, 8], strides = [1, 1]} : vector<24x128xf32> to vector<24x8xf32>
    %34 = vector.extract_strided_slice %2 {offsets = [0, 72], sizes = [24, 8], strides = [1, 1]} : vector<24x128xf32> to vector<24x8xf32>
    %cst_14 = arith.constant dense<0.000000e+00> : vector<24x24xf32>
    %35 = tpu.matmul %32, %33, %cst_14 {dimension_numbers = #tpu.dot_dimension_numbers<[1], [1], [0], [0], [0, 0, 1, 0], [], []>} : vector<24x8xf32>, vector<24x8xf32>, vector<24x24xf32> -> vector<24x24xf32>
    %cst_15 = arith.constant 0.353553385 : f32
    %36 = vector.broadcast %cst_15 : f32 to vector<24x24xf32>
    %37 = arith.mulf %35, %36 : vector<24x24xf32>
    %cst_16 = arith.constant -1.000000e+30 : f32
    %38 = vector.broadcast %cst_16 : f32 to vector<24x24xf32>
    %39 = arith.select %5, %37, %38 : vector<24x24xi1>, vector<24x24xf32>
    %cst_17 = arith.constant dense<0xFF800000> : vector<24xf32>
    %40 = vector.multi_reduction <maximumf>, %39, %cst_17 [1] : vector<24x24xf32> to vector<24xf32>
    %41 = vector.shape_cast %40 : vector<24xf32> to vector<24x1xf32>
    %42 = vector.broadcast %41 : vector<24x1xf32> to vector<24x24xf32>
    %43 = arith.subf %39, %42 : vector<24x24xf32>
    %44 = math.exp %43 : vector<24x24xf32>
    %cst_18 = arith.constant dense<0.000000e+00> : vector<24xf32>
    %45 = vector.multi_reduction <add>, %44, %cst_18 [1] : vector<24x24xf32> to vector<24xf32>
    %46 = vector.shape_cast %45 : vector<24xf32> to vector<24x1xf32>
    %cst_19 = arith.constant dense<0.000000e+00> : vector<24x8xf32>
    %47 = tpu.matmul %44, %34, %cst_19 {dimension_numbers = #tpu.dot_dimension_numbers<[1], [0], [0], [1], [0, 0, 1, 1], [], []>} : vector<24x24xf32>, vector<24x8xf32>, vector<24x8xf32> -> vector<24x8xf32>
    %48 = tpu.reciprocal %46 {approx = true} : vector<24x1xf32> -> vector<24x1xf32>
    %49 = vector.broadcast %48 : vector<24x1xf32> to vector<24x8xf32>
    %50 = arith.mulf %47, %49 : vector<24x8xf32>
    %c0_20 = arith.constant 0 : index
    %c0_21 = arith.constant 0 : index
    %c8 = arith.constant 8 : index
    %51 = vector.load %arg2[%c0_20, %c0_21, %c8] : memref<1x24x128xf32, #tpu.memory_space<vmem>>, vector<1x24x8xf32>
    %52 = vector.shape_cast %51 : vector<1x24x8xf32> to vector<24x8xf32>
    %53 = vector.shape_cast %50 : vector<24x8xf32> to vector<1x24x8xf32>
    tpu.vector_store %arg2[%c0_20, %c0_21, %c8], %53 {strides = array<i32>} : memref<1x24x128xf32, #tpu.memory_space<vmem>>, vector<1x24x8xf32>,
    %54 = vector.extract_strided_slice %2 {offsets = [0, 16], sizes = [24, 8], strides = [1, 1]} : vector<24x128xf32> to vector<24x8xf32>
    %55 = vector.extract_strided_slice %2 {offsets = [0, 48], sizes = [24, 8], strides = [1, 1]} : vector<24x128xf32> to vector<24x8xf32>
    %56 = vector.extract_strided_slice %2 {offsets = [0, 80], sizes = [24, 8], strides = [1, 1]} : vector<24x128xf32> to vector<24x8xf32>
    %cst_22 = arith.constant dense<0.000000e+00> : vector<24x24xf32>
    %57 = tpu.matmul %54, %55, %cst_22 {dimension_numbers = #tpu.dot_dimension_numbers<[1], [1], [0], [0], [0, 0, 1, 0], [], []>} : vector<24x8xf32>, vector<24x8xf32>, vector<24x24xf32> -> vector<24x24xf32>
    %cst_23 = arith.constant 0.353553385 : f32
    %58 = vector.broadcast %cst_23 : f32 to vector<24x24xf32>
    %59 = arith.mulf %57, %58 : vector<24x24xf32>
    %cst_24 = arith.constant -1.000000e+30 : f32
    %60 = vector.broadcast %cst_24 : f32 to vector<24x24xf32>
    %61 = arith.select %5, %59, %60 : vector<24x24xi1>, vector<24x24xf32>
    %cst_25 = arith.constant dense<0xFF800000> : vector<24xf32>
    %62 = vector.multi_reduction <maximumf>, %61, %cst_25 [1] : vector<24x24xf32> to vector<24xf32>
    %63 = vector.shape_cast %62 : vector<24xf32> to vector<24x1xf32>
    %64 = vector.broadcast %63 : vector<24x1xf32> to vector<24x24xf32>
    %65 = arith.subf %61, %64 : vector<24x24xf32>
    %66 = math.exp %65 : vector<24x24xf32>
    %cst_26 = arith.constant dense<0.000000e+00> : vector<24xf32>
    %67 = vector.multi_reduction <add>, %66, %cst_26 [1] : vector<24x24xf32> to vector<24xf32>
    %68 = vector.shape_cast %67 : vector<24xf32> to vector<24x1xf32>
    %cst_27 = arith.constant dense<0.000000e+00> : vector<24x8xf32>
    %69 = tpu.matmul %66, %56, %cst_27 {dimension_numbers = #tpu.dot_dimension_numbers<[1], [0], [0], [1], [0, 0, 1, 1], [], []>} : vector<24x24xf32>, vector<24x8xf32>, vector<24x8xf32> -> vector<24x8xf32>
    %70 = tpu.reciprocal %68 {approx = true} : vector<24x1xf32> -> vector<24x1xf32>
    %71 = vector.broadcast %70 : vector<24x1xf32> to vector<24x8xf32>
    %72 = arith.mulf %69, %71 : vector<24x8xf32>
    %c0_28 = arith.constant 0 : index
    %c0_29 = arith.constant 0 : index
    %c16 = arith.constant 16 : index
    %73 = vector.load %arg2[%c0_28, %c0_29, %c16] : memref<1x24x128xf32, #tpu.memory_space<vmem>>, vector<1x24x8xf32>
    %74 = vector.shape_cast %73 : vector<1x24x8xf32> to vector<24x8xf32>
    %75 = vector.shape_cast %72 : vector<24x8xf32> to vector<1x24x8xf32>
    tpu.vector_store %arg2[%c0_28, %c0_29, %c16], %75 {strides = array<i32>} : memref<1x24x128xf32, #tpu.memory_space<vmem>>, vector<1x24x8xf32>,
    %76 = vector.extract_strided_slice %2 {offsets = [0, 24], sizes = [24, 8], strides = [1, 1]} : vector<24x128xf32> to vector<24x8xf32>
    %77 = vector.extract_strided_slice %2 {offsets = [0, 56], sizes = [24, 8], strides = [1, 1]} : vector<24x128xf32> to vector<24x8xf32>
    %78 = vector.extract_strided_slice %2 {offsets = [0, 88], sizes = [24, 8], strides = [1, 1]} : vector<24x128xf32> to vector<24x8xf32>
    %cst_30 = arith.constant dense<0.000000e+00> : vector<24x24xf32>
    %79 = tpu.matmul %76, %77, %cst_30 {dimension_numbers = #tpu.dot_dimension_numbers<[1], [1], [0], [0], [0, 0, 1, 0], [], []>} : vector<24x8xf32>, vector<24x8xf32>, vector<24x24xf32> -> vector<24x24xf32>
    %cst_31 = arith.constant 0.353553385 : f32
    %80 = vector.broadcast %cst_31 : f32 to vector<24x24xf32>
    %81 = arith.mulf %79, %80 : vector<24x24xf32>
    %cst_32 = arith.constant -1.000000e+30 : f32
    %82 = vector.broadcast %cst_32 : f32 to vector<24x24xf32>
    %83 = arith.select %5, %81, %82 : vector<24x24xi1>, vector<24x24xf32>
    %cst_33 = arith.constant dense<0xFF800000> : vector<24xf32>
    %84 = vector.multi_reduction <maximumf>, %83, %cst_33 [1] : vector<24x24xf32> to vector<24xf32>
    %85 = vector.shape_cast %84 : vector<24xf32> to vector<24x1xf32>
    %86 = vector.broadcast %85 : vector<24x1xf32> to vector<24x24xf32>
    %87 = arith.subf %83, %86 : vector<24x24xf32>
    %88 = math.exp %87 : vector<24x24xf32>
    %cst_34 = arith.constant dense<0.000000e+00> : vector<24xf32>
    %89 = vector.multi_reduction <add>, %88, %cst_34 [1] : vector<24x24xf32> to vector<24xf32>
    %90 = vector.shape_cast %89 : vector<24xf32> to vector<24x1xf32>
    %cst_35 = arith.constant dense<0.000000e+00> : vector<24x8xf32>
    %91 = tpu.matmul %88, %78, %cst_35 {dimension_numbers = #tpu.dot_dimension_numbers<[1], [0], [0], [1], [0, 0, 1, 1], [], []>} : vector<24x24xf32>, vector<24x8xf32>, vector<24x8xf32> -> vector<24x8xf32>
    %92 = tpu.reciprocal %90 {approx = true} : vector<24x1xf32> -> vector<24x1xf32>
    %93 = vector.broadcast %92 : vector<24x1xf32> to vector<24x8xf32>
    %94 = arith.mulf %91, %93 : vector<24x8xf32>
    %c0_36 = arith.constant 0 : index
    %c0_37 = arith.constant 0 : index
    %c24 = arith.constant 24 : index
    %95 = vector.load %arg2[%c0_36, %c0_37, %c24] : memref<1x24x128xf32, #tpu.memory_space<vmem>>, vector<1x24x8xf32>
    %96 = vector.shape_cast %95 : vector<1x24x8xf32> to vector<24x8xf32>
    %97 = vector.shape_cast %94 : vector<24x8xf32> to vector<1x24x8xf32>
    tpu.vector_store %arg2[%c0_36, %c0_37, %c24], %97 {strides = array<i32>} : memref<1x24x128xf32, #tpu.memory_space<vmem>>, vector<1x24x8xf32>,
    return
  }
  func.func @transform_0(%arg0: i32) -> (i32, i32, i32) {
    %c0_i32 = arith.constant 0 : i32
    %c0_i32_0 = arith.constant 0 : i32
    %c0_i32_1 = arith.constant 0 : i32
    return %arg0, %c0_i32, %c0_i32_0 : i32, i32, i32
  }
  func.func @transform_1(%arg0: i32) -> (i32, i32, i32) {
    %c0_i32 = arith.constant 0 : i32
    %c0_i32_0 = arith.constant 0 : i32
    %c0_i32_1 = arith.constant 0 : i32
    return %arg0, %c0_i32, %c0_i32_0 : i32, i32, i32
  }
}

module attributes {stable_mosaic.version = 11 : i64} {
  func.func @kernel(%arg0: i32, %arg1: memref<48x128xf32, #tpu.memory_space<vmem>>, %arg2: memref<128x128xbf16, #tpu.memory_space<vmem>>, %arg3: memref<1x128xf32, #tpu.memory_space<vmem>>, %arg4: memref<48x128xbf16, #tpu.memory_space<vmem>>, %arg5: memref<48x128xbf16, #tpu.memory_space<vmem>>) attributes {dimension_semantics = [#tpu.dimension_semantics<parallel>], iteration_bounds = array<i64: 1>, scalar_prefetch = 0 : i64, scratch_operands = 0 : i64, tpu.core_type = #tpu.core_type<tc>, window_params = [{transform_indices = @transform_0, window_bounds = array<i64: 48, 128>}, {pipeline_mode = #tpu.pipeline_mode<synchronous>, transform_indices = @transform_1, window_bounds = array<i64: 128, 128>}, {pipeline_mode = #tpu.pipeline_mode<synchronous>, transform_indices = @transform_2, window_bounds = array<i64: 1, 128>}, {transform_indices = @transform_3, window_bounds = array<i64: 48, 128>}, {transform_indices = @transform_4, window_bounds = array<i64: 48, 128>}]} {
    %c0 = arith.constant 0 : index
    %c0_0 = arith.constant 0 : index
    %0 = vector.load %arg1[%c0, %c0_0] : memref<48x128xf32, #tpu.memory_space<vmem>>, vector<48x128xf32>
    %1 = arith.truncf %0 : vector<48x128xf32> to vector<48x128xbf16>
    %c0_1 = arith.constant 0 : index
    %c0_2 = arith.constant 0 : index
    %2 = vector.load %arg2[%c0_1, %c0_2] : memref<128x128xbf16, #tpu.memory_space<vmem>>, vector<128x128xbf16>
    %cst = arith.constant dense<0.000000e+00> : vector<48x128xf32>
    %3 = tpu.matmul %1, %2, %cst {dimension_numbers = #tpu.dot_dimension_numbers<[1], [0], [0], [1], [0, 0, 1, 1], [], []>} : vector<48x128xbf16>, vector<128x128xbf16>, vector<48x128xf32> -> vector<48x128xf32>
    %c0_3 = arith.constant 0 : index
    %c0_4 = arith.constant 0 : index
    %4 = vector.load %arg3[%c0_3, %c0_4] : memref<1x128xf32, #tpu.memory_space<vmem>>, vector<1x128xf32>
    %5 = vector.broadcast %4 : vector<1x128xf32> to vector<48x128xf32>
    %6 = arith.addf %3, %5 : vector<48x128xf32>
    %c0_5 = arith.constant 0 : index
    %c0_6 = arith.constant 0 : index
    %7 = vector.load %arg4[%c0_5, %c0_6] : memref<48x128xbf16, #tpu.memory_space<vmem>>, vector<48x128xbf16>
    %8 = arith.extf %7 : vector<48x128xbf16> to vector<48x128xf32>
    %9 = arith.addf %6, %8 : vector<48x128xf32>
    %10 = arith.truncf %9 : vector<48x128xf32> to vector<48x128xbf16>
    %c0_7 = arith.constant 0 : index
    %c0_8 = arith.constant 0 : index
    %11 = vector.load %arg5[%c0_7, %c0_8] : memref<48x128xbf16, #tpu.memory_space<vmem>>, vector<48x128xbf16>
    tpu.vector_store %arg5[%c0_7, %c0_8], %10 {strides = array<i32>} : memref<48x128xbf16, #tpu.memory_space<vmem>>, vector<48x128xbf16>,
    return
  }
  func.func @transform_0(%arg0: i32) -> (i32, i32) {
    %c0_i32 = arith.constant 0 : i32
    %c0_i32_0 = arith.constant 0 : i32
    return %arg0, %c0_i32 : i32, i32
  }
  func.func @transform_1(%arg0: i32) -> (i32, i32) {
    %c0_i32 = arith.constant 0 : i32
    %c0_i32_0 = arith.constant 0 : i32
    %c0_i32_1 = arith.constant 0 : i32
    return %c0_i32, %c0_i32_0 : i32, i32
  }
  func.func @transform_2(%arg0: i32) -> (i32, i32) {
    %c0_i32 = arith.constant 0 : i32
    %c0_i32_0 = arith.constant 0 : i32
    %c0_i32_1 = arith.constant 0 : i32
    return %c0_i32, %c0_i32_0 : i32, i32
  }
  func.func @transform_3(%arg0: i32) -> (i32, i32) {
    %c0_i32 = arith.constant 0 : i32
    %c0_i32_0 = arith.constant 0 : i32
    return %arg0, %c0_i32 : i32, i32
  }
  func.func @transform_4(%arg0: i32) -> (i32, i32) {
    %c0_i32 = arith.constant 0 : i32
    %c0_i32_0 = arith.constant 0 : i32
    return %arg0, %c0_i32 : i32, i32
  }
}

module attributes {stable_mosaic.version = 11 : i64} {
  func.func @kernel(%arg0: i32, %arg1: memref<48x128xbf16, #tpu.memory_space<vmem>>, %arg2: memref<128x128xbf16, #tpu.memory_space<vmem>>, %arg3: memref<1x128xf32, #tpu.memory_space<vmem>>, %arg4: memref<1x128xf32, #tpu.memory_space<vmem>>, %arg5: memref<1x128xf32, #tpu.memory_space<vmem>>, %arg6: memref<48x128xbf16, #tpu.memory_space<vmem>>) attributes {dimension_semantics = [#tpu.dimension_semantics<parallel>], iteration_bounds = array<i64: 1>, scalar_prefetch = 0 : i64, scratch_operands = 0 : i64, tpu.core_type = #tpu.core_type<tc>, window_params = [{transform_indices = @transform_0, window_bounds = array<i64: 48, 128>}, {pipeline_mode = #tpu.pipeline_mode<synchronous>, transform_indices = @transform_1, window_bounds = array<i64: 128, 128>}, {pipeline_mode = #tpu.pipeline_mode<synchronous>, transform_indices = @transform_2, window_bounds = array<i64: 1, 128>}, {pipeline_mode = #tpu.pipeline_mode<synchronous>, transform_indices = @transform_3, window_bounds = array<i64: 1, 128>}, {pipeline_mode = #tpu.pipeline_mode<synchronous>, transform_indices = @transform_4, window_bounds = array<i64: 1, 128>}, {transform_indices = @transform_5, window_bounds = array<i64: 48, 128>}]} {
    %c0 = arith.constant 0 : index
    %c0_0 = arith.constant 0 : index
    %0 = vector.load %arg1[%c0, %c0_0] : memref<48x128xbf16, #tpu.memory_space<vmem>>, vector<48x128xbf16>
    %1 = arith.extf %0 : vector<48x128xbf16> to vector<48x128xf32>
    %cst = arith.constant dense<0.000000e+00> : vector<48xf32>
    %2 = vector.multi_reduction <add>, %1, %cst [1] : vector<48x128xf32> to vector<48xf32>
    %3 = vector.shape_cast %2 : vector<48xf32> to vector<48x1xf32>
    %4 = arith.mulf %1, %1 : vector<48x128xf32>
    %cst_1 = arith.constant dense<0.000000e+00> : vector<48xf32>
    %5 = vector.multi_reduction <add>, %4, %cst_1 [1] : vector<48x128xf32> to vector<48xf32>
    %6 = vector.shape_cast %5 : vector<48xf32> to vector<48x1xf32>
    %cst_2 = arith.constant 3.200000e+01 : f32
    %7 = vector.broadcast %cst_2 : f32 to vector<48x1xf32>
    %8 = arith.divf %3, %7 : vector<48x1xf32>
    %cst_3 = arith.constant 3.200000e+01 : f32
    %9 = vector.broadcast %cst_3 : f32 to vector<48x1xf32>
    %10 = arith.divf %6, %9 : vector<48x1xf32>
    %11 = arith.mulf %8, %8 : vector<48x1xf32>
    %12 = arith.subf %10, %11 : vector<48x1xf32>
    %cst_4 = arith.constant 0.000000e+00 : f32
    %13 = vector.broadcast %cst_4 : f32 to vector<48x1xf32>
    %14 = arith.maximumf %12, %13 : vector<48x1xf32>
    %15 = vector.broadcast %8 : vector<48x1xf32> to vector<48x128xf32>
    %16 = arith.subf %1, %15 : vector<48x128xf32>
    %cst_5 = arith.constant 9.99999974E-6 : f32
    %17 = vector.broadcast %cst_5 : f32 to vector<48x1xf32>
    %18 = arith.addf %14, %17 : vector<48x1xf32>
    %19 = math.rsqrt %18 : vector<48x1xf32>
    %20 = vector.broadcast %19 : vector<48x1xf32> to vector<48x128xf32>
    %21 = arith.mulf %16, %20 : vector<48x128xf32>
    %c0_6 = arith.constant 0 : index
    %c0_7 = arith.constant 0 : index
    %22 = vector.load %arg4[%c0_6, %c0_7] : memref<1x128xf32, #tpu.memory_space<vmem>>, vector<1x128xf32>
    %23 = vector.broadcast %22 : vector<1x128xf32> to vector<48x128xf32>
    %24 = arith.mulf %21, %23 : vector<48x128xf32>
    %c0_8 = arith.constant 0 : index
    %c0_9 = arith.constant 0 : index
    %25 = vector.load %arg5[%c0_8, %c0_9] : memref<1x128xf32, #tpu.memory_space<vmem>>, vector<1x128xf32>
    %26 = vector.broadcast %25 : vector<1x128xf32> to vector<48x128xf32>
    %27 = arith.addf %24, %26 : vector<48x128xf32>
    %28 = arith.truncf %27 : vector<48x128xf32> to vector<48x128xbf16>
    %c0_10 = arith.constant 0 : index
    %c0_11 = arith.constant 0 : index
    %29 = vector.load %arg2[%c0_10, %c0_11] : memref<128x128xbf16, #tpu.memory_space<vmem>>, vector<128x128xbf16>
    %cst_12 = arith.constant dense<0.000000e+00> : vector<48x128xf32>
    %30 = tpu.matmul %28, %29, %cst_12 {dimension_numbers = #tpu.dot_dimension_numbers<[1], [0], [0], [1], [0, 0, 1, 1], [], []>} : vector<48x128xbf16>, vector<128x128xbf16>, vector<48x128xf32> -> vector<48x128xf32>
    %c0_13 = arith.constant 0 : index
    %c0_14 = arith.constant 0 : index
    %31 = vector.load %arg3[%c0_13, %c0_14] : memref<1x128xf32, #tpu.memory_space<vmem>>, vector<1x128xf32>
    %32 = vector.broadcast %31 : vector<1x128xf32> to vector<48x128xf32>
    %33 = arith.addf %30, %32 : vector<48x128xf32>
    %cst_15 = arith.constant 0.000000e+00 : f32
    %34 = vector.broadcast %cst_15 : f32 to vector<48x128xf32>
    %35 = arith.maximumf %33, %34 : vector<48x128xf32>
    %36 = arith.truncf %35 : vector<48x128xf32> to vector<48x128xbf16>
    %c0_16 = arith.constant 0 : index
    %c0_17 = arith.constant 0 : index
    %37 = vector.load %arg6[%c0_16, %c0_17] : memref<48x128xbf16, #tpu.memory_space<vmem>>, vector<48x128xbf16>
    tpu.vector_store %arg6[%c0_16, %c0_17], %36 {strides = array<i32>} : memref<48x128xbf16, #tpu.memory_space<vmem>>, vector<48x128xbf16>,
    return
  }
  func.func @transform_0(%arg0: i32) -> (i32, i32) {
    %c0_i32 = arith.constant 0 : i32
    %c0_i32_0 = arith.constant 0 : i32
    return %arg0, %c0_i32 : i32, i32
  }
  func.func @transform_1(%arg0: i32) -> (i32, i32) {
    %c0_i32 = arith.constant 0 : i32
    %c0_i32_0 = arith.constant 0 : i32
    %c0_i32_1 = arith.constant 0 : i32
    return %c0_i32, %c0_i32_0 : i32, i32
  }
  func.func @transform_2(%arg0: i32) -> (i32, i32) {
    %c0_i32 = arith.constant 0 : i32
    %c0_i32_0 = arith.constant 0 : i32
    %c0_i32_1 = arith.constant 0 : i32
    return %c0_i32, %c0_i32_0 : i32, i32
  }
  func.func @transform_3(%arg0: i32) -> (i32, i32) {
    %c0_i32 = arith.constant 0 : i32
    %c0_i32_0 = arith.constant 0 : i32
    %c0_i32_1 = arith.constant 0 : i32
    return %c0_i32, %c0_i32_0 : i32, i32
  }
  func.func @transform_4(%arg0: i32) -> (i32, i32) {
    %c0_i32 = arith.constant 0 : i32
    %c0_i32_0 = arith.constant 0 : i32
    %c0_i32_1 = arith.constant 0 : i32
    return %c0_i32, %c0_i32_0 : i32, i32
  }
  func.func @transform_5(%arg0: i32) -> (i32, i32) {
    %c0_i32 = arith.constant 0 : i32
    %c0_i32_0 = arith.constant 0 : i32
    return %arg0, %c0_i32 : i32, i32
  }
}

module attributes {stable_mosaic.version = 11 : i64} {
  func.func @kernel(%arg0: i32, %arg1: memref<48x128xbf16, #tpu.memory_space<vmem>>, %arg2: memref<128x128xbf16, #tpu.memory_space<vmem>>, %arg3: memref<1x128xf32, #tpu.memory_space<vmem>>, %arg4: memref<48x128xbf16, #tpu.memory_space<vmem>>, %arg5: memref<48x128xbf16, #tpu.memory_space<vmem>>) attributes {dimension_semantics = [#tpu.dimension_semantics<parallel>], iteration_bounds = array<i64: 1>, scalar_prefetch = 0 : i64, scratch_operands = 0 : i64, tpu.core_type = #tpu.core_type<tc>, window_params = [{transform_indices = @transform_0, window_bounds = array<i64: 48, 128>}, {pipeline_mode = #tpu.pipeline_mode<synchronous>, transform_indices = @transform_1, window_bounds = array<i64: 128, 128>}, {pipeline_mode = #tpu.pipeline_mode<synchronous>, transform_indices = @transform_2, window_bounds = array<i64: 1, 128>}, {transform_indices = @transform_3, window_bounds = array<i64: 48, 128>}, {transform_indices = @transform_4, window_bounds = array<i64: 48, 128>}]} {
    %c0 = arith.constant 0 : index
    %c0_0 = arith.constant 0 : index
    %0 = vector.load %arg1[%c0, %c0_0] : memref<48x128xbf16, #tpu.memory_space<vmem>>, vector<48x128xbf16>
    %c0_1 = arith.constant 0 : index
    %c0_2 = arith.constant 0 : index
    %1 = vector.load %arg2[%c0_1, %c0_2] : memref<128x128xbf16, #tpu.memory_space<vmem>>, vector<128x128xbf16>
    %cst = arith.constant dense<0.000000e+00> : vector<48x128xf32>
    %2 = tpu.matmul %0, %1, %cst {dimension_numbers = #tpu.dot_dimension_numbers<[1], [0], [0], [1], [0, 0, 1, 1], [], []>} : vector<48x128xbf16>, vector<128x128xbf16>, vector<48x128xf32> -> vector<48x128xf32>
    %c0_3 = arith.constant 0 : index
    %c0_4 = arith.constant 0 : index
    %3 = vector.load %arg3[%c0_3, %c0_4] : memref<1x128xf32, #tpu.memory_space<vmem>>, vector<1x128xf32>
    %4 = vector.broadcast %3 : vector<1x128xf32> to vector<48x128xf32>
    %5 = arith.addf %2, %4 : vector<48x128xf32>
    %c0_5 = arith.constant 0 : index
    %c0_6 = arith.constant 0 : index
    %6 = vector.load %arg4[%c0_5, %c0_6] : memref<48x128xbf16, #tpu.memory_space<vmem>>, vector<48x128xbf16>
    %7 = arith.extf %6 : vector<48x128xbf16> to vector<48x128xf32>
    %8 = arith.addf %5, %7 : vector<48x128xf32>
    %9 = arith.truncf %8 : vector<48x128xf32> to vector<48x128xbf16>
    %c0_7 = arith.constant 0 : index
    %c0_8 = arith.constant 0 : index
    %10 = vector.load %arg5[%c0_7, %c0_8] : memref<48x128xbf16, #tpu.memory_space<vmem>>, vector<48x128xbf16>
    tpu.vector_store %arg5[%c0_7, %c0_8], %9 {strides = array<i32>} : memref<48x128xbf16, #tpu.memory_space<vmem>>, vector<48x128xbf16>,
    return
  }
  func.func @transform_0(%arg0: i32) -> (i32, i32) {
    %c0_i32 = arith.constant 0 : i32
    %c0_i32_0 = arith.constant 0 : i32
    return %arg0, %c0_i32 : i32, i32
  }
  func.func @transform_1(%arg0: i32) -> (i32, i32) {
    %c0_i32 = arith.constant 0 : i32
    %c0_i32_0 = arith.constant 0 : i32
    %c0_i32_1 = arith.constant 0 : i32
    return %c0_i32, %c0_i32_0 : i32, i32
  }
  func.func @transform_2(%arg0: i32) -> (i32, i32) {
    %c0_i32 = arith.constant 0 : i32
    %c0_i32_0 = arith.constant 0 : i32
    %c0_i32_1 = arith.constant 0 : i32
    return %c0_i32, %c0_i32_0 : i32, i32
  }
  func.func @transform_3(%arg0: i32) -> (i32, i32) {
    %c0_i32 = arith.constant 0 : i32
    %c0_i32_0 = arith.constant 0 : i32
    return %arg0, %c0_i32 : i32, i32
  }
  func.func @transform_4(%arg0: i32) -> (i32, i32) {
    %c0_i32 = arith.constant 0 : i32
    %c0_i32_0 = arith.constant 0 : i32
    return %arg0, %c0_i32 : i32, i32
  }
}

module attributes {stable_mosaic.version = 11 : i64} {
  func.func @kernel(%arg0: i32, %arg1: memref<8x128xbf16, #tpu.memory_space<vmem>>, %arg2: memref<128x128xbf16, #tpu.memory_space<vmem>>, %arg3: memref<1x128xf32, #tpu.memory_space<vmem>>, %arg4: memref<1x128xf32, #tpu.memory_space<vmem>>, %arg5: memref<1x128xf32, #tpu.memory_space<vmem>>, %arg6: memref<8x128xf32, #tpu.memory_space<vmem>>) attributes {dimension_semantics = [#tpu.dimension_semantics<parallel>], iteration_bounds = array<i64: 1>, scalar_prefetch = 0 : i64, scratch_operands = 0 : i64, tpu.core_type = #tpu.core_type<tc>, window_params = [{transform_indices = @transform_0, window_bounds = array<i64: 8, 128>}, {pipeline_mode = #tpu.pipeline_mode<synchronous>, transform_indices = @transform_1, window_bounds = array<i64: 128, 128>}, {pipeline_mode = #tpu.pipeline_mode<synchronous>, transform_indices = @transform_2, window_bounds = array<i64: 1, 128>}, {pipeline_mode = #tpu.pipeline_mode<synchronous>, transform_indices = @transform_3, window_bounds = array<i64: 1, 128>}, {pipeline_mode = #tpu.pipeline_mode<synchronous>, transform_indices = @transform_4, window_bounds = array<i64: 1, 128>}, {transform_indices = @transform_5, window_bounds = array<i64: 8, 128>}]} {
    %c0 = arith.constant 0 : index
    %c0_0 = arith.constant 0 : index
    %0 = vector.load %arg1[%c0, %c0_0] : memref<8x128xbf16, #tpu.memory_space<vmem>>, vector<8x128xbf16>
    %1 = arith.extf %0 : vector<8x128xbf16> to vector<8x128xf32>
    %cst = arith.constant dense<0.000000e+00> : vector<8xf32>
    %2 = vector.multi_reduction <add>, %1, %cst [1] : vector<8x128xf32> to vector<8xf32>
    %3 = vector.shape_cast %2 : vector<8xf32> to vector<8x1xf32>
    %4 = arith.mulf %1, %1 : vector<8x128xf32>
    %cst_1 = arith.constant dense<0.000000e+00> : vector<8xf32>
    %5 = vector.multi_reduction <add>, %4, %cst_1 [1] : vector<8x128xf32> to vector<8xf32>
    %6 = vector.shape_cast %5 : vector<8xf32> to vector<8x1xf32>
    %cst_2 = arith.constant 3.200000e+01 : f32
    %7 = vector.broadcast %cst_2 : f32 to vector<8x1xf32>
    %8 = arith.divf %3, %7 : vector<8x1xf32>
    %cst_3 = arith.constant 3.200000e+01 : f32
    %9 = vector.broadcast %cst_3 : f32 to vector<8x1xf32>
    %10 = arith.divf %6, %9 : vector<8x1xf32>
    %11 = arith.mulf %8, %8 : vector<8x1xf32>
    %12 = arith.subf %10, %11 : vector<8x1xf32>
    %cst_4 = arith.constant 0.000000e+00 : f32
    %13 = vector.broadcast %cst_4 : f32 to vector<8x1xf32>
    %14 = arith.maximumf %12, %13 : vector<8x1xf32>
    %15 = vector.broadcast %8 : vector<8x1xf32> to vector<8x128xf32>
    %16 = arith.subf %1, %15 : vector<8x128xf32>
    %cst_5 = arith.constant 9.99999974E-6 : f32
    %17 = vector.broadcast %cst_5 : f32 to vector<8x1xf32>
    %18 = arith.addf %14, %17 : vector<8x1xf32>
    %19 = math.rsqrt %18 : vector<8x1xf32>
    %20 = vector.broadcast %19 : vector<8x1xf32> to vector<8x128xf32>
    %21 = arith.mulf %16, %20 : vector<8x128xf32>
    %c0_6 = arith.constant 0 : index
    %c0_7 = arith.constant 0 : index
    %22 = vector.load %arg4[%c0_6, %c0_7] : memref<1x128xf32, #tpu.memory_space<vmem>>, vector<1x128xf32>
    %23 = vector.broadcast %22 : vector<1x128xf32> to vector<8x128xf32>
    %24 = arith.mulf %21, %23 : vector<8x128xf32>
    %c0_8 = arith.constant 0 : index
    %c0_9 = arith.constant 0 : index
    %25 = vector.load %arg5[%c0_8, %c0_9] : memref<1x128xf32, #tpu.memory_space<vmem>>, vector<1x128xf32>
    %26 = vector.broadcast %25 : vector<1x128xf32> to vector<8x128xf32>
    %27 = arith.addf %24, %26 : vector<8x128xf32>
    %28 = arith.truncf %27 : vector<8x128xf32> to vector<8x128xbf16>
    %c0_10 = arith.constant 0 : index
    %c0_11 = arith.constant 0 : index
    %29 = vector.load %arg2[%c0_10, %c0_11] : memref<128x128xbf16, #tpu.memory_space<vmem>>, vector<128x128xbf16>
    %cst_12 = arith.constant dense<0.000000e+00> : vector<8x128xf32>
    %30 = tpu.matmul %28, %29, %cst_12 {dimension_numbers = #tpu.dot_dimension_numbers<[1], [0], [0], [1], [0, 0, 1, 1], [], []>} : vector<8x128xbf16>, vector<128x128xbf16>, vector<8x128xf32> -> vector<8x128xf32>
    %c0_13 = arith.constant 0 : index
    %c0_14 = arith.constant 0 : index
    %31 = vector.load %arg3[%c0_13, %c0_14] : memref<1x128xf32, #tpu.memory_space<vmem>>, vector<1x128xf32>
    %32 = vector.broadcast %31 : vector<1x128xf32> to vector<8x128xf32>
    %33 = arith.addf %30, %32 : vector<8x128xf32>
    %c0_15 = arith.constant 0 : index
    %c0_16 = arith.constant 0 : index
    %34 = vector.load %arg6[%c0_15, %c0_16] : memref<8x128xf32, #tpu.memory_space<vmem>>, vector<8x128xf32>
    tpu.vector_store %arg6[%c0_15, %c0_16], %33 {strides = array<i32>} : memref<8x128xf32, #tpu.memory_space<vmem>>, vector<8x128xf32>,
    return
  }
  func.func @transform_0(%arg0: i32) -> (i32, i32) {
    %c0_i32 = arith.constant 0 : i32
    %c0_i32_0 = arith.constant 0 : i32
    return %arg0, %c0_i32 : i32, i32
  }
  func.func @transform_1(%arg0: i32) -> (i32, i32) {
    %c0_i32 = arith.constant 0 : i32
    %c0_i32_0 = arith.constant 0 : i32
    %c0_i32_1 = arith.constant 0 : i32
    return %c0_i32, %c0_i32_0 : i32, i32
  }
  func.func @transform_2(%arg0: i32) -> (i32, i32) {
    %c0_i32 = arith.constant 0 : i32
    %c0_i32_0 = arith.constant 0 : i32
    %c0_i32_1 = arith.constant 0 : i32
    return %c0_i32, %c0_i32_0 : i32, i32
  }
  func.func @transform_3(%arg0: i32) -> (i32, i32) {
    %c0_i32 = arith.constant 0 : i32
    %c0_i32_0 = arith.constant 0 : i32
    %c0_i32_1 = arith.constant 0 : i32
    return %c0_i32, %c0_i32_0 : i32, i32
  }
  func.func @transform_4(%arg0: i32) -> (i32, i32) {
    %c0_i32 = arith.constant 0 : i32
    %c0_i32_0 = arith.constant 0 : i32
    %c0_i32_1 = arith.constant 0 : i32
    return %c0_i32, %c0_i32_0 : i32, i32
  }
  func.func @transform_5(%arg0: i32) -> (i32, i32) {
    %c0_i32 = arith.constant 0 : i32
    %c0_i32_0 = arith.constant 0 : i32
    return %arg0, %c0_i32 : i32, i32
  }
}

</mosaic_0001>

<bundles_post_ra>
// kernel: tile.37
= control target key start
LH: loop header
LB: loop body
LE: loop exit
PB: predicated region body
PF: predicated region fallthrough
CT: control target
= control target key end

     0   :  { %s28_s0 = inlined_call_operand.vmem [shape: f32[8], index: 0, kind: input, shape index: {}]   ;;  %s29_s1 = inlined_call_operand.vmem [shape: f32[9,8], index: 1, kind: output, shape index: {}]  }
   0x1   :  { %v4_v0 = vld [vmem:[%s28_s0] ss:$0 sm:$0xff] }
   0x2   :  { %5 = vst [vmem:[%s29_s1] sm:$0xff] %v4_v0  ;;  %8 = vst [vmem:[%s29_s1 + $0x8] sm:$0xff] %v4_v0 }

// kernel: tile.57
= control target key start
LH: loop header
LB: loop body
LE: loop exit
PB: predicated region body
PF: predicated region fallthrough
CT: control target
= control target key end

     0   :  { %s28_s0 = inlined_call_operand.vmem [shape: f32[16], index: 0, kind: input, shape index: {}]   ;;  %s29_s1 = inlined_call_operand.vmem [shape: f32[9,16], index: 1, kind: output, shape index: {}]  }
   0x1   :  { %v4_v0 = vld [vmem:[%s28_s0] ss:$0 sm:$0xff] }
   0x2   :  { %5 = vst [vmem:[%s29_s1] sm:$0xff] %v4_v0  ;;  %8 = vst [vmem:[%s29_s1 + $0x8] sm:$0xff] %v4_v0 }

// kernel: tile.39
= control target key start
LH: loop header
LB: loop body
LE: loop exit
PB: predicated region body
PF: predicated region fallthrough
CT: control target
= control target key end

     0   :  { %s75_s10 = smov 64   ;;  %s76_s11 = smov 48   ;;  %vm3_vm0 = vcmask 64512   ;;  %vm9_vm1 = vcmask 589312   ;;  %vm15_vm2 = vcmask 523712   ;;  %vm21_vm3 = vcmask 458112   ;;  %s123_s0 = inlined_call_operand.vmem [shape: f32[9,8], index: 0, kind: input, shape index: {}]   ;;  %s124_s1 = inlined_call_operand.vmem [shape: f32[1,72], index: 1, kind: output, shape index: {}]  }
   0x1   :  { %v59_v0 = vld [vmem:[%s123_s0 + $0x8] sm:$0x1]   ;;  %v61_v1 = vld [vmem:[%s123_s0 + $0x6] sm:$0x1]   ;;  %v60_v2 = vld [vmem:[%s123_s0 + $0x7] sm:$0x1]  }
   0x2   :  { %7 = vrot.lane.b32.xlu0 %v59_v0, %s75_s10  ;;  %19 = vrot.lane.b32.xlu1 %v61_v1, %s76_s11  ;;  %v62_v3 = vld [vmem:[%s123_s0 + $0x5] sm:$0x1]   ;;  %v2_v4 = vld [vmem:[%s123_s0] sm:$0x1]   ;;  %s77_s18 = smov 56   ;;  %s78_s19 = smov 40  }
   0x3   :  { %4 = vst.msk [vmem:[#allocation0] sm:$0x1] %vm3_vm0, %v2_v4   ;;  %v63_v5 = vld [vmem:[%s123_s0 + $0x4] sm:$0x1]   ;;  %v64_v6 = vld [vmem:[%s123_s0 + $0x3] sm:$0x1]  }
   0x4   :  { %s79_s24 = smov 32   ;;  %s80_s25 = smov 24   ;;  %v65_v7 = vld [vmem:[%s123_s0 + $0x2] sm:$0x1]   ;;  %v66_v8 = vld [vmem:[%s123_s0 + $0x1] sm:$0x1]  }
   0x5   :  { %s81_s0 = smov 16   ;;  %s82_s30 = smov 8   ;;  %vm27_vm4 = vcmask 392512   ;;  %vm33_vm5 = vcmask 326912   ;;  %vm39_vm6 = vcmask 261312   ;;  %vm45_vm7 = vcmask 195712  }
   0x6   :  { %13 = vrot.lane.b32.xlu0 %v60_v2, %s77_s18  ;;  %25 = vrot.lane.b32.xlu1 %v62_v3, %s78_s19  ;;  %vm51_vm8 = vcmask 130112  }
   0xa   :  { %31 = vrot.lane.b32.xlu0 %v63_v5, %s79_s24  ;;  %37 = vrot.lane.b32.xlu1 %v64_v6, %s80_s25 }
   0xe   :  { %43 = vrot.lane.b32.xlu0 %v65_v7, %s81_s0  ;;  %49 = vrot.lane.b32.xlu1 %v66_v8, %s82_s30 }
  0x74   :  { %v8_v9 = vpop.permute.xlu0 %7   ;;  %v20_v10 = vpop.permute.xlu1 %19  }
  0x75   :  { %10 = vst.msk [vmem:[#allocation0] sm:$0x1] %vm9_vm1, %v8_v9  }
  0x78   :  { %v14_v11 = vpop.permute.xlu0 %13   ;;  %v26_v12 = vpop.permute.xlu1 %25  }
  0x79   :  { %16 = vst.msk [vmem:[#allocation0] sm:$0x1] %vm15_vm2, %v14_v11  }
  0x7a   :  { %22 = vst.msk [vmem:[#allocation0] sm:$0x1] %vm21_vm3, %v20_v10  }
  0x7b   :  { %28 = vst.msk [vmem:[#allocation0] sm:$0x1] %vm27_vm4, %v26_v12  }
  0x7c   :  { %v32_v13 = vpop.permute.xlu0 %31   ;;  %v38_v14 = vpop.permute.xlu1 %37  }
  0x7d   :  { %34 = vst.msk [vmem:[#allocation0] sm:$0x1] %vm33_vm5, %v32_v13  }
  0x7e   :  { %40 = vst.msk [vmem:[#allocation0] sm:$0x1] %vm39_vm6, %v38_v14  }
  0x80   :  { %v44_v15 = vpop.permute.xlu0 %43   ;;  %v50_v16 = vpop.permute.xlu1 %49  }
  0x81   :  { %46 = vst.msk [vmem:[#allocation0] sm:$0x1] %vm45_vm7, %v44_v15  }
  0x82   :  { %52 = vst.msk [vmem:[#allocation0] sm:$0x1] %vm51_vm8, %v50_v16  }
  0x89   :  { %v56_v17 = vld [vmem:[#allocation0] sm:$0x1] }
  0x8a   :  { %58 = vst [vmem:[%s124_s1] sm:$0x1] %v56_v17 }

// kernel: tile.59
= control target key start
LH: loop header
LB: loop body
LE: loop exit
PB: predicated region body
PF: predicated region fallthrough
CT: control target
= control target key end

     0   :  { %s74_s10 = smov 112   ;;  %s75_s11 = smov 80   ;;  %vm4_vm0 = vcmask 130048   ;;  %vm10_vm1 = vcmask 1048448   ;;  %vm16_vm2 = vcmask 917248   ;;  %vm22_vm3 = vcmask 786048   ;;  %s121_s0 = inlined_call_operand.vmem [shape: f32[9,16], index: 0, kind: input, shape index: {}]   ;;  %s122_s1 = inlined_call_operand.vmem [shape: f32[1,144], index: 1, kind: output, shape index: {}]  }
   0x1   :  { %v59_v0 = vld [vmem:[%s121_s0 + $0x7] sm:$0x1]   ;;  %v61_v1 = vld [vmem:[%s121_s0 + $0x5] sm:$0x1]   ;;  %v60_v2 = vld [vmem:[%s121_s0 + $0x6] sm:$0x1]  }
   0x2   :  { %8 = vrot.lane.b32.xlu0 %v59_v0, %s74_s10  ;;  %20 = vrot.lane.b32.xlu1 %v61_v1, %s75_s11  ;;  %v62_v3 = vld [vmem:[%s121_s0 + $0x4] sm:$0x1]   ;;  %s2_s16 = smov 3  ;;  %s76_s19 = smov 96   ;;  %v63_v5 = vld [vmem:[%s121_s0 + $0x3] sm:$0x1]  }
   0x3   :  { %v3_v4 = vld [vmem:[%s121_s0] ss:$8 sm:%s2_s16]   ;;  %s77_s20 = smov 64   ;;  %v64_v6 = vld [vmem:[%s121_s0 + $0x2] sm:$0x1]   ;;  %s78_s25 = smov 48  }
   0x4   :  { %5 = vst.msk [vmem:[#allocation0] ss:$8 sm:$0x3] %vm4_vm0, %v3_v4   ;;  %s79_s26 = smov 32   ;;  %v65_v7 = vld [vmem:[%s121_s0 + $0x1] sm:$0x1]  }
   0x5   :  { %s80_s0 = smov 16   ;;  %vm28_vm4 = vcmask 654848   ;;  %vm34_vm5 = vcmask 523648   ;;  %vm40_vm6 = vcmask 392448   ;;  %vm46_vm7 = vcmask 261248  }
   0x6   :  { %14 = vrot.lane.b32.xlu0 %v60_v2, %s76_s19  ;;  %26 = vrot.lane.b32.xlu1 %v62_v3, %s77_s20 }
   0xa   :  { %32 = vrot.lane.b32.xlu0 %v63_v5, %s78_s25  ;;  %38 = vrot.lane.b32.xlu1 %v64_v6, %s79_s26 }
   0xb   :  { %v55_v8 = vld [vmem:[#allocation0 + $0x8] sm:$0x1] }
   0xc   :  { %66 = vst [vmem:[%s122_s1 + $0x1] sm:$0x1] %v55_v8 }
   0xe   :  { %44 = vrot.lane.b32.xlu0 %v65_v7, %s80_s0 }
  0x74   :  { %v9_v9 = vpop.permute.xlu0 %8   ;;  %v21_v10 = vpop.permute.xlu1 %20  }
  0x75   :  { %11 = vst.msk [vmem:[#allocation0] sm:$0x1] %vm10_vm1, %v9_v9  }
  0x78   :  { %v15_v11 = vpop.permute.xlu0 %14   ;;  %v27_v12 = vpop.permute.xlu1 %26  }
  0x79   :  { %17 = vst.msk [vmem:[#allocation0] sm:$0x1] %vm16_vm2, %v15_v11  }
  0x7a   :  { %23 = vst.msk [vmem:[#allocation0] sm:$0x1] %vm22_vm3, %v21_v10  }
  0x7b   :  { %29 = vst.msk [vmem:[#allocation0] sm:$0x1] %vm28_vm4, %v27_v12  }
  0x7c   :  { %v33_v13 = vpop.permute.xlu0 %32   ;;  %v39_v14 = vpop.permute.xlu1 %38  }
  0x7d   :  { %35 = vst.msk [vmem:[#allocation0] sm:$0x1] %vm34_vm5, %v33_v13  }
  0x7e   :  { %41 = vst.msk [vmem:[#allocation0] sm:$0x1] %vm40_vm6, %v39_v14  }
  0x80   :  { %v45_v15 = vpop.permute.xlu0 %44  }
  0x81   :  { %47 = vst.msk [vmem:[#allocation0] sm:$0x1] %vm46_vm7, %v45_v15  }
  0x88   :  { %v51_v16 = vld [vmem:[#allocation0] sm:$0x1] }
  0x89   :  { %53 = vst [vmem:[%s122_s1] sm:$0x1] %v51_v16 }

// kernel: vit_forward.16
= control target key start
LH: loop header
LB: loop body
LE: loop exit
PB: predicated region body
PF: predicated region fallthrough
CT: control target
= control target key end

     0   :  { %vm232_vm0 = vcmask 1044480   ;;  %vm233_vm1 = vcmask 1045504   ;;  %v1785_v1 = vmov 65535   ;;  %vm135_vm2 = vcmask 220160   ;;  %s2401_s1 = inlined_call_operand.vmem [shape: bf16[27,128], index: 1, kind: input, shape index: {}]   ;;  %s2402_s0 = inlined_call_operand.vmem [shape: f32[512,27], index: 0, kind: input, shape index: {}]   ;;  %s2403_s2 = inlined_call_operand.vmem [shape: f32[1,128], index: 2, kind: input, shape index: {}]   ;;  %s2404_s3 = inlined_call_operand.vmem [shape: bf16[512,128], index: 3, kind: output, shape index: {0}]   ;;  %s2405_s4 = inlined_call_operand.vmem [shape: f32[1,8,128], index: 4, kind: output, shape index: {1}]  }
   0x1   :  { %v1783_v0 = vld [vmem:[%s2401_s1] sm:$0xff]   ;;  %v234_v2 = vsel %vm232_vm0, 4294967295, %v1785_v1  ;;  %v1784_v3 = vld [vmem:[%s2401_s1 + $0x8] sm:$0x3f]   ;;  %v19_v9 = vld [vmem:[%s2402_s0 + $0x10] sm:$0xff] }
   0x2   :  { %1710 = vmatprep.subr.bf16.mxu0 %v1783_v0  ;;  %v235_v4 = vsel %vm233_vm1, %v234_v2, 0  ;;  %v17_v5 = vld [vmem:[%s2402_s0] sm:$0xff]  ;;  %v18_v6 = vld [vmem:[%s2402_s0 + $0x8] sm:$0xff]  ;;  %1778 = vmatprep.subr.bf16.mxu1 %v1783_v0  ;;  %v20_v10 = vld [vmem:[%s2402_s0 + $0x18] sm:$0xff] }
   0x3   :  { %1711 = vmatpush3.bf16.msra.mxu0 %v1783_v0  ;;  %v237_v7 = vand.u32 %v1784_v3, %v235_v4  ;;  %v81_v8 = vpack.c.bf16 %v18_v6, %v17_v5  ;;  %1780 = vmatpush3.bf16.msra.mxu1 %v1783_v0  ;;  %v21_v11 = vld [vmem:[%s2402_s0 + $0x20] sm:$0xff]  ;;  %v22_v12 = vld [vmem:[%s2402_s0 + $0x28] sm:$0xff]  ;;  %v82_v13 = vpack.c.bf16 %v20_v10, %v19_v9  ;;  %v23_v15 = vld [vmem:[%s2402_s0 + $0x30] sm:$0xff] }
   0x4   :  { %v83_v14 = vpack.c.bf16 %v22_v12, %v21_v11  ;;  %v24_v16 = vld [vmem:[%s2402_s0 + $0x38] sm:$0xff]  ;;  %v25_v17 = vld [vmem:[%s2402_s0 + $0x40] sm:$0xff]  ;;  %v26_v18 = vld [vmem:[%s2402_s0 + $0x48] sm:$0xff] }
   0x5   :  { %1712 = vmatprep.subr.bf16.mxu0 %v237_v7  ;;  %1714 = vmatprep.mubr.msk.bf16.mxu0 %vm135_vm2, %v81_v8  ;;  %v49_v19 = vld [vmem:[%s2402_s0 + $0x100] sm:$0xff]  ;;  %v50_v20 = vld [vmem:[%s2402_s0 + $0x108] sm:$0xff]  ;;  %v51_v21 = vld [vmem:[%s2402_s0 + $0x110] sm:$0xff]  ;;  %v84_v23 = vpack.c.bf16 %v24_v16, %v23_v15  ;;  %v85_v28 = vpack.c.bf16 %v26_v18, %v25_v17 }
   0x6   :  { %1779 = vmatprep.subr.bf16.mxu1 %v237_v7  ;;  %v52_v22 = vld [vmem:[%s2402_s0 + $0x118] sm:$0xff]  ;;  %v97_v24 = vpack.c.bf16 %v50_v20, %v49_v19  ;;  %v53_v26 = vld [vmem:[%s2402_s0 + $0x120] sm:$0xff]  ;;  %v54_v27 = vld [vmem:[%s2402_s0 + $0x128] sm:$0xff] }
   0x7   :  { %1713 = vmatpush3.bf16.msra.mxu0 %v237_v7  ;;  %1781 = vmatpush3.bf16.msra.mxu1 %v237_v7  ;;  %v98_v25 = vpack.c.bf16 %v52_v22, %v51_v21  ;;  %v99_v29 = vpack.c.bf16 %v54_v27, %v53_v26  ;;  %v27_v30 = vld [vmem:[%s2402_s0 + $0x50] sm:$0xff]  ;;  %v56_v32 = vld [vmem:[%s2402_s0 + $0x138] sm:$0xff]  ;;  %v57_v34 = vld [vmem:[%s2402_s0 + $0x140] sm:$0xff] }
   0x8   :  { %1746 = vmatprep.mubr.msk.bf16.mxu1 %vm135_vm2, %v97_v24  ;;  %v55_v31 = vld [vmem:[%s2402_s0 + $0x130] sm:$0xff]  ;;  %v28_v33 = vld [vmem:[%s2402_s0 + $0x58] sm:$0xff]  ;;  %v58_v35 = vld [vmem:[%s2402_s0 + $0x148] sm:$0xff] }
   0x9   :  { %v29_v36 = vld [vmem:[%s2402_s0 + $0x60] sm:$0xff]  ;;  %v30_v37 = vld [vmem:[%s2402_s0 + $0x68] sm:$0xff]  ;;  %v100_v38 = vpack.c.bf16 %v56_v32, %v55_v31  ;;  %v86_v39 = vpack.c.bf16 %v28_v33, %v27_v30  ;;  %v101_v40 = vpack.c.bf16 %v58_v35, %v57_v34  ;;  %v31_v42 = vld [vmem:[%s2402_s0 + $0x70] sm:$0xff] }
   0xa   :  { %1715 = vmatmul.mubr.msk.bf16.vlgmr.msra.gmra.mrb[0].mxu0 %vm135_vm2, %v82_v13  ;;  %1747 = vmatmul.mubr.msk.bf16.vlgmr.msra.gmra.mrb[0].mxu1 %vm135_vm2, %v98_v25  ;;  %v87_v41 = vpack.c.bf16 %v30_v37, %v29_v36  ;;  %v59_v43 = vld [vmem:[%s2402_s0 + $0x150] sm:$0xff]  ;;  %v60_v44 = vld [vmem:[%s2402_s0 + $0x158] sm:$0xff]  ;;  %v61_v46 = vld [vmem:[%s2402_s0 + $0x160] sm:$0xff] }
   0xb   :  { %1718 = vmatprep.mubr.msk.bf16.mxu0 %vm135_vm2, %v83_v14  ;;  %1750 = vmatprep.mubr.msk.bf16.mxu1 %vm135_vm2, %v99_v29  ;;  %v32_v45 = vld [vmem:[%s2402_s0 + $0x78] sm:$0xff]  ;;  %v62_v47 = vld [vmem:[%s2402_s0 + $0x168] sm:$0xff]  ;;  %v33_v48 = vld [vmem:[%s2402_s0 + $0x80] sm:$0xff]  ;;  %v102_v50 = vpack.c.bf16 %v60_v44, %v59_v43 }
   0xc   :  { %v34_v49 = vld [vmem:[%s2402_s0 + $0x88] sm:$0xff]  ;;  %v88_v51 = vpack.c.bf16 %v32_v45, %v31_v42  ;;  %v103_v52 = vpack.c.bf16 %v62_v47, %v61_v46  ;;  %v35_v54 = vld [vmem:[%s2402_s0 + $0x90] sm:$0xff]  ;;  %v64_v56 = vld [vmem:[%s2402_s0 + $0x178] sm:$0xff] }
   0xd   :  { %v89_v53 = vpack.c.bf16 %v34_v49, %v33_v48  ;;  %v63_v55 = vld [vmem:[%s2402_s0 + $0x170] sm:$0xff]  ;;  %v36_v57 = vld [vmem:[%s2402_s0 + $0x98] sm:$0xff]  ;;  %v65_v58 = vld [vmem:[%s2402_s0 + $0x180] sm:$0xff] }
   0xe   :  { %v66_v59 = vld [vmem:[%s2402_s0 + $0x188] sm:$0xff]  ;;  %v37_v60 = vld [vmem:[%s2402_s0 + $0xa0] sm:$0xff]  ;;  %v104_v62 = vpack.c.bf16 %v64_v56, %v63_v55  ;;  %v90_v63 = vpack.c.bf16 %v36_v57, %v35_v54  ;;  %v39_v2 = vld [vmem:[%s2402_s0 + $0xb0] sm:$0xff] }
   0xf   :  { %v38_v61 = vld [vmem:[%s2402_s0 + $0xa8] sm:$0xff]  ;;  %v105_v0 = vpack.c.bf16 %v66_v59, %v65_v58  ;;  %v67_v3 = vld [vmem:[%s2402_s0 + $0x190] sm:$0xff]  ;;  %v68_v4 = vld [vmem:[%s2402_s0 + $0x198] sm:$0xff] }
  0x10   :  { %v91_v1 = vpack.c.bf16 %v38_v61, %v37_v60  ;;  %v40_v5 = vld [vmem:[%s2402_s0 + $0xb8] sm:$0xff]  ;;  %v69_v6 = vld [vmem:[%s2402_s0 + $0x1a0] sm:$0xff]  ;;  %v70_v7 = vld [vmem:[%s2402_s0 + $0x1a8] sm:$0xff]  ;;  %v106_v10 = vpack.c.bf16 %v68_v4, %v67_v3 }
  0x11   :  { %v41_v8 = vld [vmem:[%s2402_s0 + $0xc0] sm:$0xff]  ;;  %v42_v9 = vld [vmem:[%s2402_s0 + $0xc8] sm:$0xff]  ;;  %v92_v11 = vpack.c.bf16 %v40_v5, %v39_v2  ;;  %v107_v12 = vpack.c.bf16 %v70_v7, %v69_v6  ;;  %v43_v14 = vld [vmem:[%s2402_s0 + $0xd0] sm:$0xff] }
  0x12   :  { %1719 = vmatmul.mubr.msk.bf16.gmra.mrb[4].mxu0 %vm135_vm2, %v84_v23  ;;  %1751 = vmatmul.mubr.msk.bf16.gmra.mrb[4].mxu1 %vm135_vm2, %v100_v38  ;;  %v93_v13 = vpack.c.bf16 %v42_v9, %v41_v8  ;;  %v71_v15 = vld [vmem:[%s2402_s0 + $0x1b0] sm:$0xff]  ;;  %v72_v16 = vld [vmem:[%s2402_s0 + $0x1b8] sm:$0xff]  ;;  %v73_v18 = vld [vmem:[%s2402_s0 + $0x1c0] sm:$0xff] }
  0x13   :  { %1722 = vmatprep.mubr.msk.bf16.mxu0 %vm135_vm2, %v85_v28  ;;  %1754 = vmatprep.mubr.msk.bf16.mxu1 %vm135_vm2, %v101_v40  ;;  %v44_v17 = vld [vmem:[%s2402_s0 + $0xd8] sm:$0xff]  ;;  %v74_v19 = vld [vmem:[%s2402_s0 + $0x1c8] sm:$0xff]  ;;  %v45_v20 = vld [vmem:[%s2402_s0 + $0xe0] sm:$0xff]  ;;  %v108_v22 = vpack.c.bf16 %v72_v16, %v71_v15 }
  0x14   :  { %v46_v21 = vld [vmem:[%s2402_s0 + $0xe8] sm:$0xff]  ;;  %v94_v23 = vpack.c.bf16 %v44_v17, %v43_v14  ;;  %v109_v24 = vpack.c.bf16 %v74_v19, %v73_v18  ;;  %v47_v26 = vld [vmem:[%s2402_s0 + $0xf0] sm:$0xff]  ;;  %v76_v28 = vld [vmem:[%s2402_s0 + $0x1d8] sm:$0xff] }
  0x15   :  { %v95_v25 = vpack.c.bf16 %v46_v21, %v45_v20  ;;  %v75_v27 = vld [vmem:[%s2402_s0 + $0x1d0] sm:$0xff]  ;;  %v48_v29 = vld [vmem:[%s2402_s0 + $0xf8] sm:$0xff]  ;;  %v77_v30 = vld [vmem:[%s2402_s0 + $0x1e0] sm:$0xff] }
  0x16   :  { %v78_v31 = vld [vmem:[%s2402_s0 + $0x1e8] sm:$0xff]  ;;  %v110_v32 = vpack.c.bf16 %v76_v28, %v75_v27  ;;  %v96_v33 = vpack.c.bf16 %v48_v29, %v47_v26  ;;  %v79_v35 = vld [vmem:[%s2402_s0 + $0x1f0] sm:$0xff]  ;;  %v80_v36 = vld [vmem:[%s2402_s0 + $0x1f8] sm:$0xff] }
  0x17   :  { %v111_v34 = vpack.c.bf16 %v78_v31, %v77_v30  ;;  %v112_v37 = vpack.c.bf16 %v80_v36, %v79_v35  ;;  %v2044_v38 = vld [vmem:[%s2403_s2] ss:$0 sm:$0xff] }
  0x1a   :  { %1723 = vmatmul.mubr.msk.bf16.gmra.mrb[8].mxu0 %vm135_vm2, %v86_v39  ;;  %1755 = vmatmul.mubr.msk.bf16.gmra.mrb[8].mxu1 %vm135_vm2, %v102_v50 }
  0x1b   :  { %1726 = vmatprep.mubr.msk.bf16.mxu0 %vm135_vm2, %v87_v41  ;;  %1758 = vmatprep.mubr.msk.bf16.mxu1 %vm135_vm2, %v103_v52 }
  0x22   :  { %1727 = vmatmul.mubr.msk.bf16.gmra.mrb[12].mxu0 %vm135_vm2, %v88_v51  ;;  %1759 = vmatmul.mubr.msk.bf16.gmra.mrb[12].mxu1 %vm135_vm2, %v104_v62 }
  0x23   :  { %1730 = vmatprep.mubr.msk.bf16.mxu0 %vm135_vm2, %v89_v53  ;;  %1762 = vmatprep.mubr.msk.bf16.mxu1 %vm135_vm2, %v105_v0 }
  0x2a   :  { %1731 = vmatmul.mubr.msk.bf16.gmra.mrb[16].mxu0 %vm135_vm2, %v90_v63  ;;  %1763 = vmatmul.mubr.msk.bf16.gmra.mrb[16].mxu1 %vm135_vm2, %v106_v10 }
  0x2b   :  { %1734 = vmatprep.mubr.msk.bf16.mxu0 %vm135_vm2, %v91_v1  ;;  %1766 = vmatprep.mubr.msk.bf16.mxu1 %vm135_vm2, %v107_v12 }
  0x32   :  { %1735 = vmatmul.mubr.msk.bf16.gmra.mrb[20].mxu0 %vm135_vm2, %v92_v11  ;;  %1767 = vmatmul.mubr.msk.bf16.gmra.mrb[20].mxu1 %vm135_vm2, %v108_v22 }
  0x33   :  { %1738 = vmatprep.mubr.msk.bf16.mxu0 %vm135_vm2, %v93_v13  ;;  %1770 = vmatprep.mubr.msk.bf16.mxu1 %vm135_vm2, %v109_v24 }
  0x3a   :  { %1739 = vmatmul.mubr.msk.bf16.gmra.mrb[24].mxu0 %vm135_vm2, %v94_v23  ;;  %1771 = vmatmul.mubr.msk.bf16.gmra.mrb[24].mxu1 %vm135_vm2, %v110_v32 }
  0x3b   :  { %1742 = vmatprep.mubr.msk.bf16.mxu0 %vm135_vm2, %v95_v25  ;;  %1774 = vmatprep.mubr.msk.bf16.mxu1 %vm135_vm2, %v111_v34 }
  0x42   :  { %1743 = vmatmul.mubr.msk.bf16.gmra.mrb[28].mxu0 %vm135_vm2, %v96_v33  ;;  %1775 = vmatmul.mubr.msk.bf16.gmra.mrb[28].mxu1 %vm135_vm2, %v112_v37 }
  0xdd   :  { %v1716_v39 = vpop.f32.mrb[0].mxu0  ;;  %v1748_v52 = vpop.f32.mrb[0].mxu1 }
  0xde   :  { %v273_v40 = vpop.f32.mrb[1].mxu0  ;;  %v282_v43 = vadd.f32 %v1716_v39, %v2044_v38  ;;  %v401_v57 = vpop.f32.mrb[1].mxu1  ;;  %v2057_v59 = vadd.f32 %v1748_v52, %v2044_v38 }
  0xdf   :  { %v274_v41 = vadd.f32 %v2044_v38, %v273_v40  ;;  %v1717_v42 = vpop.f32.mrb[2].mxu0  ;;  %v1749_v60 = vpop.f32.mrb[2].mxu1  ;;  %v2067_v12 = vadd.f32 %v2044_v38, %v401_v57 }
  0xe0   :  { %v285_v44 = vadd.f32 %v1717_v42, %v2044_v38  ;;  %v276_v45 = vpop.f32.mrb[3].mxu0  ;;  %v1178_v53 = vmul.f32 %v282_v43, %v282_v43  ;;  %v404_v2 = vpop.f32.mrb[3].mxu1  ;;  %v2063_v6 = vadd.f32 %v1749_v60, %v2044_v38 }
  0xe1   :  { %v277_v46 = vadd.f32 %v2044_v38, %v276_v45  ;;  %v1176_v48 = vmul.f32 %v274_v41, %v274_v41  ;;  %v2078_v18 = vadd.f32 %v2044_v38, %v404_v2 }
  0xe2   :  { %v1493_v47 = vpack.c.bf16 %v285_v44, %v282_v43  ;;  %v1179_v61 = vmul.f32 %v285_v44, %v285_v44  ;;  %v1573_v13 = vpack.c.bf16 %v2063_v6, %v2057_v59 }
  0xe3   :  { %v1488_v49 = vpack.c.bf16 %v277_v46, %v274_v41  ;;  %v1107_v50 = vadd.f32 %v277_v46, %v274_v41  ;;  %v1177_v51 = vmul.f32 %v277_v46, %v277_v46  ;;  %v1568_v26 = vpack.c.bf16 %v2078_v18, %v2067_v12 }
  0xe4   :  { %1645 = vst [vmem:[%s2404_s3 + $0x8] sm:$0xff] %v1493_v47   ;;  %1661 = vst [vmem:[%s2404_s3 + $0x88] sm:$0xff] %v1573_v13  }
  0xe5   :  { %1489 = vst [vmem:[%s2404_s3] sm:$0xff] %v1488_v49   ;;  %v1108_v54 = vadd.f32 %v1107_v50, %v282_v43  ;;  %v1240_v55 = vadd.f32 %v1177_v51, %v1176_v48  ;;  %v1720_v56 = vpop.f32.mrb[4].mxu0  ;;  %v1752_v19 = vpop.f32.mrb[4].mxu1  ;;  %1660 = vst [vmem:[%s2404_s3 + $0x80] sm:$0xff] %v1568_v26  }
  0xe6   :  { %v289_v58 = vpop.f32.mrb[5].mxu0  ;;  %v298_v3 = vadd.f32 %v1720_v56, %v2044_v38  ;;  %v417_v24 = vpop.f32.mrb[5].mxu1  ;;  %v2086_v27 = vadd.f32 %v1752_v19, %v2044_v38 }
  0xe7   :  { %v1241_v62 = vadd.f32 %v1240_v55, %v1178_v53  ;;  %v290_v63 = vadd.f32 %v2044_v38, %v289_v58  ;;  %v1109_v0 = vadd.f32 %v1108_v54, %v285_v44  ;;  %v1721_v1 = vpop.f32.mrb[6].mxu0  ;;  %v1753_v28 = vpop.f32.mrb[6].mxu1  ;;  %v2099_v45 = vadd.f32 %v2044_v38, %v417_v24 }
  0xe8   :  { %v301_v4 = vadd.f32 %v1721_v1, %v2044_v38  ;;  %v292_v5 = vpop.f32.mrb[7].mxu0  ;;  %v1182_v20 = vmul.f32 %v298_v3, %v298_v3  ;;  %v420_v34 = vpop.f32.mrb[7].mxu1  ;;  %v2095_v39 = vadd.f32 %v1753_v28, %v2044_v38 }
  0xe9   :  { %v1110_v7 = vadd.f32 %v1109_v0, %v290_v63  ;;  %v1180_v8 = vmul.f32 %v290_v63, %v290_v63  ;;  %v1242_v9 = vadd.f32 %v1241_v62, %v1179_v61  ;;  %v293_v10 = vadd.f32 %v2044_v38, %v292_v5 }
  0xea   :  { %v1503_v11 = vpack.c.bf16 %v301_v4, %v298_v3  ;;  %v1183_v29 = vmul.f32 %v301_v4, %v301_v4  ;;  %v1583_v46 = vpack.c.bf16 %v2095_v39, %v2086_v27  ;;  %v2110_v51 = vadd.f32 %v2044_v38, %v420_v34 }
  0xeb   :  { %v1243_v14 = vadd.f32 %v1242_v9, %v1180_v8  ;;  %v1498_v15 = vpack.c.bf16 %v293_v10, %v290_v63  ;;  %v1111_v16 = vadd.f32 %v1110_v7, %v293_v10  ;;  %v1181_v17 = vmul.f32 %v293_v10, %v293_v10 }
  0xec   :  { %1647 = vst [vmem:[%s2404_s3 + $0x18] sm:$0xff] %v1503_v11   ;;  %1663 = vst [vmem:[%s2404_s3 + $0x98] sm:$0xff] %v1583_v46   ;;  %v1578_v60 = vpack.c.bf16 %v2110_v51, %v2099_v45 }
  0xed   :  { %1646 = vst [vmem:[%s2404_s3 + $0x10] sm:$0xff] %v1498_v15   ;;  %v1112_v21 = vadd.f32 %v1111_v16, %v298_v3  ;;  %v1244_v22 = vadd.f32 %v1243_v14, %v1181_v17  ;;  %v1724_v23 = vpop.f32.mrb[8].mxu0  ;;  %v1756_v52 = vpop.f32.mrb[8].mxu1 }
  0xee   :  { %v305_v25 = vpop.f32.mrb[9].mxu0  ;;  %v314_v35 = vadd.f32 %v1724_v23, %v2044_v38  ;;  %v433_v57 = vpop.f32.mrb[9].mxu1  ;;  %v2118_v61 = vadd.f32 %v1756_v52, %v2044_v38  ;;  %1662 = vst [vmem:[%s2404_s3 + $0x90] sm:$0xff] %v1578_v60  }
  0xef   :  { %v1245_v30 = vadd.f32 %v1244_v22, %v1182_v20  ;;  %v306_v31 = vadd.f32 %v2044_v38, %v305_v25  ;;  %v1113_v32 = vadd.f32 %v1112_v21, %v301_v4  ;;  %v1725_v33 = vpop.f32.mrb[10].mxu0  ;;  %v1757_v62 = vpop.f32.mrb[10].mxu1  ;;  %v2131_v16 = vadd.f32 %v2044_v38, %v433_v57 }
  0xf0   :  { %v317_v36 = vadd.f32 %v1725_v33, %v2044_v38  ;;  %v308_v37 = vpop.f32.mrb[11].mxu0  ;;  %v1186_v53 = vmul.f32 %v314_v35, %v314_v35  ;;  %v436_v4 = vpop.f32.mrb[11].mxu1  ;;  %v2127_v9 = vadd.f32 %v1757_v62, %v2044_v38 }
  0xf1   :  { %v1114_v40 = vadd.f32 %v1113_v32, %v306_v31  ;;  %v1184_v41 = vmul.f32 %v306_v31, %v306_v31  ;;  %v1246_v42 = vadd.f32 %v1245_v30, %v1183_v29  ;;  %v309_v43 = vadd.f32 %v2044_v38, %v308_v37 }
  0xf2   :  { %v1513_v44 = vpack.c.bf16 %v317_v36, %v314_v35  ;;  %v1187_v63 = vmul.f32 %v317_v36, %v317_v36  ;;  %v1593_v17 = vpack.c.bf16 %v2127_v9, %v2118_v61  ;;  %v2142_v23 = vadd.f32 %v2044_v38, %v436_v4 }
  0xf3   :  { %v1247_v47 = vadd.f32 %v1246_v42, %v1184_v41  ;;  %v1508_v48 = vpack.c.bf16 %v309_v43, %v306_v31  ;;  %v1115_v49 = vadd.f32 %v1114_v40, %v309_v43  ;;  %v1185_v50 = vmul.f32 %v309_v43, %v309_v43 }
  0xf4   :  { %1649 = vst [vmem:[%s2404_s3 + $0x28] sm:$0xff] %v1513_v44   ;;  %1665 = vst [vmem:[%s2404_s3 + $0xa8] sm:$0xff] %v1593_v17   ;;  %v1588_v32 = vpack.c.bf16 %v2142_v23, %v2131_v16 }
  0xf5   :  { %1648 = vst [vmem:[%s2404_s3 + $0x20] sm:$0xff] %v1508_v48   ;;  %v1116_v54 = vadd.f32 %v1115_v49, %v314_v35  ;;  %v1248_v55 = vadd.f32 %v1247_v47, %v1185_v50  ;;  %v1728_v56 = vpop.f32.mrb[12].mxu0  ;;  %v1760_v24 = vpop.f32.mrb[12].mxu1 }
  0xf6   :  { %v321_v58 = vpop.f32.mrb[13].mxu0  ;;  %v330_v5 = vadd.f32 %v1728_v56, %v2044_v38  ;;  %v449_v30 = vpop.f32.mrb[13].mxu1  ;;  %v2150_v33 = vadd.f32 %v1760_v24, %v2044_v38  ;;  %1664 = vst [vmem:[%s2404_s3 + $0xa0] sm:$0xff] %v1588_v32  }
  0xf7   :  { %v1249_v0 = vadd.f32 %v1248_v55, %v1186_v53  ;;  %v322_v1 = vadd.f32 %v2044_v38, %v321_v58  ;;  %v1117_v2 = vadd.f32 %v1116_v54, %v317_v36  ;;  %v1729_v3 = vpop.f32.mrb[14].mxu0  ;;  %v1761_v34 = vpop.f32.mrb[14].mxu1  ;;  %v2163_v54 = vadd.f32 %v2044_v38, %v449_v30 }
  0xf8   :  { %v333_v7 = vadd.f32 %v1729_v3, %v2044_v38  ;;  %v324_v8 = vpop.f32.mrb[15].mxu0  ;;  %v1190_v25 = vmul.f32 %v330_v5, %v330_v5  ;;  %v452_v42 = vpop.f32.mrb[15].mxu1  ;;  %v2159_v47 = vadd.f32 %v1761_v34, %v2044_v38 }
  0xf9   :  { %v1118_v10 = vadd.f32 %v1117_v2, %v322_v1  ;;  %v1188_v11 = vmul.f32 %v322_v1, %v322_v1  ;;  %v1250_v13 = vadd.f32 %v1249_v0, %v1187_v63  ;;  %v325_v14 = vadd.f32 %v2044_v38, %v324_v8 }
  0xfa   :  { %v1523_v15 = vpack.c.bf16 %v333_v7, %v330_v5  ;;  %v1191_v35 = vmul.f32 %v333_v7, %v333_v7  ;;  %v1603_v55 = vpack.c.bf16 %v2159_v47, %v2150_v33  ;;  %v2174_v62 = vadd.f32 %v2044_v38, %v452_v42 }
  0xfb   :  { %v1251_v19 = vadd.f32 %v1250_v13, %v1188_v11  ;;  %v1518_v20 = vpack.c.bf16 %v325_v14, %v322_v1  ;;  %v1119_v21 = vadd.f32 %v1118_v10, %v325_v14  ;;  %v1189_v22 = vmul.f32 %v325_v14, %v325_v14 }
  0xfc   :  { %1651 = vst [vmem:[%s2404_s3 + $0x38] sm:$0xff] %v1523_v15   ;;  %1667 = vst [vmem:[%s2404_s3 + $0xb8] sm:$0xff] %v1603_v55  }
  0xfd   :  { %1650 = vst [vmem:[%s2404_s3 + $0x30] sm:$0xff] %v1518_v20   ;;  %v1120_v26 = vadd.f32 %v1119_v21, %v330_v5  ;;  %v1252_v28 = vadd.f32 %v1251_v19, %v1189_v22  ;;  %v1732_v29 = vpop.f32.mrb[16].mxu0  ;;  %v1764_v63 = vpop.f32.mrb[16].mxu1 }
  0xfe   :  { %v337_v31 = vpop.f32.mrb[17].mxu0  ;;  %v346_v43 = vadd.f32 %v1732_v29, %v2044_v38  ;;  %v465_v4 = vpop.f32.mrb[17].mxu1  ;;  %v2182_v8 = vadd.f32 %v1764_v63, %v2044_v38 }
  0xff   :  { %v1253_v36 = vadd.f32 %v1252_v28, %v1190_v25  ;;  %v338_v37 = vadd.f32 %v2044_v38, %v337_v31  ;;  %v1121_v40 = vadd.f32 %v1120_v26, %v333_v7  ;;  %v1733_v41 = vpop.f32.mrb[18].mxu0  ;;  %v1598_v7 = vpack.c.bf16 %v2174_v62, %v2163_v54  ;;  %v1765_v10 = vpop.f32.mrb[18].mxu1 }
 0x100   :  { %v349_v44 = vadd.f32 %v1733_v41, %v2044_v38  ;;  %v340_v46 = vpop.f32.mrb[19].mxu0  ;;  %v1194_v0 = vmul.f32 %v346_v43, %v346_v43  ;;  %v468_v19 = vpop.f32.mrb[19].mxu1  ;;  %v2191_v24 = vadd.f32 %v1765_v10, %v2044_v38  ;;  %v2195_v31 = vadd.f32 %v2044_v38, %v465_v4 }
 0x101   :  { %v1122_v48 = vadd.f32 %v1121_v40, %v338_v37  ;;  %v1192_v49 = vmul.f32 %v338_v37, %v338_v37  ;;  %v1254_v50 = vadd.f32 %v1253_v36, %v1191_v35  ;;  %v341_v52 = vadd.f32 %v2044_v38, %v340_v46  ;;  %1666 = vst [vmem:[%s2404_s3 + $0xb0] sm:$0xff] %v1598_v7  }
 0x102   :  { %v1533_v53 = vpack.c.bf16 %v349_v44, %v346_v43  ;;  %v1195_v11 = vmul.f32 %v349_v44, %v349_v44  ;;  %v1613_v32 = vpack.c.bf16 %v2191_v24, %v2182_v8  ;;  %v2206_v40 = vadd.f32 %v2044_v38, %v468_v19 }
 0x103   :  { %v1255_v56 = vadd.f32 %v1254_v50, %v1192_v49  ;;  %v1528_v57 = vpack.c.bf16 %v341_v52, %v338_v37  ;;  %v1123_v58 = vadd.f32 %v1122_v48, %v341_v52  ;;  %v1193_v60 = vmul.f32 %v341_v52, %v341_v52 }
 0x104   :  { %1653 = vst [vmem:[%s2404_s3 + $0x48] sm:$0xff] %v1533_v53   ;;  %1669 = vst [vmem:[%s2404_s3 + $0xc8] sm:$0xff] %v1613_v32   ;;  %v1608_v50 = vpack.c.bf16 %v2206_v40, %v2195_v31 }
 0x105   :  { %1652 = vst [vmem:[%s2404_s3 + $0x40] sm:$0xff] %v1528_v57   ;;  %v1124_v1 = vadd.f32 %v1123_v58, %v346_v43  ;;  %v1256_v2 = vadd.f32 %v1255_v56, %v1193_v60  ;;  %v1736_v3 = vpop.f32.mrb[20].mxu0  ;;  %v1768_v41 = vpop.f32.mrb[20].mxu1 }
 0x106   :  { %v353_v5 = vpop.f32.mrb[21].mxu0  ;;  %v362_v20 = vadd.f32 %v1736_v3, %v2044_v38  ;;  %v481_v48 = vpop.f32.mrb[21].mxu1  ;;  %v2214_v52 = vadd.f32 %v1768_v41, %v2044_v38  ;;  %1668 = vst [vmem:[%s2404_s3 + $0xc0] sm:$0xff] %v1608_v50  }
 0x107   :  { %v1257_v13 = vadd.f32 %v1256_v2, %v1194_v0  ;;  %v354_v14 = vadd.f32 %v2044_v38, %v353_v5  ;;  %v1125_v15 = vadd.f32 %v1124_v1, %v349_v44  ;;  %v1737_v17 = vpop.f32.mrb[22].mxu0  ;;  %v1769_v53 = vpop.f32.mrb[22].mxu1 }
 0x108   :  { %v365_v21 = vadd.f32 %v1737_v17, %v2044_v38  ;;  %v356_v22 = vpop.f32.mrb[23].mxu0  ;;  %v1198_v42 = vmul.f32 %v362_v20, %v362_v20  ;;  %v484_v63 = vpop.f32.mrb[23].mxu1  ;;  %v2223_v3 = vadd.f32 %v1769_v53, %v2044_v38 }
 0x109   :  { %v1126_v25 = vadd.f32 %v1125_v15, %v354_v14  ;;  %v1196_v26 = vmul.f32 %v354_v14, %v354_v14  ;;  %v1258_v28 = vadd.f32 %v1257_v13, %v1195_v11  ;;  %v357_v29 = vadd.f32 %v2044_v38, %v356_v22 }
 0x10a   :  { %v1543_v30 = vpack.c.bf16 %v365_v21, %v362_v20  ;;  %v1199_v55 = vmul.f32 %v365_v21, %v365_v21  ;;  %v2227_v13 = vadd.f32 %v2044_v38, %v481_v48 }
 0x10b   :  { %v1259_v34 = vadd.f32 %v1258_v28, %v1196_v26  ;;  %v1538_v35 = vpack.c.bf16 %v357_v29, %v354_v14  ;;  %v1127_v36 = vadd.f32 %v1126_v25, %v357_v29  ;;  %v1197_v37 = vmul.f32 %v357_v29, %v357_v29 }
 0x10c   :  { %1655 = vst [vmem:[%s2404_s3 + $0x58] sm:$0xff] %v1543_v30   ;;  %v1623_v14 = vpack.c.bf16 %v2223_v3, %v2214_v52 }
 0x10d   :  { %1654 = vst [vmem:[%s2404_s3 + $0x50] sm:$0xff] %v1538_v35   ;;  %v1128_v43 = vadd.f32 %v1127_v36, %v362_v20  ;;  %v1260_v44 = vadd.f32 %v1259_v34, %v1197_v37  ;;  %v1740_v46 = vpop.f32.mrb[24].mxu0  ;;  %v1772_v22 = vpop.f32.mrb[24].mxu1 }
 0x10e   :  { %v369_v49 = vpop.f32.mrb[25].mxu0  ;;  %v378_v0 = vadd.f32 %v1740_v46, %v2044_v38  ;;  %1671 = vst [vmem:[%s2404_s3 + $0xd8] sm:$0xff] %v1623_v14   ;;  %v497_v30 = vpop.f32.mrb[25].mxu1  ;;  %v2246_v35 = vadd.f32 %v1772_v22, %v2044_v38 }
 0x10f   :  { %v1261_v56 = vadd.f32 %v1260_v44, %v1198_v42  ;;  %v370_v57 = vadd.f32 %v2044_v38, %v369_v49  ;;  %v1129_v58 = vadd.f32 %v1128_v43, %v365_v21  ;;  %v1741_v60 = vpop.f32.mrb[26].mxu0  ;;  %v2238_v21 = vadd.f32 %v2044_v38, %v484_v63  ;;  %v1773_v36 = vpop.f32.mrb[26].mxu1 }
 0x110   :  { %v381_v1 = vadd.f32 %v1741_v60, %v2044_v38  ;;  %v372_v2 = vpop.f32.mrb[27].mxu0  ;;  %v1202_v25 = vmul.f32 %v378_v0, %v378_v0  ;;  %v500_v46 = vpop.f32.mrb[27].mxu1  ;;  %v2255_v53 = vadd.f32 %v1773_v36, %v2044_v38  ;;  %v2259_v63 = vadd.f32 %v2044_v38, %v497_v30 }
 0x111   :  { %v1130_v4 = vadd.f32 %v1129_v58, %v370_v57  ;;  %v1200_v5 = vmul.f32 %v370_v57, %v370_v57  ;;  %v1262_v7 = vadd.f32 %v1261_v56, %v1199_v55  ;;  %v373_v10 = vadd.f32 %v2044_v38, %v372_v2 }
 0x112   :  { %v1553_v11 = vpack.c.bf16 %v381_v1, %v378_v0  ;;  %v1618_v34 = vpack.c.bf16 %v2238_v21, %v2227_v13  ;;  %v1203_v37 = vmul.f32 %v381_v1, %v381_v1 }
 0x113   :  { %v1263_v15 = vadd.f32 %v1262_v7, %v1200_v5  ;;  %v1548_v17 = vpack.c.bf16 %v373_v10, %v370_v57  ;;  %v1131_v19 = vadd.f32 %v1130_v4, %v373_v10  ;;  %v1201_v20 = vmul.f32 %v373_v10, %v373_v10 }
 0x114   :  { %1657 = vst [vmem:[%s2404_s3 + $0x68] sm:$0xff] %v1553_v11   ;;  %1670 = vst [vmem:[%s2404_s3 + $0xd0] sm:$0xff] %v1618_v34   ;;  %v2270_v7 = vadd.f32 %v2044_v38, %v500_v46 }
 0x115   :  { %1656 = vst [vmem:[%s2404_s3 + $0x60] sm:$0xff] %v1548_v17   ;;  %v1132_v26 = vadd.f32 %v1131_v19, %v378_v0  ;;  %v1264_v28 = vadd.f32 %v1263_v15, %v1201_v20  ;;  %v1744_v29 = vpop.f32.mrb[28].mxu0  ;;  %v1633_v0 = vpack.c.bf16 %v2255_v53, %v2246_v35  ;;  %v1776_v10 = vpop.f32.mrb[28].mxu1  ;;  %v1208_v20 = vmul.f32 %v2067_v12, %v2067_v12 }
 0x116   :  { %v385_v32 = vpop.f32.mrb[29].mxu0  ;;  %v394_v48 = vadd.f32 %v1744_v29, %v2044_v38  ;;  %v2276_v17 = vadd.f32 %v1776_v10, %v2044_v38  ;;  %v513_v19 = vpop.f32.mrb[29].mxu1  ;;  %v1628_v22 = vpack.c.bf16 %v2270_v7, %v2259_v63 }
 0x117   :  { %v1265_v41 = vadd.f32 %v1264_v28, %v1202_v25  ;;  %v386_v42 = vadd.f32 %v2044_v38, %v385_v32  ;;  %v1133_v43 = vadd.f32 %v1132_v26, %v381_v1  ;;  %v1745_v44 = vpop.f32.mrb[30].mxu0  ;;  %1673 = vst [vmem:[%s2404_s3 + $0xe8] sm:$0xff] %v1633_v0   ;;  %v2283_v25 = vadd.f32 %v2044_v38, %v513_v19  ;;  %v1777_v26 = vpop.f32.mrb[30].mxu1 }
 0x118   :  { %v397_v49 = vadd.f32 %v1745_v44, %v2044_v38  ;;  %v388_v50 = vpop.f32.mrb[31].mxu0  ;;  %v1206_v11 = vmul.f32 %v394_v48, %v394_v48  ;;  %v2286_v32 = vadd.f32 %v1777_v26, %v2044_v38  ;;  %v516_v34 = vpop.f32.mrb[31].mxu1  ;;  %1672 = vst [vmem:[%s2404_s3 + $0xe0] sm:$0xff] %v1628_v22   ;;  %v1217_v19 = vmul.f32 %v2142_v23, %v2142_v23 }
 0x119   :  { %v1134_v55 = vadd.f32 %v1133_v43, %v386_v42  ;;  %v1204_v56 = vmul.f32 %v386_v42, %v386_v42  ;;  %v1266_v57 = vadd.f32 %v1265_v41, %v1203_v37  ;;  %v389_v58 = vadd.f32 %v2044_v38, %v388_v50 }
 0x11a   :  { %v1563_v60 = vpack.c.bf16 %v397_v49, %v394_v48  ;;  %v1207_v28 = vmul.f32 %v397_v49, %v397_v49  ;;  %v2292_v36 = vadd.f32 %v2044_v38, %v516_v34  ;;  %v1210_v38 = vmul.f32 %v2057_v59, %v2057_v59 }
 0x11b   :  { %v1267_v1 = vadd.f32 %v1266_v57, %v1204_v56  ;;  %v1558_v2 = vpack.c.bf16 %v389_v58, %v386_v42  ;;  %v1135_v4 = vadd.f32 %v1134_v55, %v389_v58  ;;  %v1205_v5 = vmul.f32 %v389_v58, %v389_v58 }
 0x11c   :  { %1659 = vst [vmem:[%s2404_s3 + $0x78] sm:$0xff] %v1563_v60   ;;  %v1643_v42 = vpack.c.bf16 %v2286_v32, %v2276_v17  ;;  %v1638_v43 = vpack.c.bf16 %v2292_v36, %v2283_v25  ;;  %v1211_v50 = vmul.f32 %v2063_v6, %v2063_v6  ;;  %v1212_v56 = vmul.f32 %v2099_v45, %v2099_v45 }
 0x11d   :  { %1658 = vst [vmem:[%s2404_s3 + $0x70] sm:$0xff] %v1558_v2   ;;  %v1136_v14 = vadd.f32 %v1135_v4, %v394_v48  ;;  %v1268_v15 = vadd.f32 %v1267_v1, %v1205_v5  ;;  %v1209_v48 = vmul.f32 %v2078_v18, %v2078_v18  ;;  %v1213_v1 = vmul.f32 %v2110_v51, %v2110_v51 }
 0x11e   :  { %1675 = vst [vmem:[%s2404_s3 + $0xf8] sm:$0xff] %v1643_v42   ;;  %1674 = vst [vmem:[%s2404_s3 + $0xf0] sm:$0xff] %v1638_v43  }
 0x11f   :  { %v1269_v29 = vadd.f32 %v1268_v15, %v1206_v11  ;;  %v1137_v30 = vadd.f32 %v1136_v14, %v397_v49 }
 0x121   :  { %v1138_v37 = vadd.f32 %v1137_v30, %v2067_v12  ;;  %v1270_v41 = vadd.f32 %v1269_v29, %v1207_v28 }
 0x123   :  { %v1271_v44 = vadd.f32 %v1270_v41, %v1208_v20  ;;  %v1139_v46 = vadd.f32 %v1138_v37, %v2078_v18  ;;  %v1221_v37 = vmul.f32 %v2174_v62, %v2174_v62 }
 0x125   :  { %v1140_v12 = vadd.f32 %v1139_v46, %v2057_v59  ;;  %v1272_v49 = vadd.f32 %v1271_v44, %v1209_v48  ;;  %v1214_v59 = vmul.f32 %v2086_v27, %v2086_v27 }
 0x127   :  { %v1273_v55 = vadd.f32 %v1272_v49, %v1210_v38  ;;  %v1141_v18 = vadd.f32 %v1140_v12, %v2063_v6  ;;  %v1215_v6 = vmul.f32 %v2095_v39, %v2095_v39  ;;  %v1225_v12 = vmul.f32 %v2206_v40, %v2206_v40 }
 0x129   :  { %v1142_v57 = vadd.f32 %v1141_v18, %v2099_v45  ;;  %v1274_v58 = vadd.f32 %v1273_v55, %v1211_v50  ;;  %v1216_v45 = vmul.f32 %v2131_v16, %v2131_v16 }
 0x12b   :  { %v1275_v60 = vadd.f32 %v1274_v58, %v1212_v56  ;;  %v1143_v0 = vadd.f32 %v1142_v57, %v2110_v51 }
 0x12d   :  { %v1144_v2 = vadd.f32 %v1143_v0, %v2086_v27  ;;  %v1276_v4 = vadd.f32 %v1275_v60, %v1213_v1  ;;  %v1218_v27 = vmul.f32 %v2118_v61, %v2118_v61  ;;  %v1229_v60 = vmul.f32 %v2238_v21, %v2238_v21 }
 0x12f   :  { %v1277_v5 = vadd.f32 %v1276_v4, %v1214_v59  ;;  %v1145_v10 = vadd.f32 %v1144_v2, %v2095_v39  ;;  %v1219_v39 = vmul.f32 %v2127_v9, %v2127_v9 }
 0x131   :  { %v1146_v11 = vadd.f32 %v1145_v10, %v2131_v16  ;;  %v1278_v14 = vadd.f32 %v1277_v5, %v1215_v6  ;;  %v1220_v16 = vmul.f32 %v2163_v54, %v2163_v54  ;;  %v1233_v10 = vmul.f32 %v2270_v7, %v2270_v7 }
 0x133   :  { %v1279_v15 = vadd.f32 %v1278_v14, %v1216_v45  ;;  %v1147_v51 = vadd.f32 %v1146_v11, %v2142_v23 }
 0x135   :  { %v1148_v20 = vadd.f32 %v1147_v51, %v2118_v61  ;;  %v1280_v22 = vadd.f32 %v1279_v15, %v1217_v19  ;;  %v1222_v61 = vmul.f32 %v2150_v33, %v2150_v33 }
 0x137   :  { %v1281_v26 = vadd.f32 %v1280_v22, %v1218_v27  ;;  %v1149_v28 = vadd.f32 %v1148_v20, %v2127_v9  ;;  %v1223_v9 = vmul.f32 %v2159_v47, %v2159_v47  ;;  %v1237_v20 = vmul.f32 %v2292_v36, %v2292_v36 }
 0x139   :  { %v1150_v29 = vadd.f32 %v1149_v28, %v2163_v54  ;;  %v1282_v30 = vadd.f32 %v1281_v26, %v1219_v39  ;;  %v1224_v54 = vmul.f32 %v2195_v31, %v2195_v31 }
 0x13b   :  { %v1283_v34 = vadd.f32 %v1282_v30, %v1220_v16  ;;  %v1151_v23 = vadd.f32 %v1150_v29, %v2174_v62 }
 0x13d   :  { %v1152_v41 = vadd.f32 %v1151_v23, %v2150_v33  ;;  %v1284_v42 = vadd.f32 %v1283_v34, %v1221_v37  ;;  %v1226_v33 = vmul.f32 %v2182_v8, %v2182_v8  ;;  %v849_v34 = vlaneseq }
 0x13f   :  { %v1285_v43 = vadd.f32 %v1284_v42, %v1222_v61  ;;  %v1153_v44 = vadd.f32 %v1152_v41, %v2159_v47  ;;  %v1227_v47 = vmul.f32 %v2191_v24, %v2191_v24  ;;  %v850_v41 = vshrl.u32 %v849_v34, 7 }
 0x141   :  { %v1154_v46 = vadd.f32 %v1153_v44, %v2195_v31  ;;  %v1286_v48 = vadd.f32 %v1285_v43, %v1223_v9  ;;  %v1228_v31 = vmul.f32 %v2227_v13, %v2227_v13  ;;  %vm1310_vm3 = vcmp.eq.s32.totalorder %v850_v41, 1 }
 0x142   :  { %vm1309_vm4 = vcmp.eq.s32.totalorder %v850_v41, 0 }
 0x143   :  { %v1287_v38 = vadd.f32 %v1286_v48, %v1224_v54  ;;  %v1155_v62 = vadd.f32 %v1154_v46, %v2206_v40 }
 0x145   :  { %v1156_v49 = vadd.f32 %v1155_v62, %v2182_v8  ;;  %v1288_v50 = vadd.f32 %v1287_v38, %v1225_v12  ;;  %v1230_v8 = vmul.f32 %v2214_v52, %v2214_v52 }
 0x147   :  { %v1289_v55 = vadd.f32 %v1288_v50, %v1226_v33  ;;  %v1157_v18 = vadd.f32 %v1156_v49, %v2191_v24  ;;  %v1231_v24 = vmul.f32 %v2223_v3, %v2223_v3 }
 0x149   :  { %v1158_v56 = vadd.f32 %v1157_v18, %v2227_v13  ;;  %v1290_v57 = vadd.f32 %v1289_v55, %v1227_v47  ;;  %v1232_v13 = vmul.f32 %v2259_v63, %v2259_v63 }
 0x14b   :  { %v1291_v58 = vadd.f32 %v1290_v57, %v1228_v31  ;;  %v1159_v40 = vadd.f32 %v1158_v56, %v2238_v21 }
 0x14d   :  { %v1160_v0 = vadd.f32 %v1159_v40, %v2214_v52  ;;  %v1292_v1 = vadd.f32 %v1291_v58, %v1229_v60  ;;  %v1234_v52 = vmul.f32 %v2246_v35, %v2246_v35 }
 0x14f   :  { %v1293_v59 = vadd.f32 %v1292_v1, %v1230_v8  ;;  %v1161_v2 = vadd.f32 %v1160_v0, %v2223_v3  ;;  %v1235_v3 = vmul.f32 %v2255_v53, %v2255_v53 }
 0x151   :  { %v1162_v4 = vadd.f32 %v1161_v2, %v2259_v63  ;;  %v1294_v6 = vadd.f32 %v1293_v59, %v1231_v24  ;;  %v1236_v63 = vmul.f32 %v2283_v25, %v2283_v25 }
 0x153   :  { %v1295_v5 = vadd.f32 %v1294_v6, %v1232_v13  ;;  %v1163_v21 = vadd.f32 %v1162_v4, %v2270_v7 }
 0x155   :  { %v1164_v45 = vadd.f32 %v1163_v21, %v2246_v35  ;;  %v1296_v11 = vadd.f32 %v1295_v5, %v1233_v10  ;;  %v1238_v35 = vmul.f32 %v2276_v17, %v2276_v17 }
 0x157   :  { %v1297_v14 = vadd.f32 %v1296_v11, %v1234_v52  ;;  %v1165_v15 = vadd.f32 %v1164_v45, %v2255_v53  ;;  %v1239_v53 = vmul.f32 %v2286_v32, %v2286_v32 }
 0x159   :  { %v1166_v51 = vadd.f32 %v1165_v15, %v2283_v25  ;;  %v1298_v19 = vadd.f32 %v1297_v14, %v1235_v3 }
 0x15b   :  { %v1299_v27 = vadd.f32 %v1298_v19, %v1236_v63  ;;  %v1167_v7 = vadd.f32 %v1166_v51, %v2292_v36 }
 0x15d   :  { %v1168_v22 = vadd.f32 %v1167_v7, %v2276_v17  ;;  %v1300_v39 = vadd.f32 %v1299_v27, %v1237_v20 }
 0x15f   :  { %v1169_v26 = vadd.f32 %v1168_v22, %v2286_v32  ;;  %v1301_v28 = vadd.f32 %v1300_v39, %v1238_v35 }
 0x161   :  { %v1170_v25 = vrot.slane %v1169_v26, 4  ;;  %v1302_v16 = vadd.f32 %v1301_v28, %v1239_v53 }
 0x163   :  { %v1171_v29 = vadd.f32 %v1170_v25, %v1169_v26  ;;  %v1303_v30 = vrot.slane %v1302_v16, 4 }
 0x165   :  { %v1172_v23 = vrot.slane %v1171_v29, 2  ;;  %v1304_v37 = vadd.f32 %v1303_v30, %v1302_v16 }
 0x167   :  { %v1173_v36 = vadd.f32 %v1172_v23, %v1171_v29  ;;  %v1305_v61 = vrot.slane %v1304_v37, 2 }
 0x169   :  { %v1306_v42 = vadd.f32 %v1305_v61, %v1304_v37  ;;  %v1174_v9 = vrot.slane %v1173_v36, 1 }
 0x16b   :  { %v1307_v17 = vrot.slane %v1306_v42, 1  ;;  %v1175_v44 = vadd.f32 %v1174_v9, %v1173_v36 }
 0x16d   :  { %v1308_v43 = vadd.f32 %v1307_v17, %v1306_v42 }
 0x16f   :  { %v1311_v54 = vsel %vm1310_vm3, %v1308_v43, 0.0 }
 0x170   :  { %v1312_v32 = vsel %vm1309_vm4, %v1175_v44, %v1311_v54 }
 0x171   :  { %1313 = vst [vmem:[%s2405_s4] sm:$0xff] %v1312_v32 }

// kernel: vit_forward.17
= control target key start
LH: loop header
LB: loop body
LE: loop exit
PB: predicated region body
PF: predicated region fallthrough
CT: control target
= control target key end

     0   :  { %vm529_vm0 = vcmask 1043456   ;;  %vm432_vm1 = vcmask 588800   ;;  %s2967_s1 = inlined_call_operand.vmem [shape: bf16[72,128], index: 1, kind: input, shape index: {}]   ;;  %s2968_s0 = inlined_call_operand.vmem [shape: bf16[512,72], index: 0, kind: input, shape index: {}]   ;;  %s2969_s3 = inlined_call_operand.vmem [shape: f32[1,72], index: 3, kind: input, shape index: {}]   ;;  %s2970_s4 = inlined_call_operand.vmem [shape: f32[1,72], index: 4, kind: input, shape index: {}]   ;;  %s2971_s2 = inlined_call_operand.vmem [shape: f32[1,128], index: 2, kind: input, shape index: {}]   ;;  %s2972_s5 = inlined_call_operand.vmem [shape: bf16[512,128], index: 5, kind: output, shape index: {0}]   ;;  %s2973_s6 = inlined_call_operand.vmem [shape: f32[1,8,128], index: 6, kind: output, shape index: {1}]  }
   0x1   :  { %v2257_v0 = vld [vmem:[%s2967_s1] sm:$0xff]   ;;  %v2258_v1 = vld [vmem:[%s2967_s1 + $0x8] sm:$0xff]   ;;  %v2259_v2 = vld [vmem:[%s2967_s1 + $0x10] sm:$0xff]  }
   0x2   :  { %2171 = vmatprep.subr.bf16.mxu0 %v2257_v0  ;;  %2245 = vmatprep.subr.bf16.mxu1 %v2257_v0  ;;  %v1785_v3 = vld [vmem:[%s2968_s0] sm:$0xff]   ;;  %v2072_v7 = vld [vmem:[%s2968_s0 + $0x8] sm:$0xff]   ;;  %v2073_v11 = vld [vmem:[%s2968_s0 + $0x10] sm:$0xff]  }
   0x3   :  { %2172 = vmatpush3.bf16.msra.mxu0 %v2257_v0  ;;  %2250 = vmatpush3.bf16.msra.mxu1 %v2257_v0  ;;  %v1786_v4 = vunpack.c.l.bf16 %v1785_v3  ;;  %v1787_v5 = vunpack.c.h.bf16 %v1785_v3  ;;  %v2312_v6 = vld [vmem:[%s2969_s3] ss:$0 sm:$0xff]  ;;  %v1790_v9 = vunpack.c.l.bf16 %v2072_v7  ;;  %v1791_v10 = vunpack.c.h.bf16 %v2072_v7  ;;  %v2074_v12 = vld [vmem:[%s2968_s0 + $0x18] sm:$0xff]   ;;  %v2076_v34 = vld [vmem:[%s2968_s0 + $0x28] sm:$0xff]  }
   0x4   :  { %2173 = vmatprep.subr.bf16.mxu0 %v2258_v1  ;;  %2246 = vmatprep.subr.bf16.mxu1 %v2258_v1  ;;  %v2320_v8 = vld [vmem:[%s2970_s4] ss:$0 sm:$0xff]  ;;  %v1794_v15 = vunpack.c.l.bf16 %v2073_v11  ;;  %v1795_v16 = vunpack.c.h.bf16 %v2073_v11  ;;  %v2260_v17 = vld [vmem:[%s2967_s1 + $0x18] sm:$0xff]   ;;  %v1798_v20 = vunpack.c.l.bf16 %v2074_v12  ;;  %v1799_v21 = vunpack.c.h.bf16 %v2074_v12  ;;  %v2077_v39 = vld [vmem:[%s2968_s0 + $0x30] sm:$0xff]  }
   0x5   :  { %v158_v13 = vmul.f32 %v1786_v4, %v2312_v6  ;;  %v159_v14 = vmul.f32 %v1787_v5, %v2312_v6  ;;  %v160_v18 = vmul.f32 %v1790_v9, %v2312_v6  ;;  %v161_v19 = vmul.f32 %v1791_v10, %v2312_v6  ;;  %v2075_v28 = vld [vmem:[%s2968_s0 + $0x20] sm:$0xff]   ;;  %v2078_v52 = vld [vmem:[%s2968_s0 + $0x38] sm:$0xff]   ;;  %v2080_v3 = vld [vmem:[%s2968_s0 + $0x48] sm:$0xff]  }
   0x6   :  { %v162_v24 = vmul.f32 %v1794_v15, %v2312_v6  ;;  %v163_v25 = vmul.f32 %v1795_v16, %v2312_v6  ;;  %v2261_v33 = vld [vmem:[%s2967_s1 + $0x20] ss:$0 sps:$4 sm:$0xff]   ;;  %v164_v36 = vmul.f32 %v1798_v20, %v2312_v6  ;;  %v165_v37 = vmul.f32 %v1799_v21, %v2312_v6  ;;  %v2081_v10 = vld [vmem:[%s2968_s0 + $0x50] sm:$0xff]   ;;  %v2082_v15 = vld [vmem:[%s2968_s0 + $0x58] sm:$0xff]  }
   0x7   :  { %2174 = vmatpush3.bf16.msra.mxu0 %v2258_v1  ;;  %2251 = vmatpush3.bf16.msra.mxu1 %v2258_v1  ;;  %v229_v22 = vadd.f32 %v2320_v8, %v158_v13  ;;  %v230_v23 = vadd.f32 %v2320_v8, %v159_v14  ;;  %v231_v26 = vadd.f32 %v2320_v8, %v160_v18  ;;  %v1802_v38 = vunpack.c.l.bf16 %v2075_v28  ;;  %v2079_v58 = vld [vmem:[%s2968_s0 + $0x40] sm:$0xff]  }
   0x8   :  { %2175 = vmatprep.subr.bf16.mxu0 %v2259_v2  ;;  %2247 = vmatprep.subr.bf16.mxu1 %v2259_v2  ;;  %v232_v27 = vadd.f32 %v2320_v8, %v161_v19  ;;  %v233_v31 = vadd.f32 %v2320_v8, %v162_v24  ;;  %v234_v32 = vadd.f32 %v2320_v8, %v163_v25  ;;  %v1803_v43 = vunpack.c.h.bf16 %v2075_v28 }
   0x9   :  { %v293_v29 = vmax.f32 %v229_v22, 0.0  ;;  %v294_v30 = vmax.f32 %v230_v23, 0.0  ;;  %v295_v40 = vmax.f32 %v231_v26, 0.0  ;;  %v166_v45 = vmul.f32 %v1802_v38, %v2312_v6 }
   0xa   :  { %v296_v41 = vmax.f32 %v232_v27, 0.0  ;;  %v297_v42 = vmax.f32 %v233_v31, 0.0  ;;  %v298_v44 = vmax.f32 %v234_v32, 0.0  ;;  %v1806_v46 = vunpack.c.l.bf16 %v2076_v34 }
   0xb   :  { %2176 = vmatpush3.bf16.msra.mxu0 %v2259_v2  ;;  %2252 = vmatpush3.bf16.msra.mxu1 %v2259_v2  ;;  %v357_v35 = vpack.c.bf16 %v294_v30, %v293_v29  ;;  %v1807_v47 = vunpack.c.h.bf16 %v2076_v34  ;;  %v531_v48 = vsel %vm529_vm0, %v2261_v33, 0  ;;  %v167_v49 = vmul.f32 %v1803_v43, %v2312_v6 }
   0xc   :  { %2177 = vmatprep.subr.bf16.mxu0 %v2260_v17  ;;  %2248 = vmatprep.subr.bf16.mxu1 %v2260_v17  ;;  %v1810_v50 = vunpack.c.l.bf16 %v2077_v39  ;;  %v1811_v51 = vunpack.c.h.bf16 %v2077_v39  ;;  %v235_v53 = vadd.f32 %v2320_v8, %v164_v36  ;;  %v358_v54 = vpack.c.bf16 %v296_v41, %v295_v40  ;;  %v2083_v36 = vld [vmem:[%s2968_s0 + $0x60] sm:$0xff]  }
   0xd   :  { %2181 = vmatprep.mubr.msk.bf16.mxu0 %vm432_vm1, %v357_v35  ;;  %v236_v55 = vadd.f32 %v2320_v8, %v165_v37  ;;  %v237_v56 = vadd.f32 %v2320_v8, %v166_v45  ;;  %v168_v57 = vmul.f32 %v1806_v46, %v2312_v6  ;;  %v359_v59 = vpack.c.bf16 %v298_v44, %v297_v42 }
   0xe   :  { %v238_v60 = vadd.f32 %v2320_v8, %v167_v49  ;;  %v169_v61 = vmul.f32 %v1807_v47, %v2312_v6  ;;  %v1814_v62 = vunpack.c.l.bf16 %v2078_v52  ;;  %v170_v63 = vmul.f32 %v1810_v50, %v2312_v6 }
   0xf   :  { %2178 = vmatpush3.bf16.msra.mxu0 %v2260_v17  ;;  %2253 = vmatpush3.bf16.msra.mxu1 %v2260_v17  ;;  %v171_v0 = vmul.f32 %v1811_v51, %v2312_v6  ;;  %v1815_v1 = vunpack.c.h.bf16 %v2078_v52  ;;  %v1818_v2 = vunpack.c.l.bf16 %v2079_v58  ;;  %v299_v4 = vmax.f32 %v235_v53, 0.0 }
  0x10   :  { %2255 = vmatprep.subr.msk.bf16.mxu0 %vm529_vm0, %v2261_v33  ;;  %2256 = vmatprep.subr.msk.bf16.mxu1 %vm529_vm0, %v2261_v33  ;;  %v300_v5 = vmax.f32 %v236_v55, 0.0  ;;  %v301_v7 = vmax.f32 %v237_v56, 0.0  ;;  %v239_v9 = vadd.f32 %v2320_v8, %v168_v57  ;;  %v302_v11 = vmax.f32 %v238_v60, 0.0 }
  0x11   :  { %v240_v12 = vadd.f32 %v2320_v8, %v169_v61  ;;  %v172_v13 = vmul.f32 %v1814_v62, %v2312_v6  ;;  %v1819_v14 = vunpack.c.h.bf16 %v2079_v58  ;;  %v241_v16 = vadd.f32 %v2320_v8, %v170_v63 }
  0x12   :  { %v242_v17 = vadd.f32 %v2320_v8, %v171_v0  ;;  %v1822_v18 = vunpack.c.l.bf16 %v2080_v3  ;;  %v1823_v19 = vunpack.c.h.bf16 %v2080_v3  ;;  %v173_v20 = vmul.f32 %v1815_v1, %v2312_v6  ;;  %v2087_v0 = vld [vmem:[%s2968_s0 + $0x80] sm:$0xff]  }
  0x13   :  { %2180 = vmatpush3.bf16.msra.mxu0 %v531_v48  ;;  %2254 = vmatpush3.bf16.msra.mxu1 %v531_v48  ;;  %v174_v21 = vmul.f32 %v1818_v2, %v2312_v6  ;;  %v1826_v22 = vunpack.c.l.bf16 %v2081_v10  ;;  %v1827_v23 = vunpack.c.h.bf16 %v2081_v10  ;;  %v360_v24 = vpack.c.bf16 %v300_v5, %v299_v4  ;;  %v2428_v4 = vld [vmem:[%s2968_s0 + $0x70] sm:$0xff]  }
  0x14   :  { %v175_v25 = vmul.f32 %v1819_v14, %v2312_v6  ;;  %v176_v26 = vmul.f32 %v1822_v18, %v2312_v6  ;;  %v1830_v27 = vunpack.c.l.bf16 %v2082_v15  ;;  %v361_v28 = vpack.c.bf16 %v302_v11, %v301_v7  ;;  %v2088_v11 = vld [vmem:[%s2968_s0 + $0x88] sm:$0xff]  }
  0x15   :  { %v177_v29 = vmul.f32 %v1823_v19, %v2312_v6  ;;  %v178_v30 = vmul.f32 %v1826_v22, %v2312_v6  ;;  %v179_v31 = vmul.f32 %v1827_v23, %v2312_v6  ;;  %v303_v32 = vmax.f32 %v239_v9, 0.0 }
  0x16   :  { %2182 = vmatmul.mubr.msk.bf16.vlgmr.msra.gmra.mrb[0].mxu0 %vm432_vm1, %v358_v54  ;;  %v304_v33 = vmax.f32 %v240_v12, 0.0  ;;  %v243_v34 = vadd.f32 %v2320_v8, %v172_v13  ;;  %v1831_v35 = vunpack.c.h.bf16 %v2082_v15  ;;  %v305_v37 = vmax.f32 %v241_v16, 0.0  ;;  %v2445_v16 = vld [vmem:[%s2968_s0 + $0x78] sm:$0xff]  }
  0x17   :  { %2185 = vmatprep.mubr.msk.bf16.mxu0 %vm432_vm1, %v359_v59  ;;  %v306_v38 = vmax.f32 %v242_v17, 0.0  ;;  %v244_v39 = vadd.f32 %v2320_v8, %v173_v20  ;;  %v245_v40 = vadd.f32 %v2320_v8, %v174_v21  ;;  %v246_v41 = vadd.f32 %v2320_v8, %v175_v25  ;;  %v2084_v59 = vld [vmem:[%s2968_s0 + $0x68] sm:$0xff]   ;;  %v2089_v21 = vld [vmem:[%s2968_s0 + $0x90] sm:$0xff]  }
  0x18   :  { %v247_v42 = vadd.f32 %v2320_v8, %v176_v26  ;;  %v180_v43 = vmul.f32 %v1830_v27, %v2312_v6  ;;  %v181_v44 = vmul.f32 %v1831_v35, %v2312_v6  ;;  %v248_v45 = vadd.f32 %v2320_v8, %v177_v29  ;;  %v2090_v26 = vld [vmem:[%s2968_s0 + $0x98] sm:$0xff]  }
  0x19   :  { %v249_v46 = vadd.f32 %v2320_v8, %v178_v30  ;;  %v250_v47 = vadd.f32 %v2320_v8, %v179_v31  ;;  %v1834_v48 = vunpack.c.l.bf16 %v2083_v36  ;;  %v362_v49 = vpack.c.bf16 %v304_v33, %v303_v32 }
  0x1a   :  { %v1835_v50 = vunpack.c.h.bf16 %v2083_v36  ;;  %v363_v51 = vpack.c.bf16 %v306_v38, %v305_v37  ;;  %v307_v52 = vmax.f32 %v243_v34, 0.0  ;;  %v308_v53 = vmax.f32 %v244_v39, 0.0  ;;  %v2091_v39 = vld [vmem:[%s2968_s0 + $0xa0] sm:$0xff]  }
  0x1b   :  { %v309_v54 = vmax.f32 %v245_v40, 0.0  ;;  %v310_v55 = vmax.f32 %v246_v41, 0.0  ;;  %v311_v56 = vmax.f32 %v247_v42, 0.0  ;;  %v251_v57 = vadd.f32 %v2320_v8, %v180_v43 }
  0x1c   :  { %v252_v58 = vadd.f32 %v2320_v8, %v181_v44  ;;  %v312_v60 = vmax.f32 %v248_v45, 0.0  ;;  %v313_v61 = vmax.f32 %v249_v46, 0.0  ;;  %v314_v62 = vmax.f32 %v250_v47, 0.0 }
  0x1d   :  { %v182_v63 = vmul.f32 %v1834_v48, %v2312_v6  ;;  %v183_v1 = vmul.f32 %v1835_v50, %v2312_v6  ;;  %v1838_v2 = vunpack.c.l.bf16 %v2084_v59  ;;  %v1839_v3 = vunpack.c.h.bf16 %v2084_v59 }
  0x1e   :  { %2186 = vmatmul.mubr.msk.bf16.gmra.mrb[4].mxu0 %vm432_vm1, %v360_v24  ;;  %v364_v5 = vpack.c.bf16 %v308_v53, %v307_v52  ;;  %v315_v7 = vmax.f32 %v251_v57, 0.0  ;;  %v316_v9 = vmax.f32 %v252_v58, 0.0  ;;  %v1850_v10 = vunpack.c.l.bf16 %v2087_v0  ;;  %v2092_v52 = vld [vmem:[%s2968_s0 + $0xa8] sm:$0xff]  }
  0x1f   :  { %2189 = vmatprep.mubr.msk.bf16.mxu0 %vm432_vm1, %v361_v28  ;;  %v365_v12 = vpack.c.bf16 %v310_v55, %v309_v54  ;;  %v2435_v13 = vpack.c.bf16 %v312_v60, %v311_v56  ;;  %v2437_v14 = vpack.c.bf16 %v314_v62, %v313_v61  ;;  %v2440_v15 = vadd.f32 %v2320_v8, %v182_v63  ;;  %v2093_v61 = vld [vmem:[%s2968_s0 + $0xb0] sm:$0xff]  }
  0x20   :  { %v2448_v17 = vadd.f32 %v2320_v8, %v183_v1  ;;  %v1842_v18 = vunpack.c.l.bf16 %v2428_v4  ;;  %v1843_v19 = vunpack.c.h.bf16 %v2428_v4  ;;  %v1851_v20 = vunpack.c.h.bf16 %v2087_v0 }
  0x21   :  { %v2456_v22 = vmul.f32 %v1838_v2, %v2312_v6  ;;  %v2459_v23 = vmul.f32 %v1839_v3, %v2312_v6  ;;  %v190_v24 = vmul.f32 %v1850_v10, %v2312_v6  ;;  %v1854_v25 = vunpack.c.l.bf16 %v2088_v11 }
  0x22   :  { %v2465_v27 = vpack.c.bf16 %v316_v9, %v315_v7  ;;  %v1846_v28 = vunpack.c.l.bf16 %v2445_v16  ;;  %v191_v29 = vmul.f32 %v1851_v20, %v2312_v6  ;;  %v1855_v30 = vunpack.c.h.bf16 %v2088_v11 }
  0x23   :  { %v317_v31 = vmax.f32 %v2440_v15, 0.0  ;;  %v261_v32 = vadd.f32 %v2320_v8, %v190_v24  ;;  %v192_v33 = vmul.f32 %v1854_v25, %v2312_v6  ;;  %v1858_v34 = vunpack.c.l.bf16 %v2089_v21  ;;  %v2096_v15 = vld [vmem:[%s2968_s0 + $0xc8] sm:$0xff]  }
  0x24   :  { %v262_v35 = vadd.f32 %v2320_v8, %v191_v29  ;;  %v193_v36 = vmul.f32 %v1855_v30, %v2312_v6  ;;  %v1859_v37 = vunpack.c.h.bf16 %v2089_v21  ;;  %v1862_v38 = vunpack.c.l.bf16 %v2090_v26 }
  0x25   :  { %v2478_v40 = vmul.f32 %v1842_v18, %v2312_v6  ;;  %v325_v41 = vmax.f32 %v261_v32, 0.0  ;;  %v263_v42 = vadd.f32 %v2320_v8, %v192_v33  ;;  %v194_v43 = vmul.f32 %v1858_v34, %v2312_v6  ;;  %v2094_v18 = vld [vmem:[%s2968_s0 + $0xb8] sm:$0xff]  }
  0x26   :  { %2190 = vmatmul.mubr.msk.bf16.gmra.mrb[8].mxu0 %vm432_vm1, %v362_v49  ;;  %v326_v44 = vmax.f32 %v262_v35, 0.0  ;;  %v264_v45 = vadd.f32 %v2320_v8, %v193_v36  ;;  %v195_v46 = vmul.f32 %v1859_v37, %v2312_v6  ;;  %v1863_v47 = vunpack.c.h.bf16 %v2090_v26  ;;  %v2095_v26 = vld [vmem:[%s2968_s0 + $0xc0] sm:$0xff]  }
  0x27   :  { %2193 = vmatprep.mubr.msk.bf16.mxu0 %vm432_vm1, %v363_v51  ;;  %v327_v48 = vmax.f32 %v263_v42, 0.0  ;;  %v265_v49 = vadd.f32 %v2320_v8, %v194_v43  ;;  %v196_v50 = vmul.f32 %v1862_v38, %v2312_v6  ;;  %v1866_v51 = vunpack.c.l.bf16 %v2091_v39 }
  0x28   :  { %v373_v53 = vpack.c.bf16 %v326_v44, %v325_v41  ;;  %v328_v54 = vmax.f32 %v264_v45, 0.0  ;;  %v266_v55 = vadd.f32 %v2320_v8, %v195_v46  ;;  %v197_v56 = vmul.f32 %v1863_v47, %v2312_v6 }
  0x29   :  { %v329_v57 = vmax.f32 %v265_v49, 0.0  ;;  %v267_v58 = vadd.f32 %v2320_v8, %v196_v50  ;;  %v1867_v59 = vunpack.c.h.bf16 %v2091_v39  ;;  %v198_v60 = vmul.f32 %v1866_v51, %v2312_v6 }
  0x2a   :  { %2213 = vmatprep.mubr.msk.bf16.mxu1 %vm432_vm1, %v373_v53  ;;  %v374_v62 = vpack.c.bf16 %v328_v54, %v327_v48  ;;  %v330_v63 = vmax.f32 %v266_v55, 0.0  ;;  %v268_v0 = vadd.f32 %v2320_v8, %v197_v56  ;;  %v1870_v1 = vunpack.c.l.bf16 %v2092_v52  ;;  %v2097_v55 = vld [vmem:[%s2968_s0 + $0xd0] sm:$0xff]  }
  0x2b   :  { %v331_v2 = vmax.f32 %v267_v58, 0.0  ;;  %v199_v3 = vmul.f32 %v1867_v59, %v2312_v6  ;;  %v1871_v7 = vunpack.c.h.bf16 %v2092_v52  ;;  %v1875_v25 = vunpack.c.h.bf16 %v2093_v61 }
  0x2c   :  { %2214 = vmatmul.mubr.msk.bf16.vlgmr.msra.gmra.mrb[0].mxu1 %vm432_vm1, %v374_v62  ;;  %v375_v9 = vpack.c.bf16 %v330_v63, %v329_v57  ;;  %v332_v10 = vmax.f32 %v268_v0, 0.0  ;;  %v200_v11 = vmul.f32 %v1870_v1, %v2312_v6  ;;  %v318_v29 = vmax.f32 %v2448_v17, 0.0 }
  0x2d   :  { %v270_v20 = vadd.f32 %v2320_v8, %v199_v3  ;;  %v201_v24 = vmul.f32 %v1871_v7, %v2312_v6  ;;  %v187_v30 = vmul.f32 %v1843_v19, %v2312_v6  ;;  %v1878_v36 = vunpack.c.l.bf16 %v2094_v18 }
  0x2e   :  { %2194 = vmatmul.mubr.msk.bf16.gmra.mrb[12].mxu0 %vm432_vm1, %v364_v5  ;;  %v269_v5 = vadd.f32 %v2320_v8, %v198_v60  ;;  %2217 = vmatprep.mubr.msk.bf16.mxu1 %vm432_vm1, %v375_v9  ;;  %v271_v32 = vadd.f32 %v2320_v8, %v200_v11  ;;  %v255_v17 = vadd.f32 %v2320_v8, %v2456_v22  ;;  %v1879_v19 = vunpack.c.h.bf16 %v2094_v18 }
  0x2f   :  { %2197 = vmatprep.mubr.msk.bf16.mxu0 %vm432_vm1, %v365_v12  ;;  %v1874_v12 = vunpack.c.l.bf16 %v2093_v61  ;;  %v334_v34 = vmax.f32 %v270_v20, 0.0  ;;  %v272_v35 = vadd.f32 %v2320_v8, %v201_v24  ;;  %v376_v4 = vpack.c.bf16 %v332_v10, %v331_v2 }
  0x30   :  { %v333_v21 = vmax.f32 %v269_v5, 0.0  ;;  %v1882_v37 = vunpack.c.l.bf16 %v2095_v26  ;;  %v256_v38 = vadd.f32 %v2320_v8, %v2459_v23  ;;  %v257_v42 = vadd.f32 %v2320_v8, %v2478_v40 }
  0x31   :  { %v202_v33 = vmul.f32 %v1874_v12, %v2312_v6  ;;  %v258_v43 = vadd.f32 %v2320_v8, %v187_v30  ;;  %v1847_v44 = vunpack.c.h.bf16 %v2445_v16  ;;  %v1883_v45 = vunpack.c.h.bf16 %v2095_v26  ;;  %v2098_v12 = vld [vmem:[%s2968_s0 + $0xd8] sm:$0xff]  }
  0x32   :  { %v377_v39 = vpack.c.bf16 %v334_v34, %v333_v21  ;;  %v369_v22 = vpack.c.bf16 %v318_v29, %v317_v31  ;;  %v335_v46 = vmax.f32 %v271_v32, 0.0  ;;  %v336_v47 = vmax.f32 %v272_v35, 0.0 }
  0x33   :  { %v273_v41 = vadd.f32 %v2320_v8, %v202_v33  ;;  %v204_v23 = vmul.f32 %v1878_v36, %v2312_v6  ;;  %v205_v48 = vmul.f32 %v1879_v19, %v2312_v6  ;;  %v206_v49 = vmul.f32 %v1882_v37, %v2312_v6 }
  0x34   :  { %2218 = vmatmul.mubr.msk.bf16.gmra.mrb[4].mxu1 %vm432_vm1, %v376_v4  ;;  %v207_v51 = vmul.f32 %v1883_v45, %v2312_v6  ;;  %v319_v31 = vmax.f32 %v255_v17, 0.0  ;;  %v320_v52 = vmax.f32 %v256_v38, 0.0  ;;  %v188_v53 = vmul.f32 %v1846_v28, %v2312_v6 }
  0x35   :  { %2221 = vmatprep.mubr.msk.bf16.mxu1 %vm432_vm1, %v377_v39  ;;  %v337_v40 = vmax.f32 %v273_v41, 0.0  ;;  %v189_v54 = vmul.f32 %v1847_v44, %v2312_v6  ;;  %v321_v56 = vmax.f32 %v257_v42, 0.0  ;;  %v322_v57 = vmax.f32 %v258_v43, 0.0 }
  0x36   :  { %2198 = vmatmul.mubr.msk.bf16.gmra.mrb[16].mxu0 %vm432_vm1, %v2435_v13  ;;  %v203_v13 = vmul.f32 %v1875_v25, %v2312_v6  ;;  %v378_v58 = vpack.c.bf16 %v336_v47, %v335_v46  ;;  %v275_v59 = vadd.f32 %v2320_v8, %v204_v23  ;;  %v277_v60 = vadd.f32 %v2320_v8, %v206_v49  ;;  %v2099_v25 = vld [vmem:[%s2968_s0 + $0xe0] sm:$0xff]   ;;  %v2101_v46 = vld [vmem:[%s2968_s0 + $0xf0] sm:$0xff]  }
  0x37   :  { %2201 = vmatprep.mubr.msk.bf16.mxu0 %vm432_vm1, %v2437_v14  ;;  %v1886_v61 = vunpack.c.l.bf16 %v2096_v15  ;;  %v1887_v16 = vunpack.c.h.bf16 %v2096_v15  ;;  %v278_v62 = vadd.f32 %v2320_v8, %v207_v51  ;;  %v1890_v63 = vunpack.c.l.bf16 %v2097_v55 }
  0x38   :  { %v274_v14 = vadd.f32 %v2320_v8, %v203_v13  ;;  %v1891_v0 = vunpack.c.h.bf16 %v2097_v55  ;;  %v370_v1 = vpack.c.bf16 %v320_v52, %v319_v31  ;;  %v259_v2 = vadd.f32 %v2320_v8, %v188_v53 }
  0x39   :  { %v260_v3 = vadd.f32 %v2320_v8, %v189_v54  ;;  %v371_v5 = vpack.c.bf16 %v322_v57, %v321_v56  ;;  %v339_v7 = vmax.f32 %v275_v59, 0.0  ;;  %v208_v10 = vmul.f32 %v1886_v61, %v2312_v6 }
  0x3a   :  { %v338_v50 = vmax.f32 %v274_v14, 0.0  ;;  %v209_v11 = vmul.f32 %v1887_v16, %v2312_v6  ;;  %v341_v18 = vmax.f32 %v277_v60, 0.0  ;;  %v342_v20 = vmax.f32 %v278_v62, 0.0  ;;  %v2102_v60 = vld [vmem:[%s2968_s0 + $0xf8] sm:$0xff]  }
  0x3b   :  { %v210_v21 = vmul.f32 %v1890_v63, %v2312_v6  ;;  %v211_v24 = vmul.f32 %v1891_v0, %v2312_v6  ;;  %v323_v26 = vmax.f32 %v259_v2, 0.0  ;;  %v324_v29 = vmax.f32 %v260_v3, 0.0 }
  0x3c   :  { %v379_v28 = vpack.c.bf16 %v338_v50, %v337_v40  ;;  %2222 = vmatmul.mubr.msk.bf16.gmra.mrb[8].mxu1 %vm432_vm1, %v378_v58  ;;  %v1894_v30 = vunpack.c.l.bf16 %v2098_v12  ;;  %v1895_v32 = vunpack.c.h.bf16 %v2098_v12  ;;  %v279_v34 = vadd.f32 %v2320_v8, %v208_v10 }
  0x3d   :  { %v280_v35 = vadd.f32 %v2320_v8, %v209_v11  ;;  %v1898_v13 = vunpack.c.l.bf16 %v2099_v25  ;;  %v381_v36 = vpack.c.bf16 %v342_v20, %v341_v18  ;;  %v281_v17 = vadd.f32 %v2320_v8, %v210_v21 }
  0x3e   :  { %2202 = vmatmul.mubr.msk.bf16.gmra.mrb[20].mxu0 %vm432_vm1, %v2465_v27  ;;  %v276_v27 = vadd.f32 %v2320_v8, %v205_v48  ;;  %2225 = vmatprep.mubr.msk.bf16.mxu1 %vm432_vm1, %v379_v28  ;;  %v282_v4 = vadd.f32 %v2320_v8, %v211_v24  ;;  %v1899_v19 = vunpack.c.h.bf16 %v2099_v25  ;;  %v372_v37 = vpack.c.bf16 %v324_v29, %v323_v26 }
  0x3f   :  { %2205 = vmatprep.mubr.msk.bf16.mxu0 %vm432_vm1, %v369_v22  ;;  %v212_v38 = vmul.f32 %v1894_v30, %v2312_v6  ;;  %v213_v39 = vmul.f32 %v1895_v32, %v2312_v6  ;;  %v343_v41 = vmax.f32 %v279_v34, 0.0  ;;  %v344_v14 = vmax.f32 %v280_v35, 0.0  ;;  %v2100_v22 = vld [vmem:[%s2968_s0 + $0xe8] sm:$0xff]  }
  0x40   :  { %v340_v9 = vmax.f32 %v276_v27, 0.0  ;;  %v214_v42 = vmul.f32 %v1898_v13, %v2312_v6  ;;  %v345_v43 = vmax.f32 %v281_v17, 0.0  ;;  %v346_v44 = vmax.f32 %v282_v4, 0.0 }
  0x41   :  { %v215_v45 = vmul.f32 %v1899_v19, %v2312_v6  ;;  %v283_v47 = vadd.f32 %v2320_v8, %v212_v38  ;;  %v284_v23 = vadd.f32 %v2320_v8, %v213_v39  ;;  %v382_v48 = vpack.c.bf16 %v344_v14, %v343_v41 }
  0x42   :  { %v380_v33 = vpack.c.bf16 %v340_v9, %v339_v7  ;;  %v285_v49 = vadd.f32 %v2320_v8, %v214_v42  ;;  %v1902_v40 = vunpack.c.l.bf16 %v2100_v22  ;;  %v1903_v50 = vunpack.c.h.bf16 %v2100_v22 }
  0x43   :  { %v383_v51 = vpack.c.bf16 %v346_v44, %v345_v43  ;;  %v286_v15 = vadd.f32 %v2320_v8, %v215_v45  ;;  %v1906_v31 = vunpack.c.l.bf16 %v2101_v46  ;;  %v1907_v52 = vunpack.c.h.bf16 %v2101_v46 }
  0x44   :  { %2226 = vmatmul.mubr.msk.bf16.gmra.mrb[12].mxu1 %vm432_vm1, %v380_v33  ;;  %v347_v53 = vmax.f32 %v283_v47, 0.0  ;;  %v348_v54 = vmax.f32 %v284_v23, 0.0  ;;  %v216_v55 = vmul.f32 %v1902_v40, %v2312_v6  ;;  %v217_v56 = vmul.f32 %v1903_v50, %v2312_v6 }
  0x45   :  { %2229 = vmatprep.mubr.msk.bf16.mxu1 %vm432_vm1, %v381_v36  ;;  %v349_v57 = vmax.f32 %v285_v49, 0.0  ;;  %v350_v58 = vmax.f32 %v286_v15, 0.0  ;;  %v218_v59 = vmul.f32 %v1906_v31, %v2312_v6  ;;  %v219_v27 = vmul.f32 %v1907_v52, %v2312_v6 }
  0x46   :  { %2206 = vmatmul.mubr.msk.bf16.gmra.mrb[24].mxu0 %vm432_vm1, %v370_v1  ;;  %v384_v61 = vpack.c.bf16 %v348_v54, %v347_v53  ;;  %v287_v16 = vadd.f32 %v2320_v8, %v216_v55  ;;  %v288_v28 = vadd.f32 %v2320_v8, %v217_v56  ;;  %v1910_v62 = vunpack.c.l.bf16 %v2102_v60 }
  0x47   :  { %2209 = vmatprep.mubr.msk.bf16.mxu0 %vm432_vm1, %v371_v5  ;;  %v1911_v63 = vunpack.c.h.bf16 %v2102_v60  ;;  %v385_v0 = vpack.c.bf16 %v350_v58, %v349_v57  ;;  %v289_v1 = vadd.f32 %v2320_v8, %v218_v59  ;;  %v290_v2 = vadd.f32 %v2320_v8, %v219_v27 }
  0x48   :  { %v351_v3 = vmax.f32 %v287_v16, 0.0  ;;  %v352_v5 = vmax.f32 %v288_v28, 0.0  ;;  %v220_v7 = vmul.f32 %v1910_v62, %v2312_v6 }
  0x49   :  { %v221_v9 = vmul.f32 %v1911_v63, %v2312_v6  ;;  %v353_v10 = vmax.f32 %v289_v1, 0.0  ;;  %v354_v11 = vmax.f32 %v290_v2, 0.0  ;;  %v2622_v6 = vld [vmem:[%s2971_s2] ss:$0 sm:$0xff] }
  0x4a   :  { %v386_v12 = vpack.c.bf16 %v352_v5, %v351_v3  ;;  %v291_v18 = vadd.f32 %v2320_v8, %v220_v7 }
  0x4b   :  { %v292_v20 = vadd.f32 %v2320_v8, %v221_v9  ;;  %v387_v21 = vpack.c.bf16 %v354_v11, %v353_v10 }
  0x4c   :  { %2230 = vmatmul.mubr.msk.bf16.gmra.mrb[16].mxu1 %vm432_vm1, %v382_v48  ;;  %v355_v24 = vmax.f32 %v291_v18, 0.0 }
  0x4d   :  { %2233 = vmatprep.mubr.msk.bf16.mxu1 %vm432_vm1, %v383_v51  ;;  %v356_v25 = vmax.f32 %v292_v20, 0.0 }
  0x4e   :  { %2210 = vmatmul.mubr.msk.bf16.gmra.mrb[28].mxu0 %vm432_vm1, %v372_v37 }
  0x4f   :  { %v388_v26 = vpack.c.bf16 %v356_v25, %v355_v24 }
  0x54   :  { %2234 = vmatmul.mubr.msk.bf16.gmra.mrb[20].mxu1 %vm432_vm1, %v384_v61 }
  0x55   :  { %2237 = vmatprep.mubr.msk.bf16.mxu1 %vm432_vm1, %v385_v0 }
  0x5c   :  { %2238 = vmatmul.mubr.msk.bf16.gmra.mrb[24].mxu1 %vm432_vm1, %v386_v12 }
  0x5d   :  { %2241 = vmatprep.mubr.msk.bf16.mxu1 %vm432_vm1, %v387_v21 }
  0x64   :  { %2242 = vmatmul.mubr.msk.bf16.gmra.mrb[28].mxu1 %vm432_vm1, %v388_v26 }
  0xe9   :  { %v2183_v29 = vpop.f32.mrb[0].mxu0 }
  0xea   :  { %v567_v30 = vpop.f32.mrb[1].mxu0  ;;  %v576_v33 = vadd.f32 %v2183_v29, %v2622_v6 }
  0xeb   :  { %v568_v32 = vadd.f32 %v2622_v6, %v567_v30  ;;  %v2184_v8 = vpop.f32.mrb[2].mxu0 }
  0xec   :  { %v579_v34 = vadd.f32 %v2184_v8, %v2622_v6  ;;  %v570_v35 = vpop.f32.mrb[3].mxu0  ;;  %v1472_v38 = vmul.f32 %v576_v33, %v576_v33 }
  0xed   :  { %v571_v13 = vadd.f32 %v2622_v6, %v570_v35  ;;  %v1470_v17 = vmul.f32 %v568_v32, %v568_v32 }
  0xee   :  { %v1920_v36 = vpack.c.bf16 %v579_v34, %v576_v33  ;;  %v1473_v43 = vmul.f32 %v579_v34, %v579_v34 }
  0xef   :  { %v1915_v4 = vpack.c.bf16 %v571_v13, %v568_v32  ;;  %v1401_v19 = vadd.f32 %v571_v13, %v568_v32  ;;  %v1471_v37 = vmul.f32 %v571_v13, %v571_v13 }
  0xf0   :  { %2103 = vst [vmem:[%s2972_s5 + $0x8] sm:$0xff] %v1920_v36  }
  0xf1   :  { %1916 = vst [vmem:[%s2972_s5] sm:$0xff] %v1915_v4   ;;  %v1402_v39 = vadd.f32 %v1401_v19, %v576_v33  ;;  %v1534_v41 = vadd.f32 %v1471_v37, %v1470_v17  ;;  %v2187_v14 = vpop.f32.mrb[4].mxu0 }
  0xf2   :  { %v583_v42 = vpop.f32.mrb[5].mxu0  ;;  %v592_v47 = vadd.f32 %v2187_v14, %v2622_v6 }
  0xf3   :  { %v1535_v44 = vadd.f32 %v1534_v41, %v1472_v38  ;;  %v584_v45 = vadd.f32 %v2622_v6, %v583_v42  ;;  %v1403_v22 = vadd.f32 %v1402_v39, %v579_v34  ;;  %v2188_v46 = vpop.f32.mrb[6].mxu0 }
  0xf4   :  { %v595_v23 = vadd.f32 %v2188_v46, %v2622_v6  ;;  %v586_v48 = vpop.f32.mrb[7].mxu0  ;;  %v1476_v55 = vmul.f32 %v592_v47, %v592_v47 }
  0xf5   :  { %v1404_v49 = vadd.f32 %v1403_v22, %v584_v45  ;;  %v1474_v40 = vmul.f32 %v584_v45, %v584_v45  ;;  %v1536_v50 = vadd.f32 %v1535_v44, %v1473_v43  ;;  %v587_v51 = vadd.f32 %v2622_v6, %v586_v48 }
  0xf6   :  { %v1930_v15 = vpack.c.bf16 %v595_v23, %v592_v47  ;;  %v1477_v27 = vmul.f32 %v595_v23, %v595_v23 }
  0xf7   :  { %v1537_v31 = vadd.f32 %v1536_v50, %v1474_v40  ;;  %v1925_v52 = vpack.c.bf16 %v587_v51, %v584_v45  ;;  %v1405_v53 = vadd.f32 %v1404_v49, %v587_v51  ;;  %v1475_v54 = vmul.f32 %v587_v51, %v587_v51 }
  0xf8   :  { %2105 = vst [vmem:[%s2972_s5 + $0x18] sm:$0xff] %v1930_v15  }
  0xf9   :  { %2104 = vst [vmem:[%s2972_s5 + $0x10] sm:$0xff] %v1925_v52   ;;  %v1406_v56 = vadd.f32 %v1405_v53, %v592_v47  ;;  %v1538_v57 = vadd.f32 %v1537_v31, %v1475_v54  ;;  %v2191_v58 = vpop.f32.mrb[8].mxu0 }
  0xfa   :  { %v599_v59 = vpop.f32.mrb[9].mxu0  ;;  %v608_v62 = vadd.f32 %v2191_v58, %v2622_v6 }
  0xfb   :  { %v1539_v60 = vadd.f32 %v1538_v57, %v1476_v55  ;;  %v600_v61 = vadd.f32 %v2622_v6, %v599_v59  ;;  %v1407_v16 = vadd.f32 %v1406_v56, %v595_v23  ;;  %v2192_v28 = vpop.f32.mrb[10].mxu0 }
  0xfc   :  { %v611_v63 = vadd.f32 %v2192_v28, %v2622_v6  ;;  %v602_v0 = vpop.f32.mrb[11].mxu0  ;;  %v1480_v18 = vmul.f32 %v608_v62, %v608_v62 }
  0xfd   :  { %v1408_v1 = vadd.f32 %v1407_v16, %v600_v61  ;;  %v1478_v2 = vmul.f32 %v600_v61, %v600_v61  ;;  %v1540_v3 = vadd.f32 %v1539_v60, %v1477_v27  ;;  %v603_v5 = vadd.f32 %v2622_v6, %v602_v0 }
  0xfe   :  { %v1940_v7 = vpack.c.bf16 %v611_v63, %v608_v62  ;;  %v1481_v26 = vmul.f32 %v611_v63, %v611_v63 }
  0xff   :  { %v1541_v9 = vadd.f32 %v1540_v3, %v1478_v2  ;;  %v1935_v10 = vpack.c.bf16 %v603_v5, %v600_v61  ;;  %v1409_v11 = vadd.f32 %v1408_v1, %v603_v5  ;;  %v1479_v12 = vmul.f32 %v603_v5, %v603_v5  ;;  %v2215_v14 = vpop.f32.mrb[0].mxu1 }
 0x100   :  { %2107 = vst [vmem:[%s2972_s5 + $0x28] sm:$0xff] %v1940_v7   ;;  %v2662_v42 = vadd.f32 %v2215_v14, %v2622_v6  ;;  %v695_v43 = vpop.f32.mrb[1].mxu1 }
 0x101   :  { %2106 = vst [vmem:[%s2972_s5 + $0x20] sm:$0xff] %v1935_v10   ;;  %v1410_v20 = vadd.f32 %v1409_v11, %v608_v62  ;;  %v1542_v21 = vadd.f32 %v1541_v9, %v1479_v12  ;;  %v2195_v24 = vpop.f32.mrb[12].mxu0  ;;  %v2216_v47 = vpop.f32.mrb[2].mxu1  ;;  %v2674_v55 = vadd.f32 %v2622_v6, %v695_v43 }
 0x102   :  { %v615_v25 = vpop.f32.mrb[13].mxu0  ;;  %v624_v33 = vadd.f32 %v2195_v24, %v2622_v6  ;;  %v2668_v48 = vadd.f32 %v2216_v47, %v2622_v6  ;;  %v698_v49 = vpop.f32.mrb[3].mxu1 }
 0x103   :  { %v1543_v29 = vadd.f32 %v1542_v21, %v1480_v18  ;;  %v616_v30 = vadd.f32 %v2622_v6, %v615_v25  ;;  %v1411_v32 = vadd.f32 %v1410_v20, %v611_v63  ;;  %v2196_v8 = vpop.f32.mrb[14].mxu0  ;;  %v2683_v61 = vadd.f32 %v2622_v6, %v698_v49 }
 0x104   :  { %v627_v34 = vadd.f32 %v2196_v8, %v2622_v6  ;;  %v618_v35 = vpop.f32.mrb[15].mxu0  ;;  %v1484_v44 = vmul.f32 %v624_v33, %v624_v33  ;;  %v2000_v56 = vpack.c.bf16 %v2668_v48, %v2662_v42 }
 0x105   :  { %v1412_v13 = vadd.f32 %v1411_v32, %v616_v30  ;;  %v1482_v36 = vmul.f32 %v616_v30, %v616_v30  ;;  %v1544_v17 = vadd.f32 %v1543_v29, %v1481_v26  ;;  %v619_v4 = vadd.f32 %v2622_v6, %v618_v35 }
 0x106   :  { %v1950_v19 = vpack.c.bf16 %v627_v34, %v624_v33  ;;  %v1485_v40 = vmul.f32 %v627_v34, %v627_v34  ;;  %2119 = vst [vmem:[%s2972_s5 + $0x88] sm:$0xff] %v2000_v56   ;;  %v1995_v1 = vpack.c.bf16 %v2683_v61, %v2674_v55 }
 0x107   :  { %v1545_v37 = vadd.f32 %v1544_v17, %v1482_v36  ;;  %v1945_v38 = vpack.c.bf16 %v619_v4, %v616_v30  ;;  %v1413_v39 = vadd.f32 %v1412_v13, %v619_v4  ;;  %v1483_v41 = vmul.f32 %v619_v4, %v619_v4  ;;  %v2219_v0 = vpop.f32.mrb[4].mxu1 }
 0x108   :  { %2109 = vst [vmem:[%s2972_s5 + $0x38] sm:$0xff] %v1950_v19   ;;  %v2691_v2 = vadd.f32 %v2219_v0, %v2622_v6  ;;  %v711_v3 = vpop.f32.mrb[5].mxu1  ;;  %2118 = vst [vmem:[%s2972_s5 + $0x80] sm:$0xff] %v1995_v1  }
 0x109   :  { %2108 = vst [vmem:[%s2972_s5 + $0x30] sm:$0xff] %v1945_v38   ;;  %v1414_v45 = vadd.f32 %v1413_v39, %v624_v33  ;;  %v1546_v22 = vadd.f32 %v1545_v37, %v1483_v41  ;;  %v2199_v46 = vpop.f32.mrb[16].mxu0  ;;  %v2220_v11 = vpop.f32.mrb[6].mxu1  ;;  %v2706_v33 = vadd.f32 %v2622_v6, %v711_v3 }
 0x10a   :  { %v631_v23 = vpop.f32.mrb[17].mxu0  ;;  %v640_v52 = vadd.f32 %v2199_v46, %v2622_v6  ;;  %v2700_v18 = vadd.f32 %v2220_v11, %v2622_v6  ;;  %v714_v20 = vpop.f32.mrb[7].mxu1 }
 0x10b   :  { %v1547_v50 = vadd.f32 %v1546_v22, %v1484_v44  ;;  %v632_v51 = vadd.f32 %v2622_v6, %v631_v23  ;;  %v1415_v15 = vadd.f32 %v1414_v45, %v627_v34  ;;  %v2200_v31 = vpop.f32.mrb[18].mxu0  ;;  %v2715_v19 = vadd.f32 %v2622_v6, %v714_v20 }
 0x10c   :  { %v643_v53 = vadd.f32 %v2200_v31, %v2622_v6  ;;  %v634_v54 = vpop.f32.mrb[19].mxu0  ;;  %v1488_v5 = vmul.f32 %v640_v52, %v640_v52  ;;  %v2010_v34 = vpack.c.bf16 %v2700_v18, %v2691_v2 }
 0x10d   :  { %v1416_v57 = vadd.f32 %v1415_v15, %v632_v51  ;;  %v1486_v58 = vmul.f32 %v632_v51, %v632_v51  ;;  %v1548_v59 = vadd.f32 %v1547_v50, %v1485_v40  ;;  %v635_v27 = vadd.f32 %v2622_v6, %v634_v54 }
 0x10e   :  { %v1960_v60 = vpack.c.bf16 %v643_v53, %v640_v52  ;;  %v1489_v21 = vmul.f32 %v643_v53, %v643_v53  ;;  %2121 = vst [vmem:[%s2972_s5 + $0x98] sm:$0xff] %v2010_v34   ;;  %v2005_v43 = vpack.c.bf16 %v2715_v19, %v2706_v33 }
 0x10f   :  { %v1549_v16 = vadd.f32 %v1548_v59, %v1486_v58  ;;  %v1955_v28 = vpack.c.bf16 %v635_v27, %v632_v51  ;;  %v1417_v62 = vadd.f32 %v1416_v57, %v635_v27  ;;  %v1487_v63 = vmul.f32 %v635_v27, %v635_v27  ;;  %v2223_v14 = vpop.f32.mrb[8].mxu1 }
 0x110   :  { %2111 = vst [vmem:[%s2972_s5 + $0x48] sm:$0xff] %v1960_v60   ;;  %v2723_v44 = vadd.f32 %v2223_v14, %v2622_v6  ;;  %v727_v45 = vpop.f32.mrb[9].mxu1  ;;  %2120 = vst [vmem:[%s2972_s5 + $0x90] sm:$0xff] %v2005_v43  }
 0x111   :  { %2110 = vst [vmem:[%s2972_s5 + $0x40] sm:$0xff] %v1955_v28   ;;  %v1418_v7 = vadd.f32 %v1417_v62, %v640_v52  ;;  %v1550_v9 = vadd.f32 %v1549_v16, %v1487_v63  ;;  %v2203_v10 = vpop.f32.mrb[20].mxu0  ;;  %v2224_v49 = vpop.f32.mrb[10].mxu1  ;;  %v2738_v59 = vadd.f32 %v2622_v6, %v727_v45 }
 0x112   :  { %v647_v12 = vpop.f32.mrb[21].mxu0  ;;  %v656_v30 = vadd.f32 %v2203_v10, %v2622_v6  ;;  %v2732_v50 = vadd.f32 %v2224_v49, %v2622_v6  ;;  %v730_v51 = vpop.f32.mrb[11].mxu1 }
 0x113   :  { %v1551_v24 = vadd.f32 %v1550_v9, %v1488_v5  ;;  %v648_v25 = vadd.f32 %v2622_v6, %v647_v12  ;;  %v1419_v26 = vadd.f32 %v1418_v7, %v643_v53  ;;  %v2204_v29 = vpop.f32.mrb[22].mxu0  ;;  %v2747_v0 = vadd.f32 %v2622_v6, %v730_v51 }
 0x114   :  { %v659_v32 = vadd.f32 %v2204_v29, %v2622_v6  ;;  %v650_v8 = vpop.f32.mrb[23].mxu0  ;;  %v1492_v22 = vmul.f32 %v656_v30, %v656_v30  ;;  %v2020_v27 = vpack.c.bf16 %v2732_v50, %v2723_v44 }
 0x115   :  { %v1420_v35 = vadd.f32 %v1419_v26, %v648_v25  ;;  %v1490_v13 = vmul.f32 %v648_v25, %v648_v25  ;;  %v1552_v36 = vadd.f32 %v1551_v24, %v1489_v21  ;;  %v651_v17 = vadd.f32 %v2622_v6, %v650_v8 }
 0x116   :  { %v1970_v4 = vpack.c.bf16 %v659_v32, %v656_v30  ;;  %v1493_v15 = vmul.f32 %v659_v32, %v659_v32  ;;  %2123 = vst [vmem:[%s2972_s5 + $0xa8] sm:$0xff] %v2020_v27   ;;  %v2015_v10 = vpack.c.bf16 %v2747_v0, %v2738_v59  ;;  %v1502_v27 = vmul.f32 %v2674_v55, %v2674_v55 }
 0x117   :  { %v1553_v37 = vadd.f32 %v1552_v36, %v1490_v13  ;;  %v1965_v38 = vpack.c.bf16 %v651_v17, %v648_v25  ;;  %v1421_v39 = vadd.f32 %v1420_v35, %v651_v17  ;;  %v1491_v41 = vmul.f32 %v651_v17, %v651_v17  ;;  %v2227_v9 = vpop.f32.mrb[12].mxu1 }
 0x118   :  { %2113 = vst [vmem:[%s2972_s5 + $0x58] sm:$0xff] %v1970_v4   ;;  %v2755_v11 = vadd.f32 %v2227_v9, %v2622_v6  ;;  %v743_v12 = vpop.f32.mrb[13].mxu1  ;;  %2122 = vst [vmem:[%s2972_s5 + $0xa0] sm:$0xff] %v2015_v10  }
 0x119   :  { %2112 = vst [vmem:[%s2972_s5 + $0x50] sm:$0xff] %v1965_v38   ;;  %v1422_v46 = vadd.f32 %v1421_v39, %v656_v30  ;;  %v1554_v47 = vadd.f32 %v1553_v37, %v1491_v41  ;;  %v2207_v23 = vpop.f32.mrb[24].mxu0  ;;  %v2228_v26 = vpop.f32.mrb[14].mxu1  ;;  %v2770_v38 = vadd.f32 %v2622_v6, %v743_v12 }
 0x11a   :  { %v663_v40 = vpop.f32.mrb[25].mxu0  ;;  %v672_v56 = vadd.f32 %v2207_v23, %v2622_v6  ;;  %v2764_v30 = vadd.f32 %v2228_v26, %v2622_v6 }
 0x11b   :  { %v1555_v31 = vadd.f32 %v1554_v47, %v1492_v22  ;;  %v664_v52 = vadd.f32 %v2622_v6, %v663_v40  ;;  %v1423_v53 = vadd.f32 %v1422_v46, %v659_v32  ;;  %v2208_v54 = vpop.f32.mrb[26].mxu0  ;;  %v746_v32 = vpop.f32.mrb[15].mxu1 }
 0x11c   :  { %v675_v57 = vadd.f32 %v2208_v54, %v2622_v6  ;;  %v666_v58 = vpop.f32.mrb[27].mxu0  ;;  %v1496_v20 = vmul.f32 %v672_v56, %v672_v56  ;;  %v2030_v39 = vpack.c.bf16 %v2764_v30, %v2755_v11  ;;  %v2779_v46 = vadd.f32 %v2622_v6, %v746_v32 }
 0x11d   :  { %v1424_v60 = vadd.f32 %v1423_v53, %v664_v52  ;;  %v1494_v16 = vmul.f32 %v664_v52, %v664_v52  ;;  %v1556_v28 = vadd.f32 %v1555_v31, %v1493_v15  ;;  %v667_v62 = vadd.f32 %v2622_v6, %v666_v58 }
 0x11e   :  { %v1980_v63 = vpack.c.bf16 %v675_v57, %v672_v56  ;;  %v1497_v8 = vmul.f32 %v675_v57, %v675_v57  ;;  %2125 = vst [vmem:[%s2972_s5 + $0xb8] sm:$0xff] %v2030_v39   ;;  %v2025_v15 = vpack.c.bf16 %v2779_v46, %v2770_v38 }
 0x11f   :  { %v1557_v1 = vadd.f32 %v1556_v28, %v1494_v16  ;;  %v1975_v3 = vpack.c.bf16 %v667_v62, %v664_v52  ;;  %v1425_v5 = vadd.f32 %v1424_v60, %v667_v62  ;;  %v1495_v7 = vmul.f32 %v667_v62, %v667_v62  ;;  %v2231_v51 = vpop.f32.mrb[16].mxu1 }
 0x120   :  { %2115 = vst [vmem:[%s2972_s5 + $0x68] sm:$0xff] %v1980_v63   ;;  %v2787_v31 = vadd.f32 %v2231_v51, %v2622_v6  ;;  %v759_v52 = vpop.f32.mrb[17].mxu1  ;;  %2124 = vst [vmem:[%s2972_s5 + $0xb0] sm:$0xff] %v2025_v15  }
 0x121   :  { %2114 = vst [vmem:[%s2972_s5 + $0x60] sm:$0xff] %v1975_v3   ;;  %v1426_v21 = vadd.f32 %v1425_v5, %v672_v56  ;;  %v1558_v24 = vadd.f32 %v1557_v1, %v1495_v7  ;;  %v2211_v25 = vpop.f32.mrb[28].mxu0  ;;  %v2232_v58 = vpop.f32.mrb[18].mxu1 }
 0x122   :  { %v679_v29 = vpop.f32.mrb[29].mxu0  ;;  %v688_v17 = vadd.f32 %v2211_v25, %v2622_v6  ;;  %v2801_v60 = vadd.f32 %v2232_v58, %v2622_v6  ;;  %v762_v16 = vpop.f32.mrb[19].mxu1  ;;  %v1504_v25 = vmul.f32 %v2662_v42, %v2662_v42 }
 0x123   :  { %v1559_v34 = vadd.f32 %v1558_v24, %v1496_v20  ;;  %v680_v35 = vadd.f32 %v2622_v6, %v679_v29  ;;  %v1427_v13 = vadd.f32 %v1426_v21, %v675_v57  ;;  %v2212_v36 = vpop.f32.mrb[30].mxu0  ;;  %v2793_v57 = vadd.f32 %v2622_v6, %v759_v52 }
 0x124   :  { %v691_v4 = vadd.f32 %v2212_v36, %v2622_v6  ;;  %v682_v37 = vpop.f32.mrb[31].mxu0  ;;  %v1500_v53 = vmul.f32 %v688_v17, %v688_v17  ;;  %v2804_v1 = vadd.f32 %v2622_v6, %v762_v16  ;;  %v2040_v3 = vpack.c.bf16 %v2801_v60, %v2787_v31 }
 0x125   :  { %v1428_v41 = vadd.f32 %v1427_v13, %v680_v35  ;;  %v1498_v14 = vmul.f32 %v680_v35, %v680_v35  ;;  %v1560_v43 = vadd.f32 %v1559_v34, %v1497_v8  ;;  %v683_v45 = vadd.f32 %v2622_v6, %v682_v37 }
 0x126   :  { %v1990_v22 = vpack.c.bf16 %v691_v4, %v688_v17  ;;  %v1501_v28 = vmul.f32 %v691_v4, %v691_v4  ;;  %v2035_v9 = vpack.c.bf16 %v2804_v1, %v2793_v57  ;;  %2127 = vst [vmem:[%s2972_s5 + $0xc8] sm:$0xff] %v2040_v3   ;;  %v1503_v20 = vmul.f32 %v2683_v61, %v2683_v61 }
 0x127   :  { %v1561_v47 = vadd.f32 %v1560_v43, %v1498_v14  ;;  %v1985_v23 = vpack.c.bf16 %v683_v45, %v680_v35  ;;  %v1429_v49 = vadd.f32 %v1428_v41, %v683_v45  ;;  %v1499_v40 = vmul.f32 %v683_v45, %v683_v45  ;;  %v2235_v21 = vpop.f32.mrb[20].mxu1 }
 0x128   :  { %2117 = vst [vmem:[%s2972_s5 + $0x78] sm:$0xff] %v1990_v22   ;;  %2126 = vst [vmem:[%s2972_s5 + $0xc0] sm:$0xff] %v2035_v9   ;;  %v775_v24 = vpop.f32.mrb[21].mxu1  ;;  %v1507_v43 = vmul.f32 %v2715_v19, %v2715_v19 }
 0x129   :  { %2116 = vst [vmem:[%s2972_s5 + $0x70] sm:$0xff] %v1985_v23   ;;  %v1430_v54 = vadd.f32 %v1429_v49, %v688_v17  ;;  %v1562_v56 = vadd.f32 %v1561_v47, %v1499_v40  ;;  %v2827_v32 = vadd.f32 %v2622_v6, %v775_v24  ;;  %v2236_v8 = vpop.f32.mrb[22].mxu1  ;;  %v1506_v17 = vmul.f32 %v2706_v33, %v2706_v33 }
 0x12a   :  { %v2832_v34 = vadd.f32 %v2236_v8, %v2622_v6  ;;  %v778_v35 = vpop.f32.mrb[23].mxu1  ;;  %v1508_v47 = vmul.f32 %v2691_v2, %v2691_v2 }
 0x12b   :  { %v1563_v62 = vadd.f32 %v1562_v56, %v1500_v53  ;;  %v1431_v63 = vadd.f32 %v1430_v54, %v691_v4  ;;  %v1510_v56 = vmul.f32 %v2738_v59, %v2738_v59 }
 0x12d   :  { %v1432_v5 = vadd.f32 %v1431_v63, %v2674_v55  ;;  %v1564_v7 = vadd.f32 %v1563_v62, %v1501_v28  ;;  %v2821_v55 = vadd.f32 %v2235_v21, %v2622_v6  ;;  %v1511_v63 = vmul.f32 %v2747_v0, %v2747_v0 }
 0x12f   :  { %v1565_v10 = vadd.f32 %v1564_v7, %v1502_v27  ;;  %v1433_v12 = vadd.f32 %v1432_v5, %v2683_v61  ;;  %v1505_v61 = vmul.f32 %v2668_v48, %v2668_v48  ;;  %v2050_v4 = vpack.c.bf16 %v2832_v34, %v2821_v55  ;;  %v2239_v45 = vpop.f32.mrb[24].mxu1 }
 0x130   :  { %v791_v22 = vpop.f32.mrb[25].mxu1  ;;  %v1512_v7 = vmul.f32 %v2723_v44, %v2723_v44 }
 0x131   :  { %v1434_v26 = vadd.f32 %v1433_v12, %v2662_v42  ;;  %v1566_v29 = vadd.f32 %v1565_v10, %v1503_v20  ;;  %v2838_v42 = vadd.f32 %v2622_v6, %v778_v35  ;;  %2129 = vst [vmem:[%s2972_s5 + $0xd8] sm:$0xff] %v2050_v4   ;;  %v2861_v40 = vadd.f32 %v2622_v6, %v791_v22  ;;  %v2240_v51 = vpop.f32.mrb[26].mxu1 }
 0x132   :  { %v2866_v15 = vadd.f32 %v2240_v51, %v2622_v6  ;;  %v794_v52 = vpop.f32.mrb[27].mxu1  ;;  %v1519_v22 = vmul.f32 %v2804_v1, %v2804_v1 }
 0x133   :  { %v1567_v13 = vadd.f32 %v1566_v29, %v1504_v25  ;;  %v1435_v36 = vadd.f32 %v1434_v26, %v2668_v48  ;;  %v2045_v41 = vpack.c.bf16 %v2838_v42, %v2827_v32  ;;  %v1514_v29 = vmul.f32 %v2770_v38, %v2770_v38 }
 0x135   :  { %v1436_v37 = vadd.f32 %v1435_v36, %v2706_v33  ;;  %v1568_v39 = vadd.f32 %v1567_v13, %v1505_v61  ;;  %2128 = vst [vmem:[%s2972_s5 + $0xd0] sm:$0xff] %v2045_v41   ;;  %v2855_v33 = vadd.f32 %v2239_v45, %v2622_v6 }
 0x137   :  { %v1569_v48 = vadd.f32 %v1568_v39, %v1506_v17  ;;  %v1437_v14 = vadd.f32 %v1436_v37, %v2715_v19  ;;  %v1509_v19 = vmul.f32 %v2700_v18, %v2700_v18  ;;  %v2060_v58 = vpack.c.bf16 %v2866_v15, %v2855_v33  ;;  %v2243_v3 = vpop.f32.mrb[28].mxu1 }
 0x138   :  { %v807_v5 = vpop.f32.mrb[29].mxu1  ;;  %v1517_v37 = vmul.f32 %v2764_v30, %v2764_v30 }
 0x139   :  { %v1438_v23 = vadd.f32 %v1437_v14, %v2691_v2  ;;  %v1570_v49 = vadd.f32 %v1569_v48, %v1507_v43  ;;  %v2872_v2 = vadd.f32 %v2622_v6, %v794_v52  ;;  %2131 = vst [vmem:[%s2972_s5 + $0xe8] sm:$0xff] %v2060_v58   ;;  %v808_v12 = vadd.f32 %v2622_v6, %v807_v5  ;;  %v2244_v20 = vpop.f32.mrb[30].mxu1 }
 0x13a   :  { %v2898_v21 = vadd.f32 %v2244_v20, %v2622_v6  ;;  %v810_v24 = vpop.f32.mrb[31].mxu1  ;;  %v1518_v48 = vmul.f32 %v2793_v57, %v2793_v57 }
 0x13b   :  { %v1571_v53 = vadd.f32 %v1570_v49, %v1508_v47  ;;  %v1439_v54 = vadd.f32 %v1438_v23, %v2700_v18  ;;  %v2055_v28 = vpack.c.bf16 %v2872_v2, %v2861_v40  ;;  %v811_v8 = vadd.f32 %v2622_v6, %v810_v24 }
 0x13d   :  { %v1440_v27 = vadd.f32 %v1439_v54, %v2738_v59  ;;  %v1572_v16 = vadd.f32 %v1571_v53, %v1509_v19  ;;  %2130 = vst [vmem:[%s2972_s5 + $0xe0] sm:$0xff] %v2055_v28   ;;  %v2889_v59 = vadd.f32 %v2243_v3, %v2622_v6  ;;  %v2065_v13 = vpack.c.bf16 %v811_v8, %v808_v12 }
 0x13e   :  { %v1516_v6 = vmul.f32 %v2755_v11, %v2755_v11  ;;  %v1523_v54 = vmul.f32 %v2838_v42, %v2838_v42 }
 0x13f   :  { %v1573_v18 = vadd.f32 %v1572_v16, %v1510_v56  ;;  %v1441_v62 = vadd.f32 %v1440_v27, %v2747_v0  ;;  %v1513_v0 = vmul.f32 %v2732_v50, %v2732_v50  ;;  %2132 = vst [vmem:[%s2972_s5 + $0xf0] sm:$0xff] %v2065_v13  }
 0x141   :  { %v1442_v9 = vadd.f32 %v1441_v62, %v2723_v44  ;;  %v1574_v10 = vadd.f32 %v1573_v18, %v1511_v63  ;;  %v2070_v44 = vpack.c.bf16 %v2898_v21, %v2889_v59  ;;  %v1527_v63 = vmul.f32 %v2872_v2, %v2872_v2 }
 0x143   :  { %v1575_v25 = vadd.f32 %v1574_v10, %v1512_v7  ;;  %v1443_v26 = vadd.f32 %v1442_v9, %v2732_v50  ;;  %2133 = vst [vmem:[%s2972_s5 + $0xf8] sm:$0xff] %v2070_v44   ;;  %v1515_v50 = vmul.f32 %v2779_v46, %v2779_v46 }
 0x145   :  { %v1444_v61 = vadd.f32 %v1443_v26, %v2770_v38  ;;  %v1576_v35 = vadd.f32 %v1575_v25, %v1513_v0  ;;  %v1531_v25 = vmul.f32 %v811_v8, %v811_v8 }
 0x147   :  { %v1577_v36 = vadd.f32 %v1576_v35, %v1514_v29  ;;  %v1445_v17 = vadd.f32 %v1444_v61, %v2779_v46 }
 0x149   :  { %v1446_v38 = vadd.f32 %v1445_v17, %v2755_v11  ;;  %v1578_v4 = vadd.f32 %v1577_v36, %v1515_v50  ;;  %v1520_v11 = vmul.f32 %v2787_v31, %v2787_v31  ;;  %v1143_v36 = vlaneseq }
 0x14b   :  { %v1579_v39 = vadd.f32 %v1578_v4, %v1516_v6  ;;  %v1447_v41 = vadd.f32 %v1446_v38, %v2764_v30  ;;  %v1521_v30 = vmul.f32 %v2801_v60, %v2801_v60  ;;  %v1144_v38 = vshrl.u32 %v1143_v36, 7 }
 0x14d   :  { %v1448_v46 = vadd.f32 %v1447_v41, %v2793_v57  ;;  %v1580_v14 = vadd.f32 %v1579_v39, %v1517_v37  ;;  %v1522_v57 = vmul.f32 %v2827_v32, %v2827_v32  ;;  %vm1604_vm2 = vcmp.eq.s32.totalorder %v1144_v38, 1 }
 0x14e   :  { %vm1603_vm3 = vcmp.eq.s32.totalorder %v1144_v38, 0 }
 0x14f   :  { %v1581_v43 = vadd.f32 %v1580_v14, %v1518_v48  ;;  %v1449_v45 = vadd.f32 %v1448_v46, %v2804_v1 }
 0x151   :  { %v1450_v47 = vadd.f32 %v1449_v45, %v2787_v31  ;;  %v1582_v23 = vadd.f32 %v1581_v43, %v1519_v22  ;;  %v1524_v31 = vmul.f32 %v2821_v55, %v2821_v55 }
 0x153   :  { %v1583_v49 = vadd.f32 %v1582_v23, %v1520_v11  ;;  %v1451_v51 = vadd.f32 %v1450_v47, %v2801_v60  ;;  %v1525_v60 = vmul.f32 %v2832_v34, %v2832_v34 }
 0x155   :  { %v1452_v19 = vadd.f32 %v1451_v51, %v2827_v32  ;;  %v1584_v52 = vadd.f32 %v1583_v49, %v1521_v30  ;;  %v1526_v32 = vmul.f32 %v2861_v40, %v2861_v40 }
 0x157   :  { %v1585_v53 = vadd.f32 %v1584_v52, %v1522_v57  ;;  %v1453_v1 = vadd.f32 %v1452_v19, %v2838_v42 }
 0x159   :  { %v1454_v56 = vadd.f32 %v1453_v1, %v2821_v55  ;;  %v1586_v58 = vadd.f32 %v1585_v53, %v1523_v54  ;;  %v1528_v55 = vmul.f32 %v2855_v33, %v2855_v33 }
 0x15b   :  { %v1587_v27 = vadd.f32 %v1586_v58, %v1524_v31  ;;  %v1455_v16 = vadd.f32 %v1454_v56, %v2832_v34  ;;  %v1529_v34 = vmul.f32 %v2866_v15, %v2866_v15 }
 0x15d   :  { %v1456_v28 = vadd.f32 %v1455_v16, %v2861_v40  ;;  %v1588_v18 = vadd.f32 %v1587_v27, %v1525_v60  ;;  %v1530_v40 = vmul.f32 %v808_v12, %v808_v12 }
 0x15f   :  { %v1589_v62 = vadd.f32 %v1588_v18, %v1526_v32  ;;  %v1457_v42 = vadd.f32 %v1456_v28, %v2872_v2  ;;  %v1532_v2 = vmul.f32 %v2889_v59, %v2889_v59 }
 0x161   :  { %v1458_v3 = vadd.f32 %v1457_v42, %v2855_v33  ;;  %v1590_v5 = vadd.f32 %v1589_v62, %v1527_v63  ;;  %v1533_v33 = vmul.f32 %v2898_v21, %v2898_v21 }
 0x163   :  { %v1591_v7 = vadd.f32 %v1590_v5, %v1528_v55  ;;  %v1459_v9 = vadd.f32 %v1458_v3, %v2866_v15 }
 0x165   :  { %v1460_v10 = vadd.f32 %v1459_v9, %v808_v12  ;;  %v1592_v20 = vadd.f32 %v1591_v7, %v1529_v34 }
 0x167   :  { %v1593_v0 = vadd.f32 %v1592_v20, %v1530_v40  ;;  %v1461_v24 = vadd.f32 %v1460_v10, %v811_v8 }
 0x169   :  { %v1462_v26 = vadd.f32 %v1461_v24, %v2889_v59  ;;  %v1594_v29 = vadd.f32 %v1593_v0, %v1531_v25 }
 0x16b   :  { %v1463_v44 = vadd.f32 %v1462_v26, %v2898_v21  ;;  %v1595_v61 = vadd.f32 %v1594_v29, %v1532_v2 }
 0x16d   :  { %v1464_v35 = vrot.slane %v1463_v44, 4  ;;  %v1596_v15 = vadd.f32 %v1595_v61, %v1533_v33 }
 0x16f   :  { %v1465_v13 = vadd.f32 %v1464_v35, %v1463_v44  ;;  %v1597_v12 = vrot.slane %v1596_v15, 4 }
 0x171   :  { %v1466_v17 = vrot.slane %v1465_v13, 2  ;;  %v1598_v50 = vadd.f32 %v1597_v12, %v1596_v15 }
 0x173   :  { %v1467_v8 = vadd.f32 %v1466_v17, %v1465_v13  ;;  %v1599_v6 = vrot.slane %v1598_v50, 2 }
 0x175   :  { %v1600_v4 = vadd.f32 %v1599_v6, %v1598_v50  ;;  %v1468_v37 = vrot.slane %v1467_v8, 1 }
 0x177   :  { %v1601_v59 = vrot.slane %v1600_v4, 1  ;;  %v1469_v41 = vadd.f32 %v1468_v37, %v1467_v8 }
 0x179   :  { %v1602_v39 = vadd.f32 %v1601_v59, %v1600_v4 }
 0x17b   :  { %v1605_v48 = vsel %vm1604_vm2, %v1602_v39, 0.0 }
 0x17c   :  { %v1606_v21 = vsel %vm1603_vm3, %v1469_v41, %v1605_v48 }
 0x17d   :  { %1607 = vst [vmem:[%s2973_s6] sm:$0xff] %v1606_v21 }

// kernel: vit_forward.18
= control target key start
LH: loop header
LB: loop body
LE: loop exit
PB: predicated region body
PF: predicated region fallthrough
CT: control target
= control target key end

     0   :  { %vm193_vm0 = vcmask 1043456   ;;  %vm168_vm1 = vcmask 588800   ;;  %s865_s1 = inlined_call_operand.vmem [shape: bf16[72,128], index: 1, kind: input, shape index: {}]   ;;  %s866_s0 = inlined_call_operand.vmem [shape: bf16[128,72], index: 0, kind: input, shape index: {}]   ;;  %s867_s3 = inlined_call_operand.vmem [shape: f32[1,72], index: 3, kind: input, shape index: {}]   ;;  %s868_s4 = inlined_call_operand.vmem [shape: f32[1,72], index: 4, kind: input, shape index: {}]   ;;  %s869_s2 = inlined_call_operand.vmem [shape: f32[1,128], index: 2, kind: input, shape index: {}]   ;;  %s870_s5 = inlined_call_operand.vmem [shape: bf16[128,128], index: 5, kind: output, shape index: {0}]   ;;  %s871_s6 = inlined_call_operand.vmem [shape: f32[1,8,128], index: 6, kind: output, shape index: {1}]  }
   0x1   :  { %v697_v0 = vld [vmem:[%s865_s1] sm:$0xff]   ;;  %v698_v1 = vld [vmem:[%s865_s1 + $0x8] sm:$0xff]   ;;  %v699_v2 = vld [vmem:[%s865_s1 + $0x10] sm:$0xff]  }
   0x2   :  { %659 = vmatprep.subr.bf16.mxu0 %v697_v0  ;;  %685 = vmatprep.subr.bf16.mxu1 %v697_v0  ;;  %v561_v3 = vld [vmem:[%s866_s0] sm:$0xff]   ;;  %v632_v7 = vld [vmem:[%s866_s0 + $0x8] sm:$0xff]   ;;  %v633_v11 = vld [vmem:[%s866_s0 + $0x10] sm:$0xff]  }
   0x3   :  { %660 = vmatpush3.bf16.msra.mxu0 %v697_v0  ;;  %690 = vmatpush3.bf16.msra.mxu1 %v697_v0  ;;  %v562_v4 = vunpack.c.l.bf16 %v561_v3  ;;  %v563_v5 = vunpack.c.h.bf16 %v561_v3  ;;  %v752_v6 = vld [vmem:[%s867_s3] ss:$0 sm:$0xff]  ;;  %v566_v9 = vunpack.c.l.bf16 %v632_v7  ;;  %v567_v10 = vunpack.c.h.bf16 %v632_v7  ;;  %v634_v12 = vld [vmem:[%s866_s0 + $0x18] sm:$0xff]   ;;  %v636_v39 = vld [vmem:[%s866_s0 + $0x28] sm:$0xff]  }
   0x4   :  { %661 = vmatprep.subr.bf16.mxu0 %v698_v1  ;;  %686 = vmatprep.subr.bf16.mxu1 %v698_v1  ;;  %v760_v8 = vld [vmem:[%s868_s4] ss:$0 sm:$0xff]  ;;  %v570_v15 = vunpack.c.l.bf16 %v633_v11  ;;  %v571_v16 = vunpack.c.h.bf16 %v633_v11  ;;  %v700_v17 = vld [vmem:[%s865_s1 + $0x18] sm:$0xff]   ;;  %v574_v20 = vunpack.c.l.bf16 %v634_v12  ;;  %v575_v21 = vunpack.c.h.bf16 %v634_v12  ;;  %v637_v44 = vld [vmem:[%s866_s0 + $0x30] sm:$0xff]  }
   0x5   :  { %v62_v13 = vmul.f32 %v562_v4, %v752_v6  ;;  %v63_v14 = vmul.f32 %v563_v5, %v752_v6  ;;  %v64_v18 = vmul.f32 %v566_v9, %v752_v6  ;;  %v65_v19 = vmul.f32 %v567_v10, %v752_v6  ;;  %v701_v26 = vld [vmem:[%s865_s1 + $0x20] ss:$0 sps:$4 sm:$0xff]   ;;  %v638_v49 = vld [vmem:[%s866_s0 + $0x38] sm:$0xff]  }
   0x6   :  { %v66_v24 = vmul.f32 %v570_v15, %v752_v6  ;;  %v67_v25 = vmul.f32 %v571_v16, %v752_v6  ;;  %v68_v29 = vmul.f32 %v574_v20, %v752_v6  ;;  %v69_v30 = vmul.f32 %v575_v21, %v752_v6  ;;  %v635_v31 = vld [vmem:[%s866_s0 + $0x20] sm:$0xff]  }
   0x7   :  { %662 = vmatpush3.bf16.msra.mxu0 %v698_v1  ;;  %691 = vmatpush3.bf16.msra.mxu1 %v698_v1  ;;  %v85_v22 = vadd.f32 %v760_v8, %v62_v13  ;;  %v86_v23 = vadd.f32 %v760_v8, %v63_v14  ;;  %v87_v27 = vadd.f32 %v760_v8, %v64_v18  ;;  %v578_v43 = vunpack.c.l.bf16 %v635_v31 }
   0x8   :  { %663 = vmatprep.subr.bf16.mxu0 %v699_v2  ;;  %687 = vmatprep.subr.bf16.mxu1 %v699_v2  ;;  %v88_v28 = vadd.f32 %v760_v8, %v65_v19  ;;  %v89_v34 = vadd.f32 %v760_v8, %v66_v24  ;;  %v90_v35 = vadd.f32 %v760_v8, %v67_v25  ;;  %v195_v45 = vsel %vm193_vm0, %v701_v26, 0 }
   0x9   :  { %v101_v32 = vmax.f32 %v85_v22, 0.0  ;;  %v102_v33 = vmax.f32 %v86_v23, 0.0  ;;  %v103_v36 = vmax.f32 %v87_v27, 0.0  ;;  %v91_v38 = vadd.f32 %v760_v8, %v68_v29 }
   0xa   :  { %v104_v37 = vmax.f32 %v88_v28, 0.0  ;;  %v105_v41 = vmax.f32 %v89_v34, 0.0  ;;  %v106_v42 = vmax.f32 %v90_v35, 0.0  ;;  %v92_v47 = vadd.f32 %v760_v8, %v69_v30 }
   0xb   :  { %664 = vmatpush3.bf16.msra.mxu0 %v699_v2  ;;  %692 = vmatpush3.bf16.msra.mxu1 %v699_v2  ;;  %v117_v40 = vpack.c.bf16 %v102_v33, %v101_v32  ;;  %v579_v48 = vunpack.c.h.bf16 %v635_v31  ;;  %v107_v50 = vmax.f32 %v91_v38, 0.0  ;;  %v70_v51 = vmul.f32 %v578_v43, %v752_v6 }
   0xc   :  { %665 = vmatprep.subr.bf16.mxu0 %v700_v17  ;;  %688 = vmatprep.subr.bf16.mxu1 %v700_v17  ;;  %v118_v46 = vpack.c.bf16 %v104_v37, %v103_v36  ;;  %v582_v52 = vunpack.c.l.bf16 %v636_v39  ;;  %v583_v53 = vunpack.c.h.bf16 %v636_v39  ;;  %v119_v54 = vpack.c.bf16 %v106_v42, %v105_v41 }
   0xd   :  { %669 = vmatprep.mubr.msk.bf16.mxu0 %vm168_vm1, %v117_v40  ;;  %v71_v55 = vmul.f32 %v579_v48, %v752_v6  ;;  %v586_v56 = vunpack.c.l.bf16 %v637_v44  ;;  %v587_v57 = vunpack.c.h.bf16 %v637_v44  ;;  %v93_v58 = vadd.f32 %v760_v8, %v70_v51 }
   0xe   :  { %v72_v59 = vmul.f32 %v582_v52, %v752_v6  ;;  %v73_v60 = vmul.f32 %v583_v53, %v752_v6  ;;  %v590_v61 = vunpack.c.l.bf16 %v638_v49  ;;  %v591_v1 = vunpack.c.h.bf16 %v638_v49 }
   0xf   :  { %666 = vmatpush3.bf16.msra.mxu0 %v700_v17  ;;  %693 = vmatpush3.bf16.msra.mxu1 %v700_v17  ;;  %v94_v62 = vadd.f32 %v760_v8, %v71_v55  ;;  %v74_v63 = vmul.f32 %v586_v56, %v752_v6  ;;  %v75_v0 = vmul.f32 %v587_v57, %v752_v6  ;;  %v109_v2 = vmax.f32 %v93_v58, 0.0 }
  0x10   :  { %695 = vmatprep.subr.msk.bf16.mxu0 %vm193_vm0, %v701_v26  ;;  %696 = vmatprep.subr.msk.bf16.mxu1 %vm193_vm0, %v701_v26  ;;  %v95_v3 = vadd.f32 %v760_v8, %v72_v59  ;;  %v96_v4 = vadd.f32 %v760_v8, %v73_v60  ;;  %v76_v5 = vmul.f32 %v590_v61, %v752_v6  ;;  %v108_v12 = vmax.f32 %v92_v47, 0.0 }
  0x11   :  { %v110_v7 = vmax.f32 %v94_v62, 0.0  ;;  %v97_v9 = vadd.f32 %v760_v8, %v74_v63  ;;  %v98_v10 = vadd.f32 %v760_v8, %v75_v0  ;;  %v77_v11 = vmul.f32 %v591_v1, %v752_v6 }
  0x12   :  { %v111_v13 = vmax.f32 %v95_v3, 0.0  ;;  %v112_v14 = vmax.f32 %v96_v4, 0.0  ;;  %v99_v15 = vadd.f32 %v760_v8, %v76_v5  ;;  %v120_v23 = vpack.c.bf16 %v108_v12, %v107_v50 }
  0x13   :  { %668 = vmatpush3.bf16.msra.mxu0 %v195_v45  ;;  %694 = vmatpush3.bf16.msra.mxu1 %v195_v45  ;;  %v121_v16 = vpack.c.bf16 %v110_v7, %v109_v2  ;;  %v113_v17 = vmax.f32 %v97_v9, 0.0  ;;  %v114_v18 = vmax.f32 %v98_v10, 0.0  ;;  %v100_v19 = vadd.f32 %v760_v8, %v77_v11  ;;  %v514_v8 = vld [vmem:[%s869_s2] ss:$0 sm:$0xff] }
  0x14   :  { %v122_v20 = vpack.c.bf16 %v112_v14, %v111_v13  ;;  %v115_v6 = vmax.f32 %v99_v15, 0.0 }
  0x15   :  { %677 = vmatprep.mubr.msk.bf16.mxu1 %vm168_vm1, %v121_v16  ;;  %v123_v21 = vpack.c.bf16 %v114_v18, %v113_v17  ;;  %v116_v22 = vmax.f32 %v100_v19, 0.0 }
  0x16   :  { %670 = vmatmul.mubr.msk.bf16.vlgmr.msra.gmra.mrb[0].mxu0 %vm168_vm1, %v118_v46  ;;  %678 = vmatmul.mubr.msk.bf16.vlgmr.msra.gmra.mrb[0].mxu1 %vm168_vm1, %v122_v20 }
  0x17   :  { %673 = vmatprep.mubr.msk.bf16.mxu0 %vm168_vm1, %v119_v54  ;;  %681 = vmatprep.mubr.msk.bf16.mxu1 %vm168_vm1, %v123_v21  ;;  %v124_v24 = vpack.c.bf16 %v116_v22, %v115_v6 }
  0x1e   :  { %674 = vmatmul.mubr.msk.bf16.gmra.mrb[4].mxu0 %vm168_vm1, %v120_v23  ;;  %682 = vmatmul.mubr.msk.bf16.gmra.mrb[4].mxu1 %vm168_vm1, %v124_v24 }
  0xe9   :  { %v671_v25 = vpop.f32.mrb[0].mxu0  ;;  %v679_v32 = vpop.f32.mrb[0].mxu1 }
  0xea   :  { %v231_v26 = vpop.f32.mrb[1].mxu0  ;;  %v240_v29 = vadd.f32 %v671_v25, %v514_v8  ;;  %v263_v34 = vpop.f32.mrb[1].mxu1  ;;  %v832_v36 = vadd.f32 %v679_v32, %v514_v8 }
  0xeb   :  { %v232_v27 = vadd.f32 %v514_v8, %v231_v26  ;;  %v672_v28 = vpop.f32.mrb[2].mxu0  ;;  %v264_v37 = vadd.f32 %v514_v8, %v263_v34  ;;  %v680_v38 = vpop.f32.mrb[2].mxu1 }
  0xec   :  { %v243_v30 = vadd.f32 %v672_v28, %v514_v8  ;;  %v234_v31 = vpop.f32.mrb[3].mxu0  ;;  %v266_v43 = vpop.f32.mrb[3].mxu1  ;;  %v275_v44 = vadd.f32 %v680_v38, %v514_v8  ;;  %v464_v46 = vmul.f32 %v240_v29, %v240_v29  ;;  %v472_v28 = vmul.f32 %v832_v36, %v832_v36 }
  0xed   :  { %v235_v33 = vadd.f32 %v514_v8, %v234_v31  ;;  %v462_v39 = vmul.f32 %v232_v27, %v232_v27  ;;  %v267_v45 = vadd.f32 %v514_v8, %v266_v43  ;;  %v470_v23 = vmul.f32 %v264_v37, %v264_v37 }
  0xee   :  { %v600_v35 = vpack.c.bf16 %v243_v30, %v240_v29  ;;  %v620_v51 = vpack.c.bf16 %v275_v44, %v832_v36  ;;  %v465_v53 = vmul.f32 %v243_v30, %v243_v30  ;;  %v473_v31 = vmul.f32 %v275_v44, %v275_v44 }
  0xef   :  { %v595_v40 = vpack.c.bf16 %v235_v33, %v232_v27  ;;  %v441_v41 = vadd.f32 %v235_v33, %v232_v27  ;;  %v463_v42 = vmul.f32 %v235_v33, %v235_v33  ;;  %v615_v52 = vpack.c.bf16 %v267_v45, %v264_v37 }
  0xf0   :  { %639 = vst [vmem:[%s870_s5 + $0x8] sm:$0xff] %v600_v35   ;;  %643 = vst [vmem:[%s870_s5 + $0x28] sm:$0xff] %v620_v51   ;;  %v471_v27 = vmul.f32 %v267_v45, %v267_v45  ;;  %v375_v51 = vlaneseq }
  0xf1   :  { %596 = vst [vmem:[%s870_s5] sm:$0xff] %v595_v40   ;;  %v442_v47 = vadd.f32 %v441_v41, %v240_v29  ;;  %v478_v48 = vadd.f32 %v463_v42, %v462_v39  ;;  %v675_v49 = vpop.f32.mrb[4].mxu0  ;;  %642 = vst [vmem:[%s870_s5 + $0x20] sm:$0xff] %v615_v52   ;;  %v683_v61 = vpop.f32.mrb[4].mxu1 }
  0xf2   :  { %v247_v50 = vpop.f32.mrb[5].mxu0  ;;  %v256_v58 = vadd.f32 %v675_v49, %v514_v8  ;;  %v279_v2 = vpop.f32.mrb[5].mxu1  ;;  %v288_v4 = vadd.f32 %v683_v61, %v514_v8 }
  0xf3   :  { %v479_v54 = vadd.f32 %v478_v48, %v464_v46  ;;  %v248_v55 = vadd.f32 %v514_v8, %v247_v50  ;;  %v443_v56 = vadd.f32 %v442_v47, %v243_v30  ;;  %v676_v57 = vpop.f32.mrb[6].mxu0  ;;  %v280_v5 = vadd.f32 %v514_v8, %v279_v2  ;;  %v684_v7 = vpop.f32.mrb[6].mxu1 }
  0xf4   :  { %v259_v59 = vadd.f32 %v676_v57, %v514_v8  ;;  %v250_v60 = vpop.f32.mrb[7].mxu0  ;;  %v282_v13 = vpop.f32.mrb[7].mxu1  ;;  %v291_v14 = vadd.f32 %v684_v7, %v514_v8  ;;  %v468_v16 = vmul.f32 %v256_v58, %v256_v58 }
  0xf5   :  { %v444_v62 = vadd.f32 %v443_v56, %v248_v55  ;;  %v466_v63 = vmul.f32 %v248_v55, %v248_v55  ;;  %v480_v0 = vadd.f32 %v479_v54, %v465_v53  ;;  %v251_v1 = vadd.f32 %v514_v8, %v250_v60 }
  0xf6   :  { %v610_v3 = vpack.c.bf16 %v259_v59, %v256_v58  ;;  %v283_v15 = vadd.f32 %v514_v8, %v282_v13  ;;  %v630_v19 = vpack.c.bf16 %v291_v14, %v288_v4  ;;  %v469_v21 = vmul.f32 %v259_v59, %v259_v59 }
  0xf7   :  { %v481_v9 = vadd.f32 %v480_v0, %v466_v63  ;;  %v605_v10 = vpack.c.bf16 %v251_v1, %v248_v55  ;;  %v445_v11 = vadd.f32 %v444_v62, %v251_v1  ;;  %v467_v12 = vmul.f32 %v251_v1, %v251_v1 }
  0xf8   :  { %641 = vst [vmem:[%s870_s5 + $0x18] sm:$0xff] %v610_v3   ;;  %v625_v20 = vpack.c.bf16 %v283_v15, %v280_v5  ;;  %645 = vst [vmem:[%s870_s5 + $0x38] sm:$0xff] %v630_v19   ;;  %v474_v34 = vmul.f32 %v280_v5, %v280_v5  ;;  %v475_v41 = vmul.f32 %v283_v15, %v283_v15  ;;  %v376_v55 = vshrl.u32 %v375_v51, 7 }
  0xf9   :  { %640 = vst [vmem:[%s870_s5 + $0x10] sm:$0xff] %v605_v10   ;;  %v446_v17 = vadd.f32 %v445_v11, %v256_v58  ;;  %v482_v18 = vadd.f32 %v481_v9, %v467_v12  ;;  %v477_v46 = vmul.f32 %v291_v14, %v291_v14 }
  0xfa   :  { %644 = vst [vmem:[%s870_s5 + $0x30] sm:$0xff] %v625_v20   ;;  %vm500_vm2 = vcmp.eq.s32.totalorder %v376_v55, 1  ;;  %vm499_vm3 = vcmp.eq.s32.totalorder %v376_v55, 0 }
  0xfb   :  { %v483_v6 = vadd.f32 %v482_v18, %v468_v16  ;;  %v447_v22 = vadd.f32 %v446_v17, %v259_v59 }
  0xfd   :  { %v448_v24 = vadd.f32 %v447_v22, %v264_v37  ;;  %v484_v8 = vadd.f32 %v483_v6, %v469_v21  ;;  %v476_v37 = vmul.f32 %v288_v4, %v288_v4 }
  0xff   :  { %v485_v25 = vadd.f32 %v484_v8, %v470_v23  ;;  %v449_v26 = vadd.f32 %v448_v24, %v267_v45 }
 0x101   :  { %v450_v29 = vadd.f32 %v449_v26, %v832_v36  ;;  %v486_v30 = vadd.f32 %v485_v25, %v471_v27 }
 0x103   :  { %v487_v32 = vadd.f32 %v486_v30, %v472_v28  ;;  %v451_v33 = vadd.f32 %v450_v29, %v275_v44 }
 0x105   :  { %v452_v35 = vadd.f32 %v451_v33, %v280_v5  ;;  %v488_v38 = vadd.f32 %v487_v32, %v473_v31 }
 0x107   :  { %v489_v39 = vadd.f32 %v488_v38, %v474_v34  ;;  %v453_v40 = vadd.f32 %v452_v35, %v283_v15 }
 0x109   :  { %v454_v42 = vadd.f32 %v453_v40, %v288_v4  ;;  %v490_v43 = vadd.f32 %v489_v39, %v475_v41 }
 0x10b   :  { %v455_v45 = vadd.f32 %v454_v42, %v291_v14  ;;  %v491_v47 = vadd.f32 %v490_v43, %v476_v37 }
 0x10d   :  { %v456_v48 = vrot.slane %v455_v45, 4  ;;  %v492_v49 = vadd.f32 %v491_v47, %v477_v46 }
 0x10f   :  { %v457_v50 = vadd.f32 %v456_v48, %v455_v45  ;;  %v493_v36 = vrot.slane %v492_v49, 4 }
 0x111   :  { %v458_v52 = vrot.slane %v457_v50, 2  ;;  %v494_v53 = vadd.f32 %v493_v36, %v492_v49 }
 0x113   :  { %v459_v44 = vadd.f32 %v458_v52, %v457_v50  ;;  %v495_v54 = vrot.slane %v494_v53, 2 }
 0x115   :  { %v496_v56 = vadd.f32 %v495_v54, %v494_v53  ;;  %v460_v57 = vrot.slane %v459_v44, 1 }
 0x117   :  { %v497_v58 = vrot.slane %v496_v56, 1  ;;  %v461_v60 = vadd.f32 %v460_v57, %v459_v44 }
 0x119   :  { %v498_v59 = vadd.f32 %v497_v58, %v496_v56 }
 0x11b   :  { %v501_v61 = vsel %vm500_vm2, %v498_v59, 0.0 }
 0x11c   :  { %v502_v62 = vsel %vm499_vm3, %v461_v60, %v501_v61 }
 0x11d   :  { %503 = vst [vmem:[%s871_s6] sm:$0xff] %v502_v62 }

// kernel: vit_forward.19
= control target key start
LH: loop header
LB: loop body
LE: loop exit
PB: predicated region body
PF: predicated region fallthrough
CT: control target
= control target key end

     0   :  { %v37_v0 = vlaneseq  ;;  %v355_v1 = vmov 0   ;;  %vm166_vm0 = vcmask 130048   ;;  %s474_s1 = inlined_call_operand.vmem [shape: bf16[144,128], index: 1, kind: input, shape index: {}]   ;;  %s475_s0 = inlined_call_operand.vmem [shape: bf16[32,144], index: 0, kind: input, shape index: {}]   ;;  %s476_s3 = inlined_call_operand.vmem [shape: f32[1,144], index: 3, kind: input, shape index: {}]   ;;  %s477_s4 = inlined_call_operand.vmem [shape: f32[1,144], index: 4, kind: input, shape index: {}]   ;;  %s478_s2 = inlined_call_operand.vmem [shape: f32[1,128], index: 2, kind: input, shape index: {}]   ;;  %s479_s5 = inlined_call_operand.vmem [shape: bf16[32,128], index: 5, kind: output, shape index: {0}]   ;;  %s480_s6 = inlined_call_operand.vmem [shape: f32[1,8,128], index: 6, kind: output, shape index: {1}]  }
   0x1   :  { %173 = vmatprep.subr.bf16.mxu0 %v355_v1  ;;  %327 = vmatprep.subr.bf16.mxu1 %v355_v1  ;;  %v346_v2 = vld [vmem:[%s474_s1] sm:$0xff]   ;;  %v347_v3 = vld [vmem:[%s474_s1 + $0x8] sm:$0xff]   ;;  %v348_v5 = vld [vmem:[%s474_s1 + $0x10] sm:$0xff]  }
   0x2   :  { %174 = vmatpush1.bf16.msra.mxu0 %v346_v2  ;;  %336 = vmatpush1.bf16.msra.mxu1 %v346_v2  ;;  %v401_v4 = vshrl.u32 %v37_v0, 7  ;;  %v349_v7 = vld [vmem:[%s474_s1 + $0x18] sm:$0xff]   ;;  %v23_v8 = vld [vmem:[%s475_s0] sm:$0xff]  ;;  %v24_v9 = vld [vmem:[%s475_s0 + $0x8] sm:$0xff] }
   0x3   :  { %175 = vmatprep.subr.bf16.mxu0 %v355_v1  ;;  %328 = vmatprep.subr.bf16.mxu1 %v355_v1  ;;  %v35_v10 = vld [vmem:[%s476_s3] sm:$0x3]  ;;  %v28_v11 = vunpack.c.h.bf16 %v23_v8  ;;  %v30_v12 = vunpack.c.h.bf16 %v24_v9  ;;  %v25_v14 = vld [vmem:[%s475_s0 + $0x10] sm:$0xff]  ;;  %v26_v15 = vld [vmem:[%s475_s0 + $0x18] sm:$0xff]  ;;  %v27_v26 = vunpack.c.l.bf16 %v23_v8  ;;  %v29_v29 = vunpack.c.l.bf16 %v24_v9 }
   0x4   :  { %v43_v6 = vsub.s32 1, %v401_v4  ;;  %v55_v13 = vld [vmem:[%s477_s4] sm:$0x3]  ;;  %v39_v17 = vsub.s32 0, %v401_v4  ;;  %v32_v19 = vunpack.c.h.bf16 %v25_v14  ;;  %v34_v20 = vunpack.c.h.bf16 %v26_v15  ;;  %v351_v37 = vld [vmem:[%s474_s1 + $0x28] sm:$0xff]   ;;  %v352_v47 = vld [vmem:[%s474_s1 + $0x30] sm:$0xff]  }
   0x5   :  { %v350_v23 = vld [vmem:[%s474_s1 + $0x20] sm:$0xff]   ;;  %v31_v35 = vunpack.c.l.bf16 %v25_v14  ;;  %v33_v36 = vunpack.c.l.bf16 %v26_v15  ;;  %v353_v52 = vld [vmem:[%s474_s1 + $0x38] sm:$0xff]   ;;  %vm284_vm1 = vcmp.eq.s32.totalorder %v401_v4, 1  ;;  %vm283_vm2 = vcmp.eq.s32.totalorder %v401_v4, 0 }
   0x6   :  { %176 = vmatpush1.bf16.msra.mxu0 %v347_v3  ;;  %337 = vmatpush1.bf16.msra.mxu1 %v347_v3  ;;  %v44_v16 = vrot.slane %v35_v10, %v43_v6  ;;  %v64_v18 = vrot.slane %v55_v13, %v43_v6  ;;  %v40_v30 = vrot.slane %v35_v10, %v39_v17  ;;  %v354_v57 = vld [vmem:[%s474_s1 + $0x40] sm:$0xff]  }
   0x7   :  { %177 = vmatprep.subr.bf16.mxu0 %v355_v1  ;;  %329 = vmatprep.subr.bf16.mxu1 %v355_v1  ;;  %v60_v41 = vrot.slane %v55_v13, %v39_v17  ;;  %v296_v60 = vld [vmem:[%s478_s2] ss:$0 sm:$0xff] }
   0x8   :  { %v48_v21 = vmul.f32 %v44_v16, %v28_v11  ;;  %v50_v22 = vmul.f32 %v44_v16, %v30_v12  ;;  %v52_v24 = vmul.f32 %v44_v16, %v32_v19  ;;  %v54_v25 = vmul.f32 %v44_v16, %v34_v20 }
   0x9   :  { %v47_v43 = vmul.f32 %v40_v30, %v27_v26  ;;  %v49_v44 = vmul.f32 %v40_v30, %v29_v29  ;;  %v51_v45 = vmul.f32 %v40_v30, %v31_v35  ;;  %v53_v46 = vmul.f32 %v40_v30, %v33_v36 }
   0xa   :  { %178 = vmatpush1.bf16.msra.mxu0 %v348_v5  ;;  %338 = vmatpush1.bf16.msra.mxu1 %v348_v5  ;;  %v68_v27 = vadd.f32 %v64_v18, %v48_v21  ;;  %v70_v28 = vadd.f32 %v64_v18, %v50_v22  ;;  %v72_v31 = vadd.f32 %v64_v18, %v52_v24 }
   0xb   :  { %179 = vmatprep.subr.bf16.mxu0 %v355_v1  ;;  %330 = vmatprep.subr.bf16.mxu1 %v355_v1  ;;  %v74_v32 = vadd.f32 %v64_v18, %v54_v25  ;;  %v67_v48 = vadd.f32 %v60_v41, %v47_v43  ;;  %v69_v49 = vadd.f32 %v60_v41, %v49_v44 }
   0xc   :  { %v76_v33 = vmax.f32 %v68_v27, 0.0  ;;  %v78_v34 = vmax.f32 %v70_v28, 0.0  ;;  %v80_v38 = vmax.f32 %v72_v31, 0.0  ;;  %v71_v50 = vadd.f32 %v60_v41, %v51_v45 }
   0xd   :  { %v82_v39 = vmax.f32 %v74_v32, 0.0  ;;  %v73_v51 = vadd.f32 %v60_v41, %v53_v46  ;;  %v75_v53 = vmax.f32 %v67_v48, 0.0  ;;  %v77_v54 = vmax.f32 %v69_v49, 0.0 }
   0xe   :  { %180 = vmatpush1.bf16.msra.mxu0 %v349_v7  ;;  %339 = vmatpush1.bf16.msra.mxu1 %v349_v7  ;;  %v84_v40 = vpack.c.bf16 %v78_v34, %v76_v33  ;;  %v79_v55 = vmax.f32 %v71_v50, 0.0 }
   0xf   :  { %181 = vmatprep.subr.bf16.mxu0 %v355_v1  ;;  %331 = vmatprep.subr.bf16.mxu1 %v355_v1  ;;  %v86_v42 = vpack.c.bf16 %v82_v39, %v80_v38  ;;  %v81_v56 = vmax.f32 %v73_v51, 0.0  ;;  %v83_v58 = vpack.c.bf16 %v77_v54, %v75_v53 }
  0x10   :  { %306 = vmatprep.mubr.msk.bf16.mxu0 %vm166_vm0, %v84_v40 }
  0x11   :  { %307 = vmatprep.mubr.msk.bf16.mxu1 %vm166_vm0, %v86_v42  ;;  %v85_v59 = vpack.c.bf16 %v81_v56, %v79_v55 }
  0x12   :  { %182 = vmatpush1.bf16.msra.mxu0 %v350_v23  ;;  %340 = vmatpush1.bf16.msra.mxu1 %v350_v23 }
  0x13   :  { %183 = vmatprep.subr.bf16.mxu0 %v355_v1  ;;  %332 = vmatprep.subr.bf16.mxu1 %v355_v1 }
  0x16   :  { %184 = vmatpush1.bf16.msra.mxu0 %v351_v37  ;;  %341 = vmatpush1.bf16.msra.mxu1 %v351_v37 }
  0x17   :  { %185 = vmatprep.subr.bf16.mxu0 %v355_v1  ;;  %333 = vmatprep.subr.bf16.mxu1 %v355_v1 }
  0x1a   :  { %186 = vmatpush1.bf16.msra.mxu0 %v352_v47  ;;  %342 = vmatpush1.bf16.msra.mxu1 %v352_v47 }
  0x1b   :  { %187 = vmatprep.subr.bf16.mxu0 %v355_v1  ;;  %334 = vmatprep.subr.bf16.mxu1 %v355_v1 }
  0x1e   :  { %188 = vmatpush1.bf16.msra.mxu0 %v353_v52  ;;  %343 = vmatpush1.bf16.msra.mxu1 %v353_v52 }
  0x1f   :  { %189 = vmatprep.subr.bf16.mxu0 %v355_v1  ;;  %335 = vmatprep.subr.bf16.mxu1 %v355_v1 }
  0x22   :  { %190 = vmatpush1.bf16.msra.mxu0 %v354_v57  ;;  %344 = vmatpush1.bf16.msra.mxu1 %v354_v57 }
  0x25   :  { %206 = vmatmul.mubr.bf16.vlgmr.msra.gmra.mrb[0].mxu0 %v83_v58  ;;  %214 = vmatmul.mubr.bf16.vlgmr.msra.gmra.mrb[0].mxu1 %v85_v59 }
  0xf8   :  { %v207_v61 = vpop.f32.mrb[0].mxu0  ;;  %v215_v62 = vpop.f32.mrb[0].mxu1 }
  0xf9   :  { %v208_v63 = vadd.f32 %v296_v60, %v207_v61  ;;  %v209_v0 = vpop.f32.mrb[1].mxu0  ;;  %v216_v2 = vadd.f32 %v296_v60, %v215_v62  ;;  %v217_v3 = vpop.f32.mrb[1].mxu1 }
  0xfa   :  { %v210_v5 = vpop.f32.mrb[2].mxu0  ;;  %v218_v6 = vpop.f32.mrb[2].mxu1 }
  0xfb   :  { %v211_v7 = vadd.f32 %v296_v60, %v210_v5  ;;  %v212_v1 = vpop.f32.mrb[3].mxu0  ;;  %v219_v8 = vadd.f32 %v296_v60, %v218_v6  ;;  %v220_v9 = vpop.f32.mrb[3].mxu1  ;;  %v270_v10 = vmul.f32 %v208_v63, %v208_v63  ;;  %v272_v11 = vmul.f32 %v216_v2, %v216_v2 }
  0xfd   :  { %v319_v12 = vpack.c.bf16 %v211_v7, %v208_v63  ;;  %v261_v13 = vadd.f32 %v211_v7, %v208_v63  ;;  %v271_v14 = vmul.f32 %v211_v7, %v211_v7  ;;  %v324_v15 = vpack.c.bf16 %v219_v8, %v216_v2 }
  0xfe   :  { %v273_v19 = vmul.f32 %v219_v8, %v219_v8 }
  0xff   :  { %320 = vst [vmem:[%s479_s5] sm:$0xff] %v319_v12   ;;  %v274_v16 = vadd.f32 %v271_v14, %v270_v10  ;;  %326 = vst [vmem:[%s479_s5 + $0x8] sm:$0xff] %v324_v15   ;;  %v262_v17 = vadd.f32 %v261_v13, %v216_v2 }
 0x101   :  { %v263_v18 = vadd.f32 %v262_v17, %v219_v8  ;;  %v275_v20 = vadd.f32 %v274_v16, %v272_v11 }
 0x103   :  { %v264_v21 = vrot.slane %v263_v18, 4  ;;  %v276_v22 = vadd.f32 %v275_v20, %v273_v19 }
 0x105   :  { %v265_v23 = vadd.f32 %v264_v21, %v263_v18  ;;  %v277_v24 = vrot.slane %v276_v22, 4 }
 0x107   :  { %v266_v25 = vrot.slane %v265_v23, 2  ;;  %v278_v26 = vadd.f32 %v277_v24, %v276_v22 }
 0x109   :  { %v267_v27 = vadd.f32 %v266_v25, %v265_v23  ;;  %v279_v28 = vrot.slane %v278_v26, 2 }
 0x10b   :  { %v280_v29 = vadd.f32 %v279_v28, %v278_v26  ;;  %v268_v30 = vrot.slane %v267_v27, 1 }
 0x10d   :  { %v281_v31 = vrot.slane %v280_v29, 1  ;;  %v269_v33 = vadd.f32 %v268_v30, %v267_v27 }
 0x10f   :  { %v282_v32 = vadd.f32 %v281_v31, %v280_v29 }
 0x111   :  { %v285_v34 = vsel %vm284_vm1, %v282_v32, 0.0 }
 0x112   :  { %v286_v35 = vsel %vm283_vm2, %v269_v33, %v285_v34 }
 0x113   :  { %287 = vst [vmem:[%s480_s6] sm:$0xff] %v286_v35 }

// kernel: vit_forward.20
= control target key start
LH: loop header
LB: loop body
LE: loop exit
PB: predicated region body
PF: predicated region fallthrough
CT: control target
= control target key end

     0   :  { %s353_s1 = inlined_call_operand.vmem [shape: bf16[128,128], index: 1, kind: input, shape index: {}]   ;;  %s354_s0 = inlined_call_operand.vmem [shape: bf16[32,128], index: 0, kind: input, shape index: {}]   ;;  %s355_s3 = inlined_call_operand.vmem [shape: f32[1,128], index: 3, kind: input, shape index: {}]   ;;  %s356_s4 = inlined_call_operand.vmem [shape: f32[1,128], index: 4, kind: input, shape index: {}]   ;;  %s357_s2 = inlined_call_operand.vmem [shape: f32[1,128], index: 2, kind: input, shape index: {}]   ;;  %s358_s5 = inlined_call_operand.vmem [shape: bf16[32,128], index: 5, kind: output, shape index: {}]  }
   0x1   :  { %v270_v0 = vld [vmem:[%s353_s1] sm:$0xff]   ;;  %v271_v1 = vld [vmem:[%s353_s1 + $0x8] sm:$0xff]   ;;  %v272_v2 = vld [vmem:[%s353_s1 + $0x10] sm:$0xff]  }
   0x2   :  { %250 = vmatprep.subr.bf16.mxu0 %v270_v0  ;;  %v273_v3 = vld [vmem:[%s353_s1 + $0x18] sm:$0xff]   ;;  %v221_v4 = vld [vmem:[%s354_s0] sm:$0xff]   ;;  %v238_v9 = vld [vmem:[%s354_s0 + $0x8] sm:$0xff]  }
   0x3   :  { %251 = vmatpush3.bf16.msra.mxu0 %v270_v0  ;;  %v201_v5 = vld [vmem:[%s355_s3] ss:$0 sm:$0xff]  ;;  %v222_v6 = vunpack.c.l.bf16 %v221_v4  ;;  %v223_v7 = vunpack.c.h.bf16 %v221_v4  ;;  %v226_v15 = vunpack.c.l.bf16 %v238_v9  ;;  %v227_v16 = vunpack.c.h.bf16 %v238_v9  ;;  %v275_v19 = vld [vmem:[%s353_s1 + $0x28] sm:$0xff]   ;;  %v276_v23 = vld [vmem:[%s353_s1 + $0x30] sm:$0xff]  }
   0x4   :  { %252 = vmatprep.subr.bf16.mxu0 %v271_v1  ;;  %v202_v8 = vld [vmem:[%s356_s4] ss:$0 sm:$0xff]  ;;  %v277_v26 = vld [vmem:[%s353_s1 + $0x38] sm:$0xff]  }
   0x5   :  { %v36_v10 = vmul.f32 %v222_v6, %v201_v5  ;;  %v37_v11 = vmul.f32 %v223_v7, %v201_v5  ;;  %v274_v12 = vld [vmem:[%s353_s1 + $0x20] sm:$0xff]   ;;  %v38_v21 = vmul.f32 %v226_v15, %v201_v5  ;;  %v39_v22 = vmul.f32 %v227_v16, %v201_v5 }
   0x6   :  { %v203_v31 = vld [vmem:[%s357_s2] ss:$0 sm:$0xff] }
   0x7   :  { %253 = vmatpush3.bf16.msra.mxu0 %v271_v1  ;;  %v47_v13 = vadd.f32 %v202_v8, %v36_v10  ;;  %v48_v14 = vadd.f32 %v202_v8, %v37_v11  ;;  %v49_v24 = vadd.f32 %v202_v8, %v38_v21  ;;  %v50_v25 = vadd.f32 %v202_v8, %v39_v22 }
   0x8   :  { %254 = vmatprep.subr.bf16.mxu0 %v272_v2 }
   0x9   :  { %v51_v17 = vmax.f32 %v47_v13, 0.0  ;;  %v52_v18 = vmax.f32 %v48_v14, 0.0  ;;  %v53_v27 = vmax.f32 %v49_v24, 0.0  ;;  %v54_v28 = vmax.f32 %v50_v25, 0.0 }
   0xb   :  { %255 = vmatpush3.bf16.msra.mxu0 %v272_v2  ;;  %v55_v20 = vpack.c.bf16 %v52_v18, %v51_v17  ;;  %v56_v29 = vpack.c.bf16 %v54_v28, %v53_v27 }
   0xc   :  { %256 = vmatprep.subr.bf16.mxu0 %v273_v3 }
   0xd   :  { %266 = vmatprep.mubr.bf16.mxu0 %v55_v20 }
   0xf   :  { %257 = vmatpush3.bf16.msra.mxu0 %v273_v3 }
  0x10   :  { %258 = vmatprep.subr.bf16.mxu0 %v274_v12 }
  0x13   :  { %259 = vmatpush3.bf16.msra.mxu0 %v274_v12 }
  0x14   :  { %260 = vmatprep.subr.bf16.mxu0 %v275_v19 }
  0x17   :  { %261 = vmatpush3.bf16.msra.mxu0 %v275_v19 }
  0x18   :  { %262 = vmatprep.subr.bf16.mxu0 %v276_v23 }
  0x1b   :  { %263 = vmatpush3.bf16.msra.mxu0 %v276_v23 }
  0x1c   :  { %264 = vmatprep.subr.bf16.mxu0 %v277_v26 }
  0x1f   :  { %265 = vmatpush3.bf16.msra.mxu0 %v277_v26 }
  0x22   :  { %267 = vmatmul.mubr.bf16.vlgmr.msra.gmra.mrb[0].mxu0 %v56_v29 }
  0xf5   :  { %v268_v30 = vpop.f32.mrb[0].mxu0 }
  0xf6   :  { %v162_v32 = vpop.f32.mrb[1].mxu0  ;;  %v171_v34 = vadd.f32 %v268_v30, %v203_v31 }
  0xf7   :  { %v269_v33 = vpop.f32.mrb[2].mxu0  ;;  %v163_v37 = vadd.f32 %v203_v31, %v162_v32 }
  0xf8   :  { %v174_v35 = vadd.f32 %v269_v33, %v203_v31  ;;  %v165_v36 = vpop.f32.mrb[3].mxu0 }
  0xf9   :  { %v166_v38 = vadd.f32 %v203_v31, %v165_v36 }
  0xfa   :  { %v236_v39 = vpack.c.bf16 %v174_v35, %v171_v34 }
  0xfb   :  { %v231_v40 = vpack.c.bf16 %v166_v38, %v163_v37 }
  0xfc   :  { %239 = vst [vmem:[%s358_s5 + $0x8] sm:$0xff] %v236_v39  }
  0xfd   :  { %232 = vst [vmem:[%s358_s5] sm:$0xff] %v231_v40  }

// kernel: vit_forward.21
= control target key start
LH: loop header
LB: loop body
LE: loop exit
PB: predicated region body
PF: predicated region fallthrough
CT: control target
= control target key end

     0   :  { %v429_v14 = vmov 0.0   ;;  %vm430_vm0 = vmmov 0   ;;  %s562_s0 = inlined_call_operand.vmem [shape: bf16[48,128], index: 0, kind: input, shape index: {}]   ;;  %s563_s1 = inlined_call_operand.vmem [shape: bf16[128,128], index: 1, kind: input, shape index: {}]   ;;  %s564_s2 = inlined_call_operand.vmem [shape: f32[1,128], index: 2, kind: input, shape index: {}]   ;;  %s565_s3 = inlined_call_operand.vmem [shape: f32[1,128], index: 3, kind: input, shape index: {}]   ;;  %s566_s4 = inlined_call_operand.vmem [shape: bf16[48,128], index: 4, kind: output, shape index: {}]  }
   0x1   :  { %v348_v0 = vld [vmem:[%s562_s0 + $0x8] sm:$0xff]   ;;  %v322_v4 = vld [vmem:[%s562_s0] sm:$0xff]   ;;  %v349_v7 = vld [vmem:[%s562_s0 + $0x10] sm:$0xff]   ;;  %391 = vmatprep.subr.bf16.mxu1 %v429_v14  ;;  %363 = vmatprep.subr.bf16.mxu0 %v429_v14 }
   0x2   :  { %v459_v1 = vunpack.c.l.bf16 %v348_v0  ;;  %v461_v2 = vunpack.c.h.bf16 %v348_v0  ;;  %v472_v6 = vunpack.c.l.bf16 %v322_v4  ;;  %v477_v8 = vunpack.c.h.bf16 %v322_v4  ;;  %v409_v13 = vld [vmem:[%s563_s1] sm:$0xff]   ;;  %v410_v17 = vld [vmem:[%s563_s1 + $0x8] sm:$0xff]   ;;  %v411_v18 = vld [vmem:[%s563_s1 + $0x10] sm:$0xff]   ;;  %383 = vmatprep.mubr.msk.bf16.mxu1 %vm430_vm0, %v429_v14  ;;  %379 = vmatprep.mubr.msk.bf16.mxu0 %vm430_vm0, %v429_v14 }
   0x3   :  { %v480_v9 = vunpack.c.l.bf16 %v349_v7  ;;  %v483_v10 = vunpack.c.h.bf16 %v349_v7  ;;  %399 = vmatpush3.bf16.msra.mxu1 %v409_v13  ;;  %364 = vmatpush3.bf16.msra.mxu0 %v409_v13  ;;  %v412_v19 = vld [vmem:[%s563_s1 + $0x18] sm:$0xff]   ;;  %v413_v20 = vld [vmem:[%s563_s1 + $0x20] sm:$0xff]   ;;  %v414_v21 = vld [vmem:[%s563_s1 + $0x28] sm:$0xff]  }
   0x4   :  { %34 = vadd.xlane.f32.xlu0 %v459_v1  ;;  %v44_v3 = vmul.f32 %v459_v1, %v459_v1  ;;  %v45_v5 = vmul.f32 %v461_v2, %v461_v2  ;;  %v42_v11 = vmul.f32 %v472_v6, %v472_v6  ;;  %v43_v12 = vmul.f32 %v477_v8, %v477_v8  ;;  %v415_v22 = vld [vmem:[%s563_s1 + $0x30] sm:$0xff]   ;;  %v416_v23 = vld [vmem:[%s563_s1 + $0x38] sm:$0xff]  }
   0x5   :  { %v46_v15 = vmul.f32 %v480_v9, %v480_v9  ;;  %392 = vmatprep.subr.bf16.mxu1 %v429_v14  ;;  %v47_v16 = vmul.f32 %v483_v10, %v483_v10  ;;  %365 = vmatprep.subr.bf16.mxu0 %v429_v14 }
   0x6   :  { %52 = vadd.xlane.f32.xlu1 %v44_v3 }
   0x7   :  { %400 = vmatpush3.bf16.msra.mxu1 %v410_v17  ;;  %366 = vmatpush3.bf16.msra.mxu0 %v410_v17 }
   0x8   :  { %36 = vadd.xlane.f32.xlu0 %v461_v2  ;;  %393 = vmatprep.subr.bf16.mxu1 %v429_v14 }
   0x9   :  { %367 = vmatprep.subr.bf16.mxu0 %v429_v14 }
   0xa   :  { %54 = vadd.xlane.f32.xlu1 %v45_v5 }
   0xb   :  { %401 = vmatpush3.bf16.msra.mxu1 %v411_v18  ;;  %368 = vmatpush3.bf16.msra.mxu0 %v411_v18 }
   0xc   :  { %30 = vadd.xlane.f32.xlu0 %v472_v6  ;;  %394 = vmatprep.subr.bf16.mxu1 %v429_v14 }
   0xd   :  { %369 = vmatprep.subr.bf16.mxu0 %v429_v14 }
   0xe   :  { %32 = vadd.xlane.f32.xlu1 %v477_v8 }
   0xf   :  { %402 = vmatpush3.bf16.msra.mxu1 %v412_v19  ;;  %370 = vmatpush3.bf16.msra.mxu0 %v412_v19 }
  0x10   :  { %38 = vadd.xlane.f32.xlu0 %v480_v9  ;;  %395 = vmatprep.subr.bf16.mxu1 %v429_v14 }
  0x11   :  { %371 = vmatprep.subr.bf16.mxu0 %v429_v14 }
  0x12   :  { %40 = vadd.xlane.f32.xlu1 %v483_v10 }
  0x13   :  { %403 = vmatpush3.bf16.msra.mxu1 %v413_v20  ;;  %372 = vmatpush3.bf16.msra.mxu0 %v413_v20 }
  0x14   :  { %48 = vadd.xlane.f32.xlu0 %v42_v11  ;;  %396 = vmatprep.subr.bf16.mxu1 %v429_v14  ;;  %v299_v11 = vld [vmem:[%s564_s2] ss:$0 sm:$0xff] }
  0x15   :  { %373 = vmatprep.subr.bf16.mxu0 %v429_v14 }
  0x16   :  { %50 = vadd.xlane.f32.xlu1 %v43_v12 }
  0x17   :  { %404 = vmatpush3.bf16.msra.mxu1 %v414_v21  ;;  %374 = vmatpush3.bf16.msra.mxu0 %v414_v21  ;;  %v300_v21 = vld [vmem:[%s565_s3] ss:$0 sm:$0xff] }
  0x18   :  { %56 = vadd.xlane.f32.xlu0 %v46_v15  ;;  %397 = vmatprep.subr.bf16.mxu1 %v429_v14 }
  0x19   :  { %375 = vmatprep.subr.bf16.mxu0 %v429_v14 }
  0x1a   :  { %58 = vadd.xlane.f32.xlu1 %v47_v16 }
  0x1b   :  { %405 = vmatpush3.bf16.msra.mxu1 %v415_v22  ;;  %376 = vmatpush3.bf16.msra.mxu0 %v415_v22 }
  0x1c   :  { %398 = vmatprep.subr.bf16.mxu1 %v429_v14  ;;  %377 = vmatprep.subr.bf16.mxu0 %v429_v14 }
  0x1f   :  { %406 = vmatpush3.bf16.msra.mxu1 %v416_v23  ;;  %378 = vmatpush3.bf16.msra.mxu0 %v416_v23 }
  0x91   :  { %v35_v24 = vpop.xlane.xlu0 %34 }
  0x92   :  { %v63_v25 = vmul.f32 0.03125, %v35_v24 }
  0x93   :  { %v53_v26 = vpop.xlane.xlu1 %52 }
  0x94   :  { %v75_v27 = vmul.f32 %v63_v25, %v63_v25  ;;  %v69_v28 = vmul.f32 0.03125, %v53_v26  ;;  %v93_v55 = vsub.f32 %v459_v1, %v63_v25 }
  0x95   :  { %v37_v29 = vpop.xlane.xlu0 %36 }
  0x96   :  { %v81_v30 = vsub.f32 %v69_v28, %v75_v27  ;;  %v64_v31 = vmul.f32 0.03125, %v37_v29 }
  0x97   :  { %v55_v32 = vpop.xlane.xlu1 %54 }
  0x98   :  { %v87_v33 = vmax.f32 %v81_v30, 0.0  ;;  %v76_v34 = vmul.f32 %v64_v31, %v64_v31  ;;  %v70_v35 = vmul.f32 0.03125, %v55_v32  ;;  %v94_v12 = vsub.f32 %v461_v2, %v64_v31 }
  0x99   :  { %v31_v36 = vpop.xlane.xlu0 %30 }
  0x9a   :  { %v99_v37 = vadd.f32 1e-05, %v87_v33  ;;  %v82_v38 = vsub.f32 %v70_v35, %v76_v34  ;;  %v61_v43 = vmul.f32 0.03125, %v31_v36 }
  0x9b   :  { %v33_v39 = vpop.xlane.xlu1 %32 }
  0x9c   :  { %417 = vrsqrt.f32 %v99_v37  ;;  %v88_v40 = vmax.f32 %v82_v38, 0.0  ;;  %v62_v45 = vmul.f32 0.03125, %v33_v39  ;;  %v73_v47 = vmul.f32 %v61_v43, %v61_v43 }
  0x9d   :  { %v39_v41 = vpop.xlane.xlu0 %38  ;;  %v91_v26 = vsub.f32 %v472_v6, %v61_v43 }
  0x9e   :  { %v100_v42 = vadd.f32 1e-05, %v88_v40  ;;  %v65_v48 = vmul.f32 0.03125, %v39_v41  ;;  %v74_v52 = vmul.f32 %v62_v45, %v62_v45  ;;  %v92_v28 = vsub.f32 %v477_v8, %v62_v45 }
  0x9f   :  { %v41_v44 = vpop.xlane.xlu1 %40 }
  0xa0   :  { %419 = vrsqrt.f32 %v100_v42  ;;  %v66_v50 = vmul.f32 0.03125, %v41_v44  ;;  %v77_v58 = vmul.f32 %v65_v48, %v65_v48  ;;  %v95_v31 = vsub.f32 %v480_v9, %v65_v48 }
  0xa1   :  { %v49_v46 = vpop.xlane.xlu0 %48 }
  0xa2   :  { %v67_v49 = vmul.f32 0.03125, %v49_v46  ;;  %v78_v62 = vmul.f32 %v66_v50, %v66_v50  ;;  %v96_v35 = vsub.f32 %v483_v10, %v66_v50 }
  0xa3   :  { %v51_v51 = vpop.xlane.xlu1 %50 }
  0xa4   :  { %v79_v53 = vsub.f32 %v67_v49, %v73_v47  ;;  %v68_v54 = vmul.f32 0.03125, %v51_v51 }
  0xa5   :  { %v57_v56 = vpop.xlane.xlu0 %56 }
  0xa6   :  { %v418_v57 = vpop.eup %417  ;;  %v85_v59 = vmax.f32 %v79_v53, 0.0  ;;  %v80_v60 = vsub.f32 %v68_v54, %v74_v52  ;;  %v71_v61 = vmul.f32 0.03125, %v57_v56 }
  0xa7   :  { %v59_v63 = vpop.xlane.xlu1 %58  ;;  %v111_v0 = vmul.f32 %v418_v57, %v93_v55 }
  0xa8   :  { %v97_v3 = vadd.f32 1e-05, %v85_v59  ;;  %v86_v4 = vmax.f32 %v80_v60, 0.0  ;;  %v83_v5 = vsub.f32 %v71_v61, %v77_v58  ;;  %v72_v7 = vmul.f32 0.03125, %v59_v63 }
  0xa9   :  { %v124_v18 = vmul.f32 %v299_v11, %v111_v0 }
  0xaa   :  { %v420_v1 = vpop.eup %419  ;;  %421 = vrsqrt.f32 %v97_v3  ;;  %v98_v13 = vadd.f32 1e-05, %v86_v4  ;;  %v89_v15 = vmax.f32 %v83_v5, 0.0  ;;  %v84_v16 = vsub.f32 %v72_v7, %v78_v62 }
  0xab   :  { %v112_v17 = vmul.f32 %v420_v1, %v94_v12  ;;  %v137_v24 = vadd.f32 %v300_v21, %v124_v18 }
  0xac   :  { %423 = vrsqrt.f32 %v98_v13  ;;  %v101_v19 = vadd.f32 1e-05, %v89_v15  ;;  %v90_v20 = vmax.f32 %v84_v16, 0.0 }
  0xad   :  { %v125_v22 = vmul.f32 %v299_v11, %v112_v17 }
  0xae   :  { %425 = vrsqrt.f32 %v101_v19  ;;  %v102_v23 = vadd.f32 1e-05, %v90_v20 }
  0xaf   :  { %v138_v25 = vadd.f32 %v300_v21, %v125_v22 }
  0xb0   :  { %427 = vrsqrt.f32 %v102_v23 }
  0xb1   :  { %v142_v2 = vpack.c.bf16 %v138_v25, %v137_v24 }
  0xb3   :  { %384 = vmatmul.mubr.bf16.vlgmr.msra.gmra.mrb[0].mxu1 %v142_v2 }
  0xb4   :  { %v422_v27 = vpop.eup %421  ;;  %387 = vmatprep.mubr.msk.bf16.mxu1 %vm430_vm0, %v429_v14 }
  0xb5   :  { %v109_v29 = vmul.f32 %v422_v27, %v91_v26 }
  0xb6   :  { %v424_v30 = vpop.eup %423 }
  0xb7   :  { %v110_v32 = vmul.f32 %v424_v30, %v92_v28  ;;  %v122_v33 = vmul.f32 %v299_v11, %v109_v29 }
  0xb8   :  { %v426_v34 = vpop.eup %425 }
  0xb9   :  { %v123_v36 = vmul.f32 %v299_v11, %v110_v32  ;;  %v113_v37 = vmul.f32 %v426_v34, %v95_v31  ;;  %v135_v6 = vadd.f32 %v300_v21, %v122_v33 }
  0xba   :  { %v428_v38 = vpop.eup %427 }
  0xbb   :  { %v136_v39 = vadd.f32 %v300_v21, %v123_v36  ;;  %v114_v40 = vmul.f32 %v428_v38, %v96_v35  ;;  %v126_v41 = vmul.f32 %v299_v11, %v113_v37 }
  0xbd   :  { %v141_v42 = vpack.c.bf16 %v136_v39, %v135_v6  ;;  %v127_v14 = vmul.f32 %v299_v11, %v114_v40  ;;  %v139_v8 = vadd.f32 %v300_v21, %v126_v41 }
  0xbf   :  { %380 = vmatmul.mubr.bf16.vlgmr.msra.gmra.mrb[0].mxu0 %v141_v42  ;;  %v140_v43 = vadd.f32 %v300_v21, %v127_v14 }
  0xc1   :  { %v143_v44 = vpack.c.bf16 %v140_v43, %v139_v8 }
  0xc3   :  { %388 = vmatmul.mubr.bf16.gmra.mrb[4].mxu1 %v143_v44 }
 0x186   :  { %v250_v9 = vpop.f32.mrb[0].mxu1 }
 0x187   :  { %v385_v45 = vpop.f32.mrb[1].mxu1 }
 0x188   :  { %v253_v46 = vpop.f32.mrb[2].mxu1 }
 0x189   :  { %v341_v47 = vpack.c.bf16 %v253_v46, %v250_v9  ;;  %v386_v48 = vpop.f32.mrb[3].mxu1 }
 0x18b   :  { %350 = vst [vmem:[%s566_s4 + $0x8] sm:$0xff] %v341_v47  }
 0x192   :  { %v242_v10 = vpop.f32.mrb[0].mxu0 }
 0x193   :  { %v381_v49 = vpop.f32.mrb[1].mxu0 }
 0x194   :  { %v245_v50 = vpop.f32.mrb[2].mxu0 }
 0x195   :  { %v336_v51 = vpack.c.bf16 %v245_v50, %v242_v10  ;;  %v382_v52 = vpop.f32.mrb[3].mxu0 }
 0x196   :  { %v258_v53 = vpop.f32.mrb[4].mxu1 }
 0x197   :  { %337 = vst [vmem:[%s566_s4] sm:$0xff] %v336_v51   ;;  %v389_v54 = vpop.f32.mrb[5].mxu1 }
 0x198   :  { %v261_v55 = vpop.f32.mrb[6].mxu1 }
 0x199   :  { %v346_v56 = vpack.c.bf16 %v261_v55, %v258_v53  ;;  %v390_v57 = vpop.f32.mrb[7].mxu1 }
 0x19b   :  { %351 = vst [vmem:[%s566_s4 + $0x10] sm:$0xff] %v346_v56  }

// kernel: vit_forward.22
= control target key start
LH: loop header
LB: loop body
LE: loop exit
PB: predicated region body
PF: predicated region fallthrough
CT: control target
= control target key end

     0   :  { %s1598_s6 = smov 0   ;;  %s1874_s0 = inlined_call_operand.vmem [shape: bf16[2,24,128], index: 0, kind: input, shape index: {}]   ;;  %s1875_s1 = inlined_call_operand.vmem [shape: f32[2,24,128], index: 1, kind: output, shape index: {}]  }
   0x1 LB: > { %s1198_s7 = sadd.s32 4294967295, %s1569_s6   ;;  %p1202_p0 = scmp.ge.s32.totalorder %s1569_s6, 1  ;;  %s1569_s6 = sphi %s1598_s6, %s11_s6  }
   0x2   : > { %p87_p1 = scmp.lt.s32.totalorder %s1569_s6, 3 }
   0x4   : > { %p88_p2 = pnand %p1202_p0, %p87_p1 }
   0x5   : > { %p107_p3 = scmp.lt.s32.totalorder (!%p88_p2), %s1198_s7, 1  ;;  %v1571_v0 = vmov (!%p88_p2), 0.0|0.0   ;;  %s1572_s12 = smov (!%p88_p2), 96   ;;  %vm1573_vm0 = vmmov (!%p88_p2), 0   ;;  %v1574_v7 = vmov (!%p88_p2), 0.0   ;;  %vm138_vm1 = vcmask (!%p88_p2), 64512  }
   0x6   : > { %91 = sbr.rel (%p88_p2) target bundleno = 1281 (0x501), region = 24  ;;  %1415 = vmatprep.subr.bf16.mxu0 (!%p88_p2), %v1571_v0  ;;  %1419 = vmatprep.subr.bf16.mxu1 (!%p88_p2), %v1571_v0  ;;  %vm1632_vm2 = vmpackc.low (!%p88_p2), %vm138_vm1, %vm138_vm1  ;;  %v123_v14 = vlaneseq (!%p88_p2)  ;;  %vm237_vm4 = vcmask (!%p88_p2), 195584   ;;  %s1575_s13 = smov (!%p88_p2), 64   ;;  %vm625_vm5 = vcmask (!%p88_p2), 130112   ;;  %vm882_vm6 = vcmask (!%p88_p2), 195712  }
   0x7   : > { %1301 = vmatprep.mubr.msk.f32.mxu0 (!%p88_p2), %vm1573_vm0, %v1574_v7  ;;  %1316 = vmatprep.mubr.msk.f32.mxu1 (!%p88_p2), %vm1573_vm0, %v1574_v7  ;;  %s1576_s14 = smov (!%p88_p2), 88   ;;  %s1577_s15 = smov (!%p88_p2), 120   ;;  %vm1139_vm7 = vcmask (!%p88_p2), 261312  }
   0x8   : > { %v1653_v15 = vand.u32 (!%p88_p2), 127, %v123_v14  ;;  %s1578_s16 = smov (!%p88_p2), 112   ;;  %s1579_s17 = smov (!%p88_p2), 80  }
   0x9   : > { %s1580_s18 = smov (!%p88_p2), 104   ;;  %s1581_s19 = smov (!%p88_p2), 72  }
   0xa   : > { %vm125_vm3 = vcmp.lt.s32.totalorder (!%p88_p2), %v1653_v15, 17  ;;  %s1582_s20 = smov (!%p88_p2), 56   ;;  %s1583_s21 = smov (!%p88_p2), 48  }
   0xb   : > { %s1584_s22 = smov (!%p88_p2), 40   ;;  %s1585_s27 = smov (!%p88_p2), 8  }
   0xc   : > { %s1586_s28 = smov (!%p88_p2), 16   ;;  %s1587_s29 = smov (!%p88_p2), 24  }
   0xd   : > { %s1879_s7 = smov (!%p107_p3, %s1198_s7), 1 }
   0xe   : > { %s1443_s8 = smul.u32 12, %s1879_s7 }
   0xf   : > { %s1444_s23 = smul.u32 24, %s1879_s7 }
  0x10   : > { %s111_s11 = scalar_lea.vmem %s1874_s0, %s1443_s8 }
  0x11   : > { %v1244_v1 = vld [vmem:[%s111_s11] sm:$0xff]   ;;  %v119_v4 = vld [vmem:[%s111_s11 + $0x8] sm:$0xf]  ;;  %s1845_s26 = scalar_lea.vmem %s1875_s1, %s1444_s23 }
  0x12   : > { %v1614_v2 = vunpack.c.l.bf16 %v1244_v1  ;;  %v1616_v3 = vunpack.c.h.bf16 %v1244_v1  ;;  %v1623_v6 = vunpack.c.l.bf16 %v119_v4  ;;  %126 = vst [vmem:[%s1845_s26] sm:$0xff] %v1574_v7  ;;  %127 = vst [vmem:[%s1845_s26 + $0x8] sm:$0xff] %v1574_v7 }
  0x13   : > { %128 = vst [vmem:[%s1845_s26 + $0x10] sm:$0xff] %v1574_v7 }
  0x14   : > { %v1620_v5 = vpack.i.bf16 %v1616_v3, %v1614_v2  ;;  %v1490_v31 = vpack.i.bf16 %v1623_v6, %v1616_v3 }
  0x16   : > { %1471 = vrot.lane.b32.xlu0 %v1620_v5, %s1572_s12 }
  0x1a   : > { %136 = vrot.lane.b32.xlu0 %v1623_v6, %s1572_s12 }
  0x88   : > { %v1472_v8 = vpop.permute.xlu0 %1471 }
  0x89   : > { %v1474_v9 = vunpack.i.h.bf16 %v1472_v8  ;;  %v1473_v10 = vunpack.i.l.bf16 %v1472_v8 }
  0x8b   : > { %v1416_v12 = vpack.c.bf16 %v1474_v9, %v1473_v10 }
  0x8c   : > { %v137_v13 = vpop.permute.xlu0 %136 }
  0x8d   : > { %1418 = vmatpush3.bf16.xpose.msk.msra.mxu0 %vm1632_vm2, %v1416_v12 }
  0x8e   : > { %1299 = vmatprep.subr.mxu0 %v1574_v7 }
  0x95   : > { %1300 = vmatpush3.xpose.msk.msra.mxu0 %vm138_vm1, %v137_v13 }
  0x96   : > { %1426 = vmatprep.subr.bf16.mxu0 %v1571_v0 }
  0x98   : > { %1302 = vmatmul.mubr.msk.f32.vlgmr.msra.gmra.mrb[0].mxu0 %vm138_vm1, %v1614_v2 }
  0x99   : > { %1304 = vmatprep.mubr.msk.f32.mxu0 %vm1573_vm0, %v1574_v7 }
  0x9c   : > { %1305 = vmatmul.mubr.msk.f32.gmra.mrb[2].mxu0 %vm138_vm1, %v1616_v3 }
  0x9d   : > { %1307 = vmatprep.mubr.msk.f32.mxu0 %vm1573_vm0, %v1574_v7 }
  0xa0   : > { %1308 = vmatmul.mubr.msk.f32.gmra.mrb[4].mxu0 %vm138_vm1, %v1623_v6 }
  0xa1   : > { %1346 = vmatprep.mubr.msk.f32.mxu0 %vm1573_vm0, %v1574_v7 }
 0x16b   : > { %v217_v16 = vpop.f32.mrb[0].mxu0 }
 0x16c   : > { %v231_v17 = vmul.f32 0.35355338, %v217_v16  ;;  %v1303_v18 = vpop.f32.mrb[1].mxu0 }
 0x16e   : > { %v234_v19 = vsel %vm125_vm3, %v231_v17, -1e+30 }
 0x16f   : > { %v222_v20 = vpop.f32.mrb[2].mxu0  ;;  %v238_v21 = vsel %vm237_vm4, %v234_v19, -inf }
 0x170   : > { %v232_v22 = vmul.f32 0.35355338, %v222_v20  ;;  %239 = vmax.xlane.f32.xlu1 %v238_v21  ;;  %v1306_v23 = vpop.f32.mrb[3].mxu0 }
 0x172   : > { %v235_v24 = vsel %vm125_vm3, %v232_v22, -1e+30 }
 0x173   : > { %v227_v25 = vpop.f32.mrb[4].mxu0  ;;  %v241_v26 = vsel %vm237_vm4, %v235_v24, -inf }
 0x174   : > { %v233_v27 = vmul.f32 0.35355338, %v227_v25  ;;  %242 = vmax.xlane.f32.xlu1 %v241_v26  ;;  %v1309_v28 = vpop.f32.mrb[5].mxu0 }
 0x176   : > { %v236_v29 = vsel %vm125_vm3, %v233_v27, -1e+30 }
 0x177   : > { %v244_v30 = vsel %vm237_vm4, %v236_v29, -inf }
 0x178   : > { %245 = vmax.xlane.f32.xlu0 %v244_v30 }
 0x185   : > { %1476 = vrot.lane.b32.xlu1 %v1620_v5, %s1575_s13 }
 0x189   : > { %269 = vrot.lane.b32.xlu1 %v1623_v6, %s1575_s13 }
 0x18d   : > { %1481 = vrot.lane.b32.xlu1 %v1620_v5, %s1576_s14 }
 0x18e   : > { %372 = vrot.lane.b32.xlu0 %v1614_v2, %s1577_s15 }
 0x191   : > { %382 = vrot.lane.b32.xlu1 %v1623_v6, %s1576_s14 }
 0x192   : > { %633 = vrot.lane.b32.xlu0 %v1623_v6, %s1578_s16 }
 0x195   : > { %1486 = vrot.lane.b32.xlu1 %v1620_v5, %s1579_s17 }
 0x196   : > { %886 = vrot.lane.b32.xlu0 %v1614_v2, %s1580_s18 }
 0x199   : > { %1491 = vrot.lane.b32.xlu1 %v1490_v31, %s1577_s15 }
 0x19a   : > { %890 = vrot.lane.b32.xlu0 %v1623_v6, %s1580_s18 }
 0x19d   : > { %639 = vrot.lane.b32.xlu1 %v1623_v6, %s1579_s17 }
 0x19e   : > { %1501 = vrot.lane.b32.xlu0 %v1620_v5, %s1582_s20 }
 0x1a1   : > { %1496 = vrot.lane.b32.xlu1 %v1620_v5, %s1581_s19 }
 0x1a2   : > { %1506 = vrot.lane.b32.xlu0 %v1620_v5, %s1583_s21 }
 0x1a5   : > { %629 = vrot.lane.b32.xlu1 %v1614_v2, %s1578_s16 }
 0x1a9   : > { %631 = vrot.lane.b32.xlu1 %v1616_v3, %s1578_s16 }
 0x1ad   : > { %896 = vrot.lane.b32.xlu1 %v1623_v6, %s1581_s19 }
 0x1b1   : > { %888 = vrot.lane.b32.xlu1 %v1616_v3, %s1580_s18 }
 0x1b5   : > { %513 = vrot.lane.b32.xlu1 %v1623_v6, %s1582_s20 }
 0x1b9   : > { %770 = vrot.lane.b32.xlu1 %v1623_v6, %s1583_s21 }
 0x1fd   : > { %v240_v32 = vpop.xlane.xlu1 %239 }
 0x1fe   : > { %v247_v33 = vsub.f32 %v234_v19, %v240_v32 }
 0x200   : > { %v250_v34 = vmul.f32 1.442695, %v247_v33 }
 0x201   : > { %v243_v35 = vpop.xlane.xlu1 %242 }
 0x202   : > { %v248_v36 = vsub.f32 %v235_v24, %v243_v35  ;;  %1515 = vpow2.f32 %v250_v34 }
 0x204   : > { %v252_v37 = vmul.f32 1.442695, %v248_v36 }
 0x205   : > { %v1477_v38 = vpop.permute.xlu1 %1476  ;;  %v246_v39 = vpop.xlane.xlu0 %245 }
 0x206   : > { %v1479_v40 = vunpack.i.h.bf16 %v1477_v38  ;;  %v1478_v41 = vunpack.i.l.bf16 %v1477_v38  ;;  %v249_v42 = vsub.f32 %v236_v29, %v246_v39  ;;  %1517 = vpow2.f32 %v252_v37 }
 0x208   : > { %v254_v43 = vmul.f32 1.442695, %v249_v42  ;;  %v1420_v44 = vpack.c.bf16 %v1479_v40, %v1478_v41 }
 0x209   : > { %v270_v45 = vpop.permute.xlu1 %269  ;;  %v373_v59 = vpop.permute.xlu0 %372 }
 0x20a   : > { %1421 = vmatpush3.bf16.msra.mxu1 %v1420_v44  ;;  %1519 = vpow2.f32 %v254_v43 }
 0x20b   : > { %1314 = vmatprep.subr.mxu1 %v1574_v7 }
 0x20c   : > { %v1687_v47 = vpop.eup %1515 }
 0x20d   : > { %v1482_v46 = vpop.permute.xlu1 %1481  ;;  %v634_v9 = vpop.permute.xlu0 %633 }
 0x20e   : > { %1315 = vmatpush3.msra.mxu1 %v270_v45  ;;  %v1484_v48 = vunpack.i.h.bf16 %v1482_v46  ;;  %v1483_v49 = vunpack.i.l.bf16 %v1482_v46 }
 0x20f   : > { %1317 = vmatmul.mubr.msk.f32.vlgmr.msra.gmra.mrb[0].mxu1 %vm237_vm4, %v1687_v47  ;;  %1422 = vmatprep.subr.bf16.mxu1 %v1571_v0 }
 0x210   : > { %1319 = vmatprep.mubr.msk.f32.mxu1 %vm1573_vm0, %v1574_v7  ;;  %v1423_v50 = vpack.c.bf16 %v1484_v48, %v1483_v49  ;;  %v1694_v52 = vpop.eup %1517 }
 0x211   : > { %v383_v51 = vpop.permute.xlu1 %382  ;;  %v887_v11 = vpop.permute.xlu0 %886 }
 0x213   : > { %1320 = vmatmul.mubr.msk.f32.gmra.mrb[2].mxu1 %vm237_vm4, %v1694_v52 }
 0x214   : > { %1322 = vmatprep.mubr.msk.f32.mxu1 %vm1573_vm0, %v1574_v7  ;;  %v1702_v54 = vpop.eup %1519 }
 0x215   : > { %1425 = vmatpush3.bf16.xpose.msk.msra.mxu1 %vm1632_vm2, %v1423_v50  ;;  %v1487_v53 = vpop.permute.xlu1 %1486  ;;  %v891_v13 = vpop.permute.xlu0 %890 }
 0x216   : > { %1329 = vmatprep.subr.mxu1 %v1574_v7  ;;  %v1489_v55 = vunpack.i.h.bf16 %v1487_v53  ;;  %v1488_v56 = vunpack.i.l.bf16 %v1487_v53 }
 0x217   : > { %1323 = vmatmul.mubr.msk.f32.gmra.mrb[4].mxu1 %vm237_vm4, %v1702_v54 }
 0x218   : > { %1331 = vmatprep.mubr.msk.f32.mxu1 %vm1573_vm0, %v1574_v7  ;;  %v1430_v58 = vpack.c.bf16 %v1489_v55, %v1488_v56 }
 0x219   : > { %v1492_v57 = vpop.permute.xlu1 %1491  ;;  %v1502_v14 = vpop.permute.xlu0 %1501 }
 0x21a   : > { %v1493_v62 = vunpack.i.l.bf16 %v1492_v57  ;;  %v1494_v2 = vunpack.i.h.bf16 %v1492_v57  ;;  %v1504_v16 = vunpack.i.h.bf16 %v1502_v14  ;;  %v1503_v17 = vunpack.i.l.bf16 %v1502_v14 }
 0x21c   : > { %v1427_v18 = vpack.c.bf16 %v1504_v16, %v1503_v17 }
 0x21d   : > { %1330 = vmatpush3.xpose.msk.msra.mxu1 %vm138_vm1, %v383_v51  ;;  %v640_v60 = vpop.permute.xlu1 %639  ;;  %v1507_v16 = vpop.permute.xlu0 %1506 }
 0x21e   : > { %1429 = vmatprep.subr.bf16.mxu1 %v1571_v0  ;;  %1428 = vmatpush3.bf16.msra.mxu0 %v1427_v18 }
 0x21f   : > { %1344 = vmatprep.subr.mxu0 %v1574_v7 }
 0x220   : > { %1332 = vmatmul.mubr.msk.f32.vlgmr.msra.gmra.mrb[6].mxu1 %vm138_vm1, %v373_v59 }
 0x221   : > { %1432 = vmatpush3.bf16.xpose.msk.msra.mxu1 %vm1632_vm2, %v1430_v58  ;;  %1334 = vmatprep.mubr.msk.f32.mxu1 %vm1573_vm0, %v1574_v7  ;;  %v1497_v61 = vpop.permute.xlu1 %1496 }
 0x222   : > { %1359 = vmatprep.subr.mxu1 %v1574_v7  ;;  %v1499_v63 = vunpack.i.h.bf16 %v1497_v61  ;;  %v1498_v1 = vunpack.i.l.bf16 %v1497_v61 }
 0x224   : > { %1335 = vmatmul.mubr.msk.f32.gmra.mrb[8].mxu1 %vm138_vm1, %v1493_v62  ;;  %v1437_v4 = vpack.c.bf16 %v1499_v63, %v1498_v1 }
 0x225   : > { %1337 = vmatprep.mubr.msk.f32.mxu1 %vm1573_vm0, %v1574_v7  ;;  %v630_v3 = vpop.permute.xlu1 %629 }
 0x228   : > { %1338 = vmatmul.mubr.msk.f32.gmra.mrb[10].mxu1 %vm138_vm1, %v1494_v2 }
 0x229   : > { %1360 = vmatpush3.xpose.msk.msra.mxu1 %vm138_vm1, %v640_v60  ;;  %1361 = vmatprep.mubr.msk.f32.mxu1 %vm1573_vm0, %v1574_v7  ;;  %v632_v8 = vpop.permute.xlu1 %631 }
 0x22a   : > { %1436 = vmatprep.subr.bf16.mxu1 %v1571_v0 }
 0x22c   : > { %1362 = vmatmul.mubr.msk.f32.vlgmr.msra.gmra.mrb[12].mxu1 %vm138_vm1, %v630_v3 }
 0x22d   : > { %1439 = vmatpush3.bf16.xpose.msk.msra.mxu1 %vm1632_vm2, %v1437_v4  ;;  %1364 = vmatprep.mubr.msk.f32.mxu1 %vm1573_vm0, %v1574_v7  ;;  %v897_v10 = vpop.permute.xlu1 %896 }
 0x22e   : > { %1389 = vmatprep.subr.mxu1 %v1574_v7 }
 0x230   : > { %1365 = vmatmul.mubr.msk.f32.gmra.mrb[14].mxu1 %vm138_vm1, %v632_v8 }
 0x231   : > { %1367 = vmatprep.mubr.msk.f32.mxu1 %vm1573_vm0, %v1574_v7  ;;  %v889_v12 = vpop.permute.xlu1 %888 }
 0x234   : > { %1368 = vmatmul.mubr.msk.f32.gmra.mrb[16].mxu1 %vm138_vm1, %v634_v9 }
 0x235   : > { %1390 = vmatpush3.xpose.msk.msra.mxu1 %vm138_vm1, %v897_v10  ;;  %1391 = vmatprep.mubr.msk.f32.mxu1 %vm1573_vm0, %v1574_v7  ;;  %v514_v19 = vpop.permute.xlu1 %513 }
 0x236   : > { %1345 = vmatpush3.msra.mxu0 %v514_v19 }
 0x237   : > { %1433 = vmatprep.subr.bf16.mxu0 %v1571_v0 }
 0x238   : > { %1392 = vmatmul.mubr.msk.f32.vlgmr.msra.gmra.mrb[18].mxu1 %vm138_vm1, %v887_v11 }
 0x239   : > { %1394 = vmatprep.mubr.msk.f32.mxu1 %vm1573_vm0, %v1574_v7  ;;  %v771_v14 = vpop.permute.xlu1 %770 }
 0x23c   : > { %1395 = vmatmul.mubr.msk.f32.gmra.mrb[20].mxu1 %vm138_vm1, %v889_v12 }
 0x23d   : > { %1397 = vmatprep.mubr.msk.f32.mxu1 %vm1573_vm0, %v1574_v7 }
 0x240   : > { %1398 = vmatmul.mubr.msk.f32.gmra.mrb[22].mxu1 %vm138_vm1, %v891_v13 }
 0x2e2   : > { %v1747_v20 = vpop.f32.mrb[0].mxu1 }
 0x2e3   : > { %v1318_v21 = vpop.f32.mrb[1].mxu1 }
 0x2e6   : > { %v1749_v22 = vpop.f32.mrb[2].mxu1 }
 0x2e7   : > { %v1321_v23 = vpop.f32.mrb[3].mxu1 }
 0x2ea   : > { %v1751_v24 = vpop.f32.mrb[4].mxu1 }
 0x2eb   : > { %v1324_v25 = vpop.f32.mrb[5].mxu1 }
 0x2f3   : > { %v462_v26 = vpop.f32.mrb[6].mxu1 }
 0x2f4   : > { %v476_v27 = vmul.f32 0.35355338, %v462_v26  ;;  %v1333_v28 = vpop.f32.mrb[7].mxu1 }
 0x2f5   : > { %v1508_v28 = vunpack.i.l.bf16 %v1507_v16 }
 0x2f6   : > { %v479_v29 = vsel %vm125_vm3, %v476_v27, -1e+30  ;;  %v1509_v27 = vunpack.i.h.bf16 %v1507_v16 }
 0x2f7   : > { %v467_v30 = vpop.f32.mrb[8].mxu1  ;;  %v482_v31 = vsel %vm237_vm4, %v479_v29, -inf }
 0x2f8   : > { %v477_v32 = vmul.f32 0.35355338, %v467_v30  ;;  %483 = vmax.xlane.f32.xlu1 %v482_v31  ;;  %v1336_v33 = vpop.f32.mrb[9].mxu1 }
 0x2fa   : > { %v480_v34 = vsel %vm125_vm3, %v477_v32, -1e+30 }
 0x2fb   : > { %v472_v35 = vpop.f32.mrb[10].mxu1  ;;  %v485_v36 = vsel %vm237_vm4, %v480_v34, -inf }
 0x2fc   : > { %v478_v37 = vmul.f32 0.35355338, %v472_v35  ;;  %486 = vmax.xlane.f32.xlu0 %v485_v36  ;;  %v1339_v38 = vpop.f32.mrb[11].mxu1 }
 0x2fe   : > { %v481_v39 = vsel %vm125_vm3, %v478_v37, -1e+30 }
 0x2ff   : > { %v719_v40 = vpop.f32.mrb[12].mxu1  ;;  %v488_v41 = vsel %vm237_vm4, %v481_v39, -inf }
 0x300   : > { %v733_v42 = vmul.f32 0.35355338, %v719_v40  ;;  %489 = vmax.xlane.f32.xlu0 %v488_v41  ;;  %v1363_v43 = vpop.f32.mrb[13].mxu1 }
 0x302   : > { %v736_v44 = vsel %vm125_vm3, %v733_v42, -1e+30 }
 0x303   : > { %v724_v45 = vpop.f32.mrb[14].mxu1  ;;  %v739_v46 = vsel %vm237_vm4, %v736_v44, -inf }
 0x304   : > { %v734_v48 = vmul.f32 0.35355338, %v724_v45  ;;  %740 = vmax.xlane.f32.xlu1 %v739_v46  ;;  %v1366_v49 = vpop.f32.mrb[15].mxu1 }
 0x306   : > { %v737_v50 = vsel %vm125_vm3, %v734_v48, -1e+30 }
 0x307   : > { %v729_v51 = vpop.f32.mrb[16].mxu1  ;;  %v742_v53 = vsel %vm237_vm4, %v737_v50, -inf }
 0x308   : > { %v735_v55 = vmul.f32 0.35355338, %v729_v51  ;;  %743 = vmax.xlane.f32.xlu0 %v742_v53  ;;  %v1369_v56 = vpop.f32.mrb[17].mxu1 }
 0x30a   : > { %v1770_v57 = vsel %vm125_vm3, %v735_v55, -1e+30 }
 0x30b   : > { %v976_v58 = vpop.f32.mrb[18].mxu1  ;;  %v745_v59 = vsel %vm237_vm4, %v1770_v57, -inf }
 0x30c   : > { %v990_v60 = vmul.f32 0.35355338, %v976_v58  ;;  %746 = vmax.xlane.f32.xlu1 %v745_v59  ;;  %v1393_v61 = vpop.f32.mrb[19].mxu1 }
 0x30e   : > { %v1776_v62 = vsel %vm125_vm3, %v990_v60, -1e+30 }
 0x30f   : > { %v981_v63 = vpop.f32.mrb[20].mxu1  ;;  %v996_v1 = vsel %vm237_vm4, %v1776_v62, -inf }
 0x310   : > { %v991_v2 = vmul.f32 0.35355338, %v981_v63  ;;  %997 = vmax.xlane.f32.xlu1 %v996_v1  ;;  %v1396_v3 = vpop.f32.mrb[21].mxu1 }
 0x312   : > { %v1782_v4 = vsel %vm125_vm3, %v991_v2, -1e+30 }
 0x313   : > { %v986_v8 = vpop.f32.mrb[22].mxu1  ;;  %v999_v9 = vsel %vm237_vm4, %v1782_v4, -inf }
 0x314   : > { %v992_v10 = vmul.f32 0.35355338, %v986_v8  ;;  %1000 = vmax.xlane.f32.xlu0 %v999_v9  ;;  %v1399_v11 = vpop.f32.mrb[23].mxu1 }
 0x316   : > { %v1788_v12 = vsel %vm125_vm3, %v992_v10, -1e+30 }
 0x317   : > { %v1002_v13 = vsel %vm237_vm4, %v1788_v12, -inf }
 0x318   : > { %1003 = vmax.xlane.f32.xlu1 %v1002_v13  ;;  %v259_v13 = vsel %vm237_vm4, %v1694_v52, 0.0 }
 0x329   : > { %1027 = vrot.lane.b32.xlu1 %v1623_v6, %s1584_s22 }
 0x32a   : > { %1511 = vrot.lane.b32.xlu0 %v1620_v5, %s1584_s22  ;;  %v1434_v5 = vpack.c.bf16 %v1509_v27, %v1508_v28 }
 0x385   : > { %v484_v17 = vpop.xlane.xlu1 %483 }
 0x386   : > { %v491_v18 = vsub.f32 %v479_v29, %v484_v17 }
 0x388   : > { %v494_v19 = vmul.f32 1.442695, %v491_v18 }
 0x389   : > { %v487_v21 = vpop.xlane.xlu0 %486 }
 0x38a   : > { %1521 = vpow2.f32 %v494_v19  ;;  %v492_v23 = vsub.f32 %v480_v34, %v487_v21 }
 0x38c   : > { %v496_v15 = vmul.f32 1.442695, %v492_v23 }
 0x38d   : > { %v490_v25 = vpop.xlane.xlu0 %489 }
 0x38e   : > { %1523 = vpow2.f32 %v496_v15  ;;  %v493_v26 = vsub.f32 %v481_v39, %v490_v25 }
 0x390   : > { %v498_v30 = vmul.f32 1.442695, %v493_v26 }
 0x391   : > { %v741_v31 = vpop.xlane.xlu1 %740 }
 0x392   : > { %1525 = vpow2.f32 %v498_v30  ;;  %v748_v6 = vsub.f32 %v736_v44, %v741_v31 }
 0x394   : > { %v1522_v32 = vpop.eup %1521  ;;  %v751_v33 = vmul.f32 1.442695, %v748_v6 }
 0x395   : > { %v744_v35 = vpop.xlane.xlu0 %743  ;;  %1347 = vmatmul.mubr.msk.f32.vlgmr.msra.gmra.mrb[6].mxu0 %vm237_vm4, %v1522_v32  ;;  %v500_v29 = vsel %vm237_vm4, %v1522_v32, 0.0 }
 0x396   : > { %1527 = vpow2.f32 %v751_v33  ;;  %v749_v34 = vsub.f32 %v737_v50, %v744_v35  ;;  %1435 = vmatpush3.bf16.msra.mxu0 %v1434_v5  ;;  %501 = vadd.xlane.f32.xlu0 %v500_v29 }
 0x397   : > { %1349 = vmatprep.mubr.msk.f32.mxu0 %vm1573_vm0, %v1574_v7  ;;  %1374 = vmatprep.subr.mxu0 %v1574_v7 }
 0x398   : > { %v1524_v36 = vpop.eup %1523  ;;  %v753_v37 = vmul.f32 1.442695, %v749_v34 }
 0x399   : > { %v747_v38 = vpop.xlane.xlu1 %746  ;;  %1350 = vmatmul.mubr.msk.f32.gmra.mrb[8].mxu0 %vm237_vm4, %v1524_v36  ;;  %v503_v39 = vsel %vm237_vm4, %v1524_v36, 0.0 }
 0x39a   : > { %1529 = vpow2.f32 %v753_v37  ;;  %v750_v40 = vsub.f32 %v1770_v57, %v747_v38  ;;  %1375 = vmatpush3.msra.mxu0 %v771_v14  ;;  %504 = vadd.xlane.f32.xlu1 %v503_v39  ;;  %v262_v14 = vsel %vm237_vm4, %v1702_v54, 0.0 }
 0x39b   : > { %1352 = vmatprep.mubr.msk.f32.mxu0 %vm1573_vm0, %v1574_v7  ;;  %1440 = vmatprep.subr.bf16.mxu0 %v1571_v0 }
 0x39c   : > { %v1526_v41 = vpop.eup %1525  ;;  %v755_v42 = vmul.f32 1.442695, %v750_v40 }
 0x39d   : > { %v998_v43 = vpop.xlane.xlu1 %997  ;;  %1353 = vmatmul.mubr.msk.f32.gmra.mrb[10].mxu0 %vm237_vm4, %v1526_v41  ;;  %v506_v44 = vsel %vm237_vm4, %v1526_v41, 0.0 }
 0x39e   : > { %1531 = vpow2.f32 %v755_v42  ;;  %v1005_v45 = vsub.f32 %v1776_v62, %v998_v43  ;;  %507 = vadd.xlane.f32.xlu0 %v506_v44  ;;  %1376 = vmatprep.mubr.msk.f32.mxu0 %vm1573_vm0, %v1574_v7 }
 0x3a0   : > { %v1528_v46 = vpop.eup %1527  ;;  %v1008_v48 = vmul.f32 1.442695, %v1005_v45 }
 0x3a1   : > { %v1001_v49 = vpop.xlane.xlu0 %1000  ;;  %1377 = vmatmul.mubr.msk.f32.vlgmr.msra.gmra.mrb[12].mxu0 %vm237_vm4, %v1528_v46  ;;  %v757_v0 = vsel %vm237_vm4, %v1528_v46, 0.0 }
 0x3a2   : > { %1533 = vpow2.f32 %v1008_v48  ;;  %v1006_v50 = vsub.f32 %v1782_v4, %v1001_v49  ;;  %758 = vadd.xlane.f32.xlu0 %v757_v0  ;;  %1379 = vmatprep.mubr.msk.f32.mxu0 %vm1573_vm0, %v1574_v7 }
 0x3a4   : > { %v1530_v51 = vpop.eup %1529  ;;  %v1010_v53 = vmul.f32 1.442695, %v1006_v50 }
 0x3a5   : > { %v1004_v55 = vpop.xlane.xlu1 %1003  ;;  %v1512_v56 = vpop.permute.xlu0 %1511  ;;  %1380 = vmatmul.mubr.msk.f32.gmra.mrb[14].mxu0 %vm237_vm4, %v1530_v51  ;;  %v760_v57 = vsel %vm237_vm4, %v1530_v51, 0.0 }
 0x3a6   : > { %1535 = vpow2.f32 %v1010_v53  ;;  %v1007_v58 = vsub.f32 %v1788_v12, %v1004_v55  ;;  %v1514_v59 = vunpack.i.h.bf16 %v1512_v56  ;;  %v1513_v60 = vunpack.i.l.bf16 %v1512_v56  ;;  %761 = vadd.xlane.f32.xlu1 %v760_v57  ;;  %1382 = vmatprep.mubr.msk.f32.mxu0 %vm1573_vm0, %v1574_v7 }
 0x3a7   : > { %v256_v12 = vsel %vm237_vm4, %v1687_v47, 0.0 }
 0x3a8   : > { %v1532_v61 = vpop.eup %1531  ;;  %v1012_v62 = vmul.f32 1.442695, %v1007_v58  ;;  %v1441_v63 = vpack.c.bf16 %v1514_v59, %v1513_v60 }
 0x3a9   : > { %1383 = vmatmul.mubr.msk.f32.gmra.mrb[16].mxu0 %vm237_vm4, %v1532_v61  ;;  %v763_v1 = vsel %vm237_vm4, %v1532_v61, 0.0  ;;  %v1028_v2 = vpop.permute.xlu1 %1027 }
 0x3aa   : > { %1537 = vpow2.f32 %v1012_v62  ;;  %764 = vadd.xlane.f32.xlu0 %v763_v1  ;;  %1442 = vmatpush3.bf16.msra.mxu0 %v1441_v63 }
 0x3ab   : > { %1404 = vmatprep.subr.mxu0 %v1574_v7  ;;  %1406 = vmatprep.mubr.msk.f32.mxu0 %vm1573_vm0, %v1574_v7 }
 0x3ac   : > { %v1534_v3 = vpop.eup %1533 }
 0x3ad   : > { %v1014_v4 = vsel %vm237_vm4, %v1534_v3, 0.0 }
 0x3ae   : > { %1015 = vadd.xlane.f32.xlu1 %v1014_v4  ;;  %1405 = vmatpush3.msra.mxu0 %v1028_v2 }
 0x3af   : > { %1407 = vmatmul.mubr.msk.f32.vlgmr.msra.gmra.mrb[18].mxu0 %vm237_vm4, %v1534_v3 }
 0x3b0   : > { %v1536_v8 = vpop.eup %1535  ;;  %1409 = vmatprep.mubr.msk.f32.mxu0 %vm1573_vm0, %v1574_v7 }
 0x3b1   : > { %v1017_v9 = vsel %vm237_vm4, %v1536_v8, 0.0 }
 0x3b2   : > { %1018 = vadd.xlane.f32.xlu0 %v1017_v9 }
 0x3b3   : > { %1410 = vmatmul.mubr.msk.f32.gmra.mrb[20].mxu0 %vm237_vm4, %v1536_v8 }
 0x3b4   : > { %v1538_v10 = vpop.eup %1537  ;;  %1412 = vmatprep.mubr.msk.f32.mxu0 %vm1573_vm0, %v1574_v7 }
 0x3b5   : > { %v1020_v11 = vsel %vm237_vm4, %v1538_v10, 0.0 }
 0x3b6   : > { %1021 = vadd.xlane.f32.xlu1 %v1020_v11  ;;  %257 = vadd.xlane.f32.xlu0 %v256_v12 }
 0x3b7   : > { %1413 = vmatmul.mubr.msk.f32.gmra.mrb[22].mxu0 %vm237_vm4, %v1538_v10 }
 0x3ba   : > { %260 = vadd.xlane.f32.xlu1 %v259_v13  ;;  %263 = vadd.xlane.f32.xlu0 %v262_v14 }
 0x423   : > { %v502_v47 = vpop.xlane.xlu0 %501 }
 0x427   : > { %v505_v54 = vpop.xlane.xlu1 %504 }
 0x42b   : > { %v508_v52 = vpop.xlane.xlu0 %507 }
 0x42f   : > { %v759_v16 = vpop.xlane.xlu0 %758 }
 0x433   : > { %v762_v17 = vpop.xlane.xlu1 %761 }
 0x437   : > { %v765_v18 = vpop.xlane.xlu0 %764 }
 0x43b   : > { %v1016_v19 = vpop.xlane.xlu1 %1015 }
 0x43f   : > { %v1019_v21 = vpop.xlane.xlu0 %1018 }
 0x443   : > { %v1022_v23 = vpop.xlane.xlu1 %1021  ;;  %v258_v15 = vpop.xlane.xlu0 %257 }
 0x444   : > { %1539 = vrcp.f32 %v258_v15 }
 0x447   : > { %v261_v25 = vpop.xlane.xlu1 %260  ;;  %v264_v26 = vpop.xlane.xlu0 %263 }
 0x448   : > { %1541 = vrcp.f32 %v261_v25 }
 0x449   : > { %1543 = vrcp.f32 %v264_v26 }
 0x44a   : > { %1545 = vrcp.f32 %v502_v47 }
 0x44b   : > { %1547 = vrcp.f32 %v505_v54 }
 0x44c   : > { %1549 = vrcp.f32 %v508_v52 }
 0x44d   : > { %1551 = vrcp.f32 %v759_v16 }
 0x44e   : > { %v1540_v27 = vpop.eup %1539  ;;  %1553 = vrcp.f32 %v762_v17 }
 0x44f   : > { %v366_v7 = vmul.f32 %v1540_v27, %v1747_v20  ;;  %1555 = vrcp.f32 %v765_v18 }
 0x450   : > { %1557 = vrcp.f32 %v1016_v19 }
 0x451   : > { %369 = vst.msk [vmem:[%s1845_s26] sm:$0xff] %vm138_vm1, %v366_v7  ;;  %1559 = vrcp.f32 %v1019_v21 }
 0x452   : > { %v1542_v28 = vpop.eup %1541  ;;  %1561 = vrcp.f32 %v1022_v23 }
 0x453   : > { %v1544_v30 = vpop.eup %1543  ;;  %v367_v31 = vmul.f32 %v1542_v28, %v1749_v22 }
 0x454   : > { %v368_v6 = vmul.f32 %v1544_v30, %v1751_v24  ;;  %v1546_v32 = vpop.eup %1545 }
 0x455   : > { %370 = vst.msk [vmem:[%s1845_s26 + $0x8] sm:$0xff] %vm138_vm1, %v367_v31  ;;  %v1548_v20 = vpop.eup %1547 }
 0x456   : > { %371 = vst.msk [vmem:[%s1845_s26 + $0x10] sm:$0xff] %vm138_vm1, %v368_v6  ;;  %v1550_v24 = vpop.eup %1549 }
 0x457   : > { %v1552_v39 = vpop.eup %1551 }
 0x458   : > { %v1554_v43 = vpop.eup %1553 }
 0x459   : > { %v1556_v48 = vpop.eup %1555 }
 0x45a   : > { %v1558_v51 = vpop.eup %1557 }
 0x45b   : > { %v1560_v57 = vpop.eup %1559 }
 0x45c   : > { %v1562_v61 = vpop.eup %1561 }
 0x468   : > { %v593_v5 = vpop.f32.mrb[6].mxu0 }
 0x469   : > { %v610_v33 = vmul.f32 %v1546_v32, %v593_v5  ;;  %v1348_v35 = vpop.f32.mrb[7].mxu0 }
 0x46b   : > { %616 = vrot.lane.b32.xlu1 %v610_v33, %s1585_s27 }
 0x46c   : > { %v598_v29 = vpop.f32.mrb[8].mxu0 }
 0x46d   : > { %v611_v34 = vmul.f32 %v1548_v20, %v598_v29  ;;  %v1351_v22 = vpop.f32.mrb[9].mxu0 }
 0x46f   : > { %618 = vrot.lane.b32.xlu0 %v611_v34, %s1585_s27 }
 0x470   : > { %v603_v36 = vpop.f32.mrb[10].mxu0 }
 0x471   : > { %v612_v37 = vmul.f32 %v1550_v24, %v603_v36  ;;  %v1354_v38 = vpop.f32.mrb[11].mxu0 }
 0x473   : > { %620 = vrot.lane.b32.xlu1 %v612_v37, %s1585_s27 }
 0x474   : > { %v850_v40 = vpop.f32.mrb[12].mxu0 }
 0x475   : > { %v867_v41 = vmul.f32 %v1552_v39, %v850_v40  ;;  %v1378_v42 = vpop.f32.mrb[13].mxu0 }
 0x477   : > { %873 = vrot.lane.b32.xlu1 %v867_v41, %s1586_s28 }
 0x478   : > { %v855_v44 = vpop.f32.mrb[14].mxu0 }
 0x479   : > { %v868_v45 = vmul.f32 %v1554_v43, %v855_v44  ;;  %v1381_v46 = vpop.f32.mrb[15].mxu0 }
 0x47b   : > { %875 = vrot.lane.b32.xlu0 %v868_v45, %s1586_s28 }
 0x47c   : > { %v860_v49 = vpop.f32.mrb[16].mxu0 }
 0x47d   : > { %v869_v0 = vmul.f32 %v1556_v48, %v860_v49  ;;  %v1384_v50 = vpop.f32.mrb[17].mxu0 }
 0x47f   : > { %877 = vrot.lane.b32.xlu1 %v869_v0, %s1586_s28 }
 0x482   : > { %v1107_v53 = vpop.f32.mrb[18].mxu0 }
 0x483   : > { %v1124_v55 = vmul.f32 %v1558_v51, %v1107_v53  ;;  %v1408_v56 = vpop.f32.mrb[19].mxu0 }
 0x485   : > { %1130 = vrot.lane.b32.xlu0 %v1124_v55, %s1587_s29 }
 0x486   : > { %v1112_v58 = vpop.f32.mrb[20].mxu0 }
 0x487   : > { %v1125_v59 = vmul.f32 %v1560_v57, %v1112_v58  ;;  %v1411_v60 = vpop.f32.mrb[21].mxu0 }
 0x489   : > { %1132 = vrot.lane.b32.xlu1 %v1125_v59, %s1587_s29 }
 0x48a   : > { %v1117_v62 = vpop.f32.mrb[22].mxu0 }
 0x48b   : > { %v1126_v63 = vmul.f32 %v1562_v61, %v1117_v62  ;;  %v1414_v1 = vpop.f32.mrb[23].mxu0 }
 0x48d   : > { %1134 = vrot.lane.b32.xlu0 %v1126_v63, %s1587_s29 }
 0x4dd   : > { %v617_v2 = vpop.permute.xlu1 %616 }
 0x4de   : > { %626 = vst.msk [vmem:[%s1845_s26] sm:$0xff] %vm625_vm5, %v617_v2 }
 0x4e1   : > { %v619_v3 = vpop.permute.xlu0 %618 }
 0x4e2   : > { %627 = vst.msk [vmem:[%s1845_s26 + $0x8] sm:$0xff] %vm625_vm5, %v619_v3 }
 0x4e5   : > { %v621_v4 = vpop.permute.xlu1 %620 }
 0x4e6   : > { %628 = vst.msk [vmem:[%s1845_s26 + $0x10] sm:$0xff] %vm625_vm5, %v621_v4 }
 0x4e9   : > { %v874_v8 = vpop.permute.xlu1 %873 }
 0x4ea   : > { %883 = vst.msk [vmem:[%s1845_s26] sm:$0xff] %vm882_vm6, %v874_v8 }
 0x4ed   : > { %v876_v9 = vpop.permute.xlu0 %875 }
 0x4ee   : > { %884 = vst.msk [vmem:[%s1845_s26 + $0x8] sm:$0xff] %vm882_vm6, %v876_v9 }
 0x4f1   : > { %v878_v10 = vpop.permute.xlu1 %877 }
 0x4f2   : > { %885 = vst.msk [vmem:[%s1845_s26 + $0x10] sm:$0xff] %vm882_vm6, %v878_v10 }
 0x4f7   : > { %v1131_v11 = vpop.permute.xlu0 %1130 }
 0x4f8   : > { %1140 = vst.msk [vmem:[%s1845_s26] sm:$0xff] %vm1139_vm7, %v1131_v11 }
 0x4fb   : > { %v1133_v12 = vpop.permute.xlu1 %1132 }
 0x4fc   : > { %1141 = vst.msk [vmem:[%s1845_s26 + $0x8] sm:$0xff] %vm1139_vm7, %v1133_v12 }
 0x4ff   : > { %v1135_v13 = vpop.permute.xlu0 %1134 }
 0x500   : > { %1142 = vst.msk [vmem:[%s1845_s26 + $0x10] sm:$0xff] %vm1139_vm7, %v1135_v13 }
 0x501 PF: > { %s11_s6 = sadd.s32 1, %s1569_s6  }
 0x502   : > { %p8_p4 = scmp.ge.s32.totalorder %s11_s6, 4  }
 0x504   :  { %10 = sbr.rel (!%p8_p4) target bundleno = 1 (0x1), region = 54 }

// kernel: vit_forward.23
= control target key start
LH: loop header
LB: loop body
LE: loop exit
PB: predicated region body
PF: predicated region fallthrough
CT: control target
= control target key end

     0   :  { %v324_v0 = vmov 0.0   ;;  %vm325_vm0 = vmmov 0   ;;  %s417_s1 = inlined_call_operand.vmem [shape: bf16[128,128], index: 1, kind: input, shape index: {}]   ;;  %s418_s0 = inlined_call_operand.vmem [shape: f32[48,128], index: 0, kind: input, shape index: {}]   ;;  %s419_s3 = inlined_call_operand.vmem [shape: bf16[48,128], index: 3, kind: input, shape index: {}]   ;;  %s420_s2 = inlined_call_operand.vmem [shape: f32[1,128], index: 2, kind: input, shape index: {}]   ;;  %s421_s4 = inlined_call_operand.vmem [shape: bf16[48,128], index: 4, kind: output, shape index: {}]  }
   0x1   :  { %298 = vmatprep.subr.bf16.mxu1 %v324_v0  ;;  %v316_v1 = vld [vmem:[%s417_s1] sm:$0xff]   ;;  %270 = vmatprep.subr.bf16.mxu0 %v324_v0  ;;  %v317_v2 = vld [vmem:[%s417_s1 + $0x8] sm:$0xff]   ;;  %v318_v3 = vld [vmem:[%s417_s1 + $0x10] sm:$0xff]  }
   0x2   :  { %290 = vmatprep.mubr.msk.bf16.mxu1 %vm325_vm0, %v324_v0  ;;  %286 = vmatprep.mubr.msk.bf16.mxu0 %vm325_vm0, %v324_v0  ;;  %v319_v4 = vld [vmem:[%s417_s1 + $0x18] sm:$0xff]   ;;  %v320_v5 = vld [vmem:[%s417_s1 + $0x20] sm:$0xff]   ;;  %v321_v6 = vld [vmem:[%s417_s1 + $0x28] sm:$0xff]  }
   0x3   :  { %306 = vmatpush3.bf16.msra.mxu1 %v316_v1  ;;  %271 = vmatpush3.bf16.msra.mxu0 %v316_v1  ;;  %v322_v7 = vld [vmem:[%s417_s1 + $0x30] sm:$0xff]   ;;  %v323_v8 = vld [vmem:[%s417_s1 + $0x38] sm:$0xff]   ;;  %v18_v11 = vld [vmem:[%s418_s0] sm:$0xff] }
   0x4   :  { %299 = vmatprep.subr.bf16.mxu1 %v324_v0  ;;  %272 = vmatprep.subr.bf16.mxu0 %v324_v0  ;;  %v20_v9 = vld [vmem:[%s418_s0 + $0x10] sm:$0xff]  ;;  %v21_v10 = vld [vmem:[%s418_s0 + $0x18] sm:$0xff]  ;;  %v19_v12 = vld [vmem:[%s418_s0 + $0x8] sm:$0xff] }
   0x5   :  { %v25_v13 = vpack.c.bf16 %v21_v10, %v20_v9  ;;  %v24_v14 = vpack.c.bf16 %v19_v12, %v18_v11  ;;  %v22_v15 = vld [vmem:[%s418_s0 + $0x20] sm:$0xff]  ;;  %v23_v16 = vld [vmem:[%s418_s0 + $0x28] sm:$0xff]  ;;  %v256_v41 = vld [vmem:[%s419_s3 + $0x10] sm:$0xff]  }
   0x6   :  { %v26_v17 = vpack.c.bf16 %v23_v16, %v22_v15  ;;  %v229_v18 = vld [vmem:[%s419_s3] sm:$0xff]   ;;  %v255_v19 = vld [vmem:[%s419_s3 + $0x8] sm:$0xff]   ;;  %v238_v46 = vunpack.c.l.bf16 %v256_v41  ;;  %v239_v48 = vunpack.c.h.bf16 %v256_v41 }
   0x7   :  { %307 = vmatpush3.bf16.msra.mxu1 %v317_v2  ;;  %273 = vmatpush3.bf16.msra.mxu0 %v317_v2  ;;  %v207_v20 = vld [vmem:[%s420_s2] ss:$0 sm:$0xff]  ;;  %v230_v21 = vunpack.c.l.bf16 %v229_v18  ;;  %v234_v23 = vunpack.c.l.bf16 %v255_v19  ;;  %v235_v27 = vunpack.c.h.bf16 %v255_v19  ;;  %v231_v30 = vunpack.c.h.bf16 %v229_v18 }
   0x8   :  { %300 = vmatprep.subr.bf16.mxu1 %v324_v0  ;;  %274 = vmatprep.subr.bf16.mxu0 %v324_v0 }
   0xb   :  { %308 = vmatpush3.bf16.msra.mxu1 %v318_v3  ;;  %275 = vmatpush3.bf16.msra.mxu0 %v318_v3 }
   0xc   :  { %301 = vmatprep.subr.bf16.mxu1 %v324_v0  ;;  %276 = vmatprep.subr.bf16.mxu0 %v324_v0 }
   0xf   :  { %309 = vmatpush3.bf16.msra.mxu1 %v319_v4  ;;  %277 = vmatpush3.bf16.msra.mxu0 %v319_v4 }
  0x10   :  { %302 = vmatprep.subr.bf16.mxu1 %v324_v0  ;;  %278 = vmatprep.subr.bf16.mxu0 %v324_v0 }
  0x13   :  { %310 = vmatpush3.bf16.msra.mxu1 %v320_v5  ;;  %279 = vmatpush3.bf16.msra.mxu0 %v320_v5 }
  0x14   :  { %303 = vmatprep.subr.bf16.mxu1 %v324_v0  ;;  %280 = vmatprep.subr.bf16.mxu0 %v324_v0 }
  0x17   :  { %311 = vmatpush3.bf16.msra.mxu1 %v321_v6  ;;  %281 = vmatpush3.bf16.msra.mxu0 %v321_v6 }
  0x18   :  { %304 = vmatprep.subr.bf16.mxu1 %v324_v0  ;;  %282 = vmatprep.subr.bf16.mxu0 %v324_v0 }
  0x1b   :  { %312 = vmatpush3.bf16.msra.mxu1 %v322_v7  ;;  %283 = vmatpush3.bf16.msra.mxu0 %v322_v7 }
  0x1c   :  { %305 = vmatprep.subr.bf16.mxu1 %v324_v0  ;;  %284 = vmatprep.subr.bf16.mxu0 %v324_v0 }
  0x1f   :  { %313 = vmatpush3.bf16.msra.mxu1 %v323_v8  ;;  %285 = vmatpush3.bf16.msra.mxu0 %v323_v8 }
  0x22   :  { %291 = vmatmul.mubr.bf16.vlgmr.msra.gmra.mrb[0].mxu1 %v25_v13  ;;  %287 = vmatmul.mubr.bf16.vlgmr.msra.gmra.mrb[0].mxu0 %v24_v14 }
  0x23   :  { %294 = vmatprep.mubr.msk.bf16.mxu1 %vm325_vm0, %v324_v0 }
  0x2a   :  { %295 = vmatmul.mubr.bf16.gmra.mrb[4].mxu1 %v26_v17 }
  0xf5   :  { %v140_v22 = vpop.f32.mrb[0].mxu1  ;;  %v132_v24 = vpop.f32.mrb[0].mxu0 }
  0xf6   :  { %v141_v25 = vadd.f32 %v207_v20, %v140_v22  ;;  %v292_v26 = vpop.f32.mrb[1].mxu1  ;;  %v133_v28 = vadd.f32 %v207_v20, %v132_v24  ;;  %v288_v29 = vpop.f32.mrb[1].mxu0 }
  0xf7   :  { %v143_v31 = vpop.f32.mrb[2].mxu1  ;;  %v135_v32 = vpop.f32.mrb[2].mxu0 }
  0xf8   :  { %v144_v33 = vadd.f32 %v207_v20, %v143_v31  ;;  %v293_v34 = vpop.f32.mrb[3].mxu1  ;;  %v167_v35 = vadd.f32 %v230_v21, %v133_v28  ;;  %v136_v36 = vadd.f32 %v207_v20, %v135_v32  ;;  %v289_v37 = vpop.f32.mrb[3].mxu0  ;;  %v169_v38 = vadd.f32 %v234_v23, %v141_v25 }
  0xfa   :  { %v170_v39 = vadd.f32 %v235_v27, %v144_v33  ;;  %v168_v40 = vadd.f32 %v231_v30, %v136_v36 }
  0xfc   :  { %v248_v42 = vpack.c.bf16 %v170_v39, %v169_v38  ;;  %v243_v43 = vpack.c.bf16 %v168_v40, %v167_v35 }
  0xfd   :  { %v148_v44 = vpop.f32.mrb[4].mxu1 }
  0xfe   :  { %257 = vst [vmem:[%s421_s4 + $0x8] sm:$0xff] %v248_v42   ;;  %244 = vst [vmem:[%s421_s4] sm:$0xff] %v243_v43   ;;  %v149_v45 = vadd.f32 %v207_v20, %v148_v44  ;;  %v296_v47 = vpop.f32.mrb[5].mxu1 }
  0xff   :  { %v151_v49 = vpop.f32.mrb[6].mxu1 }
 0x100   :  { %v152_v50 = vadd.f32 %v207_v20, %v151_v49  ;;  %v297_v51 = vpop.f32.mrb[7].mxu1  ;;  %v171_v52 = vadd.f32 %v238_v46, %v149_v45 }
 0x102   :  { %v172_v53 = vadd.f32 %v239_v48, %v152_v50 }
 0x104   :  { %v253_v54 = vpack.c.bf16 %v172_v53, %v171_v52 }
 0x106   :  { %258 = vst [vmem:[%s421_s4 + $0x10] sm:$0xff] %v253_v54  }

// kernel: vit_forward.24
= control target key start
LH: loop header
LB: loop body
LE: loop exit
PB: predicated region body
PF: predicated region fallthrough
CT: control target
= control target key end

     0   :  { %v446_v14 = vmov 0.0   ;;  %vm447_vm0 = vmmov 0   ;;  %s587_s0 = inlined_call_operand.vmem [shape: bf16[48,128], index: 0, kind: input, shape index: {}]   ;;  %s588_s1 = inlined_call_operand.vmem [shape: bf16[128,128], index: 1, kind: input, shape index: {}]   ;;  %s589_s3 = inlined_call_operand.vmem [shape: f32[1,128], index: 3, kind: input, shape index: {}]   ;;  %s590_s4 = inlined_call_operand.vmem [shape: f32[1,128], index: 4, kind: input, shape index: {}]   ;;  %s591_s2 = inlined_call_operand.vmem [shape: f32[1,128], index: 2, kind: input, shape index: {}]   ;;  %s592_s5 = inlined_call_operand.vmem [shape: bf16[48,128], index: 5, kind: output, shape index: {}]  }
   0x1   :  { %v365_v0 = vld [vmem:[%s587_s0 + $0x8] sm:$0xff]   ;;  %v339_v4 = vld [vmem:[%s587_s0] sm:$0xff]   ;;  %v366_v7 = vld [vmem:[%s587_s0 + $0x10] sm:$0xff]   ;;  %408 = vmatprep.subr.bf16.mxu1 %v446_v14  ;;  %380 = vmatprep.subr.bf16.mxu0 %v446_v14 }
   0x2   :  { %v481_v1 = vunpack.c.l.bf16 %v365_v0  ;;  %v483_v2 = vunpack.c.h.bf16 %v365_v0  ;;  %v494_v6 = vunpack.c.l.bf16 %v339_v4  ;;  %v499_v8 = vunpack.c.h.bf16 %v339_v4  ;;  %v426_v13 = vld [vmem:[%s588_s1] sm:$0xff]   ;;  %v427_v17 = vld [vmem:[%s588_s1 + $0x8] sm:$0xff]   ;;  %v428_v18 = vld [vmem:[%s588_s1 + $0x10] sm:$0xff]   ;;  %400 = vmatprep.mubr.msk.bf16.mxu1 %vm447_vm0, %v446_v14  ;;  %396 = vmatprep.mubr.msk.bf16.mxu0 %vm447_vm0, %v446_v14 }
   0x3   :  { %v502_v9 = vunpack.c.l.bf16 %v366_v7  ;;  %v505_v10 = vunpack.c.h.bf16 %v366_v7  ;;  %416 = vmatpush3.bf16.msra.mxu1 %v426_v13  ;;  %381 = vmatpush3.bf16.msra.mxu0 %v426_v13  ;;  %v429_v19 = vld [vmem:[%s588_s1 + $0x18] sm:$0xff]   ;;  %v430_v20 = vld [vmem:[%s588_s1 + $0x20] sm:$0xff]   ;;  %v431_v21 = vld [vmem:[%s588_s1 + $0x28] sm:$0xff]  }
   0x4   :  { %37 = vadd.xlane.f32.xlu0 %v481_v1  ;;  %v47_v3 = vmul.f32 %v481_v1, %v481_v1  ;;  %v48_v5 = vmul.f32 %v483_v2, %v483_v2  ;;  %v45_v11 = vmul.f32 %v494_v6, %v494_v6  ;;  %v46_v12 = vmul.f32 %v499_v8, %v499_v8  ;;  %v432_v22 = vld [vmem:[%s588_s1 + $0x30] sm:$0xff]   ;;  %v433_v23 = vld [vmem:[%s588_s1 + $0x38] sm:$0xff]  }
   0x5   :  { %v49_v15 = vmul.f32 %v502_v9, %v502_v9  ;;  %409 = vmatprep.subr.bf16.mxu1 %v446_v14  ;;  %v50_v16 = vmul.f32 %v505_v10, %v505_v10  ;;  %382 = vmatprep.subr.bf16.mxu0 %v446_v14 }
   0x6   :  { %55 = vadd.xlane.f32.xlu1 %v47_v3 }
   0x7   :  { %417 = vmatpush3.bf16.msra.mxu1 %v427_v17  ;;  %383 = vmatpush3.bf16.msra.mxu0 %v427_v17 }
   0x8   :  { %39 = vadd.xlane.f32.xlu0 %v483_v2  ;;  %410 = vmatprep.subr.bf16.mxu1 %v446_v14 }
   0x9   :  { %384 = vmatprep.subr.bf16.mxu0 %v446_v14 }
   0xa   :  { %57 = vadd.xlane.f32.xlu1 %v48_v5 }
   0xb   :  { %418 = vmatpush3.bf16.msra.mxu1 %v428_v18  ;;  %385 = vmatpush3.bf16.msra.mxu0 %v428_v18 }
   0xc   :  { %33 = vadd.xlane.f32.xlu0 %v494_v6  ;;  %411 = vmatprep.subr.bf16.mxu1 %v446_v14 }
   0xd   :  { %386 = vmatprep.subr.bf16.mxu0 %v446_v14 }
   0xe   :  { %35 = vadd.xlane.f32.xlu1 %v499_v8 }
   0xf   :  { %419 = vmatpush3.bf16.msra.mxu1 %v429_v19  ;;  %387 = vmatpush3.bf16.msra.mxu0 %v429_v19 }
  0x10   :  { %41 = vadd.xlane.f32.xlu0 %v502_v9  ;;  %412 = vmatprep.subr.bf16.mxu1 %v446_v14 }
  0x11   :  { %388 = vmatprep.subr.bf16.mxu0 %v446_v14 }
  0x12   :  { %43 = vadd.xlane.f32.xlu1 %v505_v10 }
  0x13   :  { %420 = vmatpush3.bf16.msra.mxu1 %v430_v20  ;;  %389 = vmatpush3.bf16.msra.mxu0 %v430_v20 }
  0x14   :  { %51 = vadd.xlane.f32.xlu0 %v45_v11  ;;  %413 = vmatprep.subr.bf16.mxu1 %v446_v14  ;;  %v315_v11 = vld [vmem:[%s589_s3] ss:$0 sm:$0xff] }
  0x15   :  { %390 = vmatprep.subr.bf16.mxu0 %v446_v14 }
  0x16   :  { %53 = vadd.xlane.f32.xlu1 %v46_v12 }
  0x17   :  { %421 = vmatpush3.bf16.msra.mxu1 %v431_v21  ;;  %391 = vmatpush3.bf16.msra.mxu0 %v431_v21  ;;  %v316_v21 = vld [vmem:[%s590_s4] ss:$0 sm:$0xff] }
  0x18   :  { %59 = vadd.xlane.f32.xlu0 %v49_v15  ;;  %414 = vmatprep.subr.bf16.mxu1 %v446_v14 }
  0x19   :  { %392 = vmatprep.subr.bf16.mxu0 %v446_v14 }
  0x1a   :  { %61 = vadd.xlane.f32.xlu1 %v50_v16 }
  0x1b   :  { %422 = vmatpush3.bf16.msra.mxu1 %v432_v22  ;;  %393 = vmatpush3.bf16.msra.mxu0 %v432_v22 }
  0x1c   :  { %415 = vmatprep.subr.bf16.mxu1 %v446_v14  ;;  %394 = vmatprep.subr.bf16.mxu0 %v446_v14 }
  0x1f   :  { %423 = vmatpush3.bf16.msra.mxu1 %v433_v23  ;;  %395 = vmatpush3.bf16.msra.mxu0 %v433_v23 }
  0x91   :  { %v38_v24 = vpop.xlane.xlu0 %37 }
  0x92   :  { %v66_v25 = vmul.f32 0.03125, %v38_v24 }
  0x93   :  { %v56_v26 = vpop.xlane.xlu1 %55 }
  0x94   :  { %v78_v27 = vmul.f32 %v66_v25, %v66_v25  ;;  %v72_v28 = vmul.f32 0.03125, %v56_v26  ;;  %v96_v55 = vsub.f32 %v481_v1, %v66_v25 }
  0x95   :  { %v40_v29 = vpop.xlane.xlu0 %39 }
  0x96   :  { %v84_v30 = vsub.f32 %v72_v28, %v78_v27  ;;  %v67_v31 = vmul.f32 0.03125, %v40_v29 }
  0x97   :  { %v58_v32 = vpop.xlane.xlu1 %57 }
  0x98   :  { %v90_v33 = vmax.f32 %v84_v30, 0.0  ;;  %v79_v34 = vmul.f32 %v67_v31, %v67_v31  ;;  %v73_v35 = vmul.f32 0.03125, %v58_v32  ;;  %v97_v12 = vsub.f32 %v483_v2, %v67_v31 }
  0x99   :  { %v34_v36 = vpop.xlane.xlu0 %33 }
  0x9a   :  { %v102_v37 = vadd.f32 1e-05, %v90_v33  ;;  %v85_v38 = vsub.f32 %v73_v35, %v79_v34  ;;  %v64_v43 = vmul.f32 0.03125, %v34_v36 }
  0x9b   :  { %v36_v39 = vpop.xlane.xlu1 %35 }
  0x9c   :  { %434 = vrsqrt.f32 %v102_v37  ;;  %v91_v40 = vmax.f32 %v85_v38, 0.0  ;;  %v65_v45 = vmul.f32 0.03125, %v36_v39  ;;  %v76_v47 = vmul.f32 %v64_v43, %v64_v43 }
  0x9d   :  { %v42_v41 = vpop.xlane.xlu0 %41  ;;  %v94_v26 = vsub.f32 %v494_v6, %v64_v43 }
  0x9e   :  { %v103_v42 = vadd.f32 1e-05, %v91_v40  ;;  %v68_v48 = vmul.f32 0.03125, %v42_v41  ;;  %v77_v52 = vmul.f32 %v65_v45, %v65_v45  ;;  %v95_v28 = vsub.f32 %v499_v8, %v65_v45 }
  0x9f   :  { %v44_v44 = vpop.xlane.xlu1 %43 }
  0xa0   :  { %436 = vrsqrt.f32 %v103_v42  ;;  %v69_v50 = vmul.f32 0.03125, %v44_v44  ;;  %v80_v58 = vmul.f32 %v68_v48, %v68_v48  ;;  %v98_v31 = vsub.f32 %v502_v9, %v68_v48  ;;  %v317_v9 = vld [vmem:[%s591_s2] ss:$0 sm:$0xff] }
  0xa1   :  { %v52_v46 = vpop.xlane.xlu0 %51 }
  0xa2   :  { %v70_v49 = vmul.f32 0.03125, %v52_v46  ;;  %v81_v62 = vmul.f32 %v69_v50, %v69_v50  ;;  %v99_v35 = vsub.f32 %v505_v10, %v69_v50 }
  0xa3   :  { %v54_v51 = vpop.xlane.xlu1 %53 }
  0xa4   :  { %v82_v53 = vsub.f32 %v70_v49, %v76_v47  ;;  %v71_v54 = vmul.f32 0.03125, %v54_v51 }
  0xa5   :  { %v60_v56 = vpop.xlane.xlu0 %59 }
  0xa6   :  { %v435_v57 = vpop.eup %434  ;;  %v88_v59 = vmax.f32 %v82_v53, 0.0  ;;  %v83_v60 = vsub.f32 %v71_v54, %v77_v52  ;;  %v74_v61 = vmul.f32 0.03125, %v60_v56 }
  0xa7   :  { %v62_v63 = vpop.xlane.xlu1 %61  ;;  %v114_v0 = vmul.f32 %v435_v57, %v96_v55 }
  0xa8   :  { %v100_v3 = vadd.f32 1e-05, %v88_v59  ;;  %v89_v4 = vmax.f32 %v83_v60, 0.0  ;;  %v86_v5 = vsub.f32 %v74_v61, %v80_v58  ;;  %v75_v7 = vmul.f32 0.03125, %v62_v63 }
  0xa9   :  { %v127_v18 = vmul.f32 %v315_v11, %v114_v0 }
  0xaa   :  { %v437_v1 = vpop.eup %436  ;;  %438 = vrsqrt.f32 %v100_v3  ;;  %v101_v13 = vadd.f32 1e-05, %v89_v4  ;;  %v92_v15 = vmax.f32 %v86_v5, 0.0  ;;  %v87_v16 = vsub.f32 %v75_v7, %v81_v62 }
  0xab   :  { %v115_v17 = vmul.f32 %v437_v1, %v97_v12  ;;  %v140_v24 = vadd.f32 %v316_v21, %v127_v18 }
  0xac   :  { %440 = vrsqrt.f32 %v101_v13  ;;  %v104_v19 = vadd.f32 1e-05, %v92_v15  ;;  %v93_v20 = vmax.f32 %v87_v16, 0.0 }
  0xad   :  { %v128_v22 = vmul.f32 %v315_v11, %v115_v17 }
  0xae   :  { %442 = vrsqrt.f32 %v104_v19  ;;  %v105_v23 = vadd.f32 1e-05, %v93_v20 }
  0xaf   :  { %v141_v25 = vadd.f32 %v316_v21, %v128_v22 }
  0xb0   :  { %444 = vrsqrt.f32 %v105_v23 }
  0xb1   :  { %v145_v2 = vpack.c.bf16 %v141_v25, %v140_v24 }
  0xb3   :  { %401 = vmatmul.mubr.bf16.vlgmr.msra.gmra.mrb[0].mxu1 %v145_v2 }
  0xb4   :  { %v439_v27 = vpop.eup %438  ;;  %404 = vmatprep.mubr.msk.bf16.mxu1 %vm447_vm0, %v446_v14 }
  0xb5   :  { %v112_v29 = vmul.f32 %v439_v27, %v94_v26 }
  0xb6   :  { %v441_v30 = vpop.eup %440 }
  0xb7   :  { %v113_v32 = vmul.f32 %v441_v30, %v95_v28  ;;  %v125_v33 = vmul.f32 %v315_v11, %v112_v29 }
  0xb8   :  { %v443_v34 = vpop.eup %442 }
  0xb9   :  { %v126_v36 = vmul.f32 %v315_v11, %v113_v32  ;;  %v116_v37 = vmul.f32 %v443_v34, %v98_v31  ;;  %v138_v6 = vadd.f32 %v316_v21, %v125_v33 }
  0xba   :  { %v445_v38 = vpop.eup %444 }
  0xbb   :  { %v139_v39 = vadd.f32 %v316_v21, %v126_v36  ;;  %v117_v40 = vmul.f32 %v445_v38, %v99_v35  ;;  %v129_v41 = vmul.f32 %v315_v11, %v116_v37 }
  0xbd   :  { %v144_v42 = vpack.c.bf16 %v139_v39, %v138_v6  ;;  %v130_v14 = vmul.f32 %v315_v11, %v117_v40  ;;  %v142_v8 = vadd.f32 %v316_v21, %v129_v41 }
  0xbf   :  { %397 = vmatmul.mubr.bf16.vlgmr.msra.gmra.mrb[0].mxu0 %v144_v42  ;;  %v143_v43 = vadd.f32 %v316_v21, %v130_v14 }
  0xc1   :  { %v146_v44 = vpack.c.bf16 %v143_v43, %v142_v8 }
  0xc3   :  { %405 = vmatmul.mubr.bf16.gmra.mrb[4].mxu1 %v146_v44 }
 0x186   :  { %v260_v45 = vpop.f32.mrb[0].mxu1 }
 0x187   :  { %v261_v10 = vadd.f32 %v317_v9, %v260_v45  ;;  %v402_v46 = vpop.f32.mrb[1].mxu1 }
 0x188   :  { %v263_v47 = vpop.f32.mrb[2].mxu1 }
 0x189   :  { %v264_v48 = vadd.f32 %v317_v9, %v263_v47  ;;  %v403_v49 = vpop.f32.mrb[3].mxu1  ;;  %v277_v50 = vmax.f32 %v261_v10, 0.0 }
 0x18b   :  { %v278_v51 = vmax.f32 %v264_v48, 0.0 }
 0x18d   :  { %v358_v52 = vpack.c.bf16 %v278_v51, %v277_v50 }
 0x18f   :  { %367 = vst [vmem:[%s592_s5 + $0x8] sm:$0xff] %v358_v52  }
 0x192   :  { %v252_v53 = vpop.f32.mrb[0].mxu0 }
 0x193   :  { %v253_v54 = vadd.f32 %v317_v9, %v252_v53  ;;  %v398_v55 = vpop.f32.mrb[1].mxu0 }
 0x194   :  { %v255_v56 = vpop.f32.mrb[2].mxu0 }
 0x195   :  { %v256_v57 = vadd.f32 %v317_v9, %v255_v56  ;;  %v399_v58 = vpop.f32.mrb[3].mxu0  ;;  %v275_v60 = vmax.f32 %v253_v54, 0.0 }
 0x196   :  { %v268_v59 = vpop.f32.mrb[4].mxu1 }
 0x197   :  { %v276_v61 = vmax.f32 %v256_v57, 0.0  ;;  %v269_v62 = vadd.f32 %v317_v9, %v268_v59  ;;  %v406_v63 = vpop.f32.mrb[5].mxu1 }
 0x198   :  { %v271_v0 = vpop.f32.mrb[6].mxu1 }
 0x199   :  { %v353_v3 = vpack.c.bf16 %v276_v61, %v275_v60  ;;  %v272_v4 = vadd.f32 %v317_v9, %v271_v0  ;;  %v407_v5 = vpop.f32.mrb[7].mxu1  ;;  %v279_v7 = vmax.f32 %v269_v62, 0.0 }
 0x19b   :  { %354 = vst [vmem:[%s592_s5] sm:$0xff] %v353_v3   ;;  %v280_v11 = vmax.f32 %v272_v4, 0.0 }
 0x19d   :  { %v363_v12 = vpack.c.bf16 %v280_v11, %v279_v7 }
 0x19f   :  { %368 = vst [vmem:[%s592_s5 + $0x10] sm:$0xff] %v363_v12  }

// kernel: vit_forward.25
= control target key start
LH: loop header
LB: loop body
LE: loop exit
PB: predicated region body
PF: predicated region fallthrough
CT: control target
= control target key end

     0   :  { %v345_v0 = vmov 0.0   ;;  %vm346_vm0 = vmmov 0   ;;  %s429_s1 = inlined_call_operand.vmem [shape: bf16[128,128], index: 1, kind: input, shape index: {}]   ;;  %s430_s0 = inlined_call_operand.vmem [shape: bf16[48,128], index: 0, kind: input, shape index: {}]   ;;  %s431_s3 = inlined_call_operand.vmem [shape: bf16[48,128], index: 3, kind: input, shape index: {}]   ;;  %s432_s2 = inlined_call_operand.vmem [shape: f32[1,128], index: 2, kind: input, shape index: {}]   ;;  %s433_s4 = inlined_call_operand.vmem [shape: bf16[48,128], index: 4, kind: output, shape index: {}]  }
   0x1   :  { %316 = vmatprep.subr.bf16.mxu1 %v345_v0  ;;  %v334_v1 = vld [vmem:[%s429_s1] sm:$0xff]   ;;  %288 = vmatprep.subr.bf16.mxu0 %v345_v0  ;;  %v335_v2 = vld [vmem:[%s429_s1 + $0x8] sm:$0xff]   ;;  %v336_v3 = vld [vmem:[%s429_s1 + $0x10] sm:$0xff]  }
   0x2   :  { %308 = vmatprep.mubr.msk.bf16.mxu1 %vm346_vm0, %v345_v0  ;;  %304 = vmatprep.mubr.msk.bf16.mxu0 %vm346_vm0, %v345_v0  ;;  %v337_v4 = vld [vmem:[%s429_s1 + $0x18] sm:$0xff]   ;;  %v338_v5 = vld [vmem:[%s429_s1 + $0x20] sm:$0xff]   ;;  %v339_v6 = vld [vmem:[%s429_s1 + $0x28] sm:$0xff]  }
   0x3   :  { %324 = vmatpush3.bf16.msra.mxu1 %v334_v1  ;;  %289 = vmatpush3.bf16.msra.mxu0 %v334_v1  ;;  %v340_v7 = vld [vmem:[%s429_s1 + $0x30] sm:$0xff]   ;;  %v341_v8 = vld [vmem:[%s429_s1 + $0x38] sm:$0xff]   ;;  %v342_v9 = vld [vmem:[%s430_s0 + $0x8] sm:$0xff]  }
   0x4   :  { %317 = vmatprep.subr.bf16.mxu1 %v345_v0  ;;  %290 = vmatprep.subr.bf16.mxu0 %v345_v0  ;;  %v343_v10 = vld [vmem:[%s430_s0] sm:$0xff]   ;;  %v344_v11 = vld [vmem:[%s430_s0 + $0x10] sm:$0xff]   ;;  %v273_v13 = vld [vmem:[%s431_s3 + $0x8] sm:$0xff]  }
   0x5   :  { %v247_v12 = vld [vmem:[%s431_s3] sm:$0xff]   ;;  %v252_v17 = vunpack.c.l.bf16 %v273_v13  ;;  %v253_v21 = vunpack.c.h.bf16 %v273_v13  ;;  %v274_v35 = vld [vmem:[%s431_s3 + $0x10] sm:$0xff]  }
   0x6   :  { %v222_v14 = vld [vmem:[%s432_s2] ss:$0 sm:$0xff]  ;;  %v248_v15 = vunpack.c.l.bf16 %v247_v12  ;;  %v249_v24 = vunpack.c.h.bf16 %v247_v12  ;;  %v256_v40 = vunpack.c.l.bf16 %v274_v35  ;;  %v257_v42 = vunpack.c.h.bf16 %v274_v35 }
   0x7   :  { %325 = vmatpush3.bf16.msra.mxu1 %v335_v2  ;;  %291 = vmatpush3.bf16.msra.mxu0 %v335_v2 }
   0x8   :  { %318 = vmatprep.subr.bf16.mxu1 %v345_v0  ;;  %292 = vmatprep.subr.bf16.mxu0 %v345_v0 }
   0xb   :  { %326 = vmatpush3.bf16.msra.mxu1 %v336_v3  ;;  %293 = vmatpush3.bf16.msra.mxu0 %v336_v3 }
   0xc   :  { %319 = vmatprep.subr.bf16.mxu1 %v345_v0  ;;  %294 = vmatprep.subr.bf16.mxu0 %v345_v0 }
   0xf   :  { %327 = vmatpush3.bf16.msra.mxu1 %v337_v4  ;;  %295 = vmatpush3.bf16.msra.mxu0 %v337_v4 }
  0x10   :  { %320 = vmatprep.subr.bf16.mxu1 %v345_v0  ;;  %296 = vmatprep.subr.bf16.mxu0 %v345_v0 }
  0x13   :  { %328 = vmatpush3.bf16.msra.mxu1 %v338_v5  ;;  %297 = vmatpush3.bf16.msra.mxu0 %v338_v5 }
  0x14   :  { %321 = vmatprep.subr.bf16.mxu1 %v345_v0  ;;  %298 = vmatprep.subr.bf16.mxu0 %v345_v0 }
  0x17   :  { %329 = vmatpush3.bf16.msra.mxu1 %v339_v6  ;;  %299 = vmatpush3.bf16.msra.mxu0 %v339_v6 }
  0x18   :  { %322 = vmatprep.subr.bf16.mxu1 %v345_v0  ;;  %300 = vmatprep.subr.bf16.mxu0 %v345_v0 }
  0x1b   :  { %330 = vmatpush3.bf16.msra.mxu1 %v340_v7  ;;  %301 = vmatpush3.bf16.msra.mxu0 %v340_v7 }
  0x1c   :  { %323 = vmatprep.subr.bf16.mxu1 %v345_v0  ;;  %302 = vmatprep.subr.bf16.mxu0 %v345_v0 }
  0x1f   :  { %331 = vmatpush3.bf16.msra.mxu1 %v341_v8  ;;  %303 = vmatpush3.bf16.msra.mxu0 %v341_v8 }
  0x22   :  { %309 = vmatmul.mubr.bf16.vlgmr.msra.gmra.mrb[0].mxu1 %v342_v9  ;;  %305 = vmatmul.mubr.bf16.vlgmr.msra.gmra.mrb[0].mxu0 %v343_v10 }
  0x23   :  { %312 = vmatprep.mubr.msk.bf16.mxu1 %vm346_vm0, %v345_v0 }
  0x2a   :  { %313 = vmatmul.mubr.bf16.gmra.mrb[4].mxu1 %v344_v11 }
  0xf5   :  { %v155_v16 = vpop.f32.mrb[0].mxu1  ;;  %v147_v18 = vpop.f32.mrb[0].mxu0 }
  0xf6   :  { %v156_v19 = vadd.f32 %v222_v14, %v155_v16  ;;  %v310_v20 = vpop.f32.mrb[1].mxu1  ;;  %v148_v22 = vadd.f32 %v222_v14, %v147_v18  ;;  %v306_v23 = vpop.f32.mrb[1].mxu0 }
  0xf7   :  { %v158_v25 = vpop.f32.mrb[2].mxu1  ;;  %v150_v26 = vpop.f32.mrb[2].mxu0 }
  0xf8   :  { %v159_v27 = vadd.f32 %v222_v14, %v158_v25  ;;  %v311_v28 = vpop.f32.mrb[3].mxu1  ;;  %v182_v29 = vadd.f32 %v248_v15, %v148_v22  ;;  %v151_v30 = vadd.f32 %v222_v14, %v150_v26  ;;  %v307_v31 = vpop.f32.mrb[3].mxu0  ;;  %v184_v32 = vadd.f32 %v252_v17, %v156_v19 }
  0xfa   :  { %v185_v33 = vadd.f32 %v253_v21, %v159_v27  ;;  %v183_v34 = vadd.f32 %v249_v24, %v151_v30 }
  0xfc   :  { %v266_v36 = vpack.c.bf16 %v185_v33, %v184_v32  ;;  %v261_v37 = vpack.c.bf16 %v183_v34, %v182_v29 }
  0xfd   :  { %v163_v38 = vpop.f32.mrb[4].mxu1 }
  0xfe   :  { %275 = vst [vmem:[%s433_s4 + $0x8] sm:$0xff] %v266_v36   ;;  %262 = vst [vmem:[%s433_s4] sm:$0xff] %v261_v37   ;;  %v164_v39 = vadd.f32 %v222_v14, %v163_v38  ;;  %v314_v41 = vpop.f32.mrb[5].mxu1 }
  0xff   :  { %v166_v43 = vpop.f32.mrb[6].mxu1 }
 0x100   :  { %v167_v44 = vadd.f32 %v222_v14, %v166_v43  ;;  %v315_v45 = vpop.f32.mrb[7].mxu1  ;;  %v186_v46 = vadd.f32 %v256_v40, %v164_v39 }
 0x102   :  { %v187_v47 = vadd.f32 %v257_v42, %v167_v44 }
 0x104   :  { %v271_v48 = vpack.c.bf16 %v187_v47, %v186_v46 }
 0x106   :  { %276 = vst [vmem:[%s433_s4 + $0x10] sm:$0xff] %v271_v48  }

// kernel: vit_forward.31
= control target key start
LH: loop header
LB: loop body
LE: loop exit
PB: predicated region body
PF: predicated region fallthrough
CT: control target
= control target key end

     0   :  { %v223_v1 = vmov 0.0   ;;  %vm224_vm0 = vmmov 0   ;;  %s294_s0 = inlined_call_operand.vmem [shape: bf16[8,128], index: 0, kind: input, shape index: {}]   ;;  %s295_s1 = inlined_call_operand.vmem [shape: bf16[128,128], index: 1, kind: input, shape index: {}]   ;;  %s296_s3 = inlined_call_operand.vmem [shape: f32[1,128], index: 3, kind: input, shape index: {}]   ;;  %s297_s4 = inlined_call_operand.vmem [shape: f32[1,128], index: 4, kind: input, shape index: {}]   ;;  %s298_s2 = inlined_call_operand.vmem [shape: f32[1,128], index: 2, kind: input, shape index: {}]   ;;  %s299_s5 = inlined_call_operand.vmem [shape: f32[8,128], index: 5, kind: output, shape index: {}]  }
   0x1   :  { %v21_v0 = vld [vmem:[%s294_s0] sm:$0xf]  ;;  %191 = vmatprep.subr.bf16.mxu0 %v223_v1  ;;  %v214_v5 = vld [vmem:[%s295_s1 + $0x8] sm:$0xff]   ;;  %v215_v6 = vld [vmem:[%s295_s1 + $0x10] sm:$0xff]   ;;  %207 = vmatprep.mubr.msk.bf16.mxu0 %vm224_vm0, %v223_v1 }
   0x2   :  { %v22_v2 = vunpack.c.l.bf16 %v21_v0  ;;  %v213_v4 = vld [vmem:[%s295_s1] sm:$0xff]   ;;  %v216_v7 = vld [vmem:[%s295_s1 + $0x18] sm:$0xff]   ;;  %v218_v9 = vld [vmem:[%s295_s1 + $0x28] sm:$0xff]  }
   0x3   :  { %192 = vmatpush3.bf16.msra.mxu0 %v213_v4  ;;  %v217_v8 = vld [vmem:[%s295_s1 + $0x20] sm:$0xff]   ;;  %v219_v10 = vld [vmem:[%s295_s1 + $0x30] sm:$0xff]   ;;  %v220_v11 = vld [vmem:[%s295_s1 + $0x38] sm:$0xff]  }
   0x4   :  { %23 = vadd.xlane.f32.xlu0 %v22_v2  ;;  %v25_v3 = vmul.f32 %v22_v2, %v22_v2  ;;  %193 = vmatprep.subr.bf16.mxu0 %v223_v1  ;;  %v171_v22 = vld [vmem:[%s296_s3] ss:$0 sm:$0xff] }
   0x5   :  { %v172_v24 = vld [vmem:[%s297_s4] ss:$0 sm:$0xff] }
   0x6   :  { %v173_v28 = vld [vmem:[%s298_s2] ss:$0 sm:$0xff] }
   0x7   :  { %194 = vmatpush3.bf16.msra.mxu0 %v214_v5 }
   0x8   :  { %26 = vadd.xlane.f32.xlu0 %v25_v3  ;;  %195 = vmatprep.subr.bf16.mxu0 %v223_v1 }
   0xb   :  { %196 = vmatpush3.bf16.msra.mxu0 %v215_v6 }
   0xc   :  { %197 = vmatprep.subr.bf16.mxu0 %v223_v1 }
   0xf   :  { %198 = vmatpush3.bf16.msra.mxu0 %v216_v7 }
  0x10   :  { %199 = vmatprep.subr.bf16.mxu0 %v223_v1 }
  0x13   :  { %200 = vmatpush3.bf16.msra.mxu0 %v217_v8 }
  0x14   :  { %201 = vmatprep.subr.bf16.mxu0 %v223_v1 }
  0x17   :  { %202 = vmatpush3.bf16.msra.mxu0 %v218_v9 }
  0x18   :  { %203 = vmatprep.subr.bf16.mxu0 %v223_v1 }
  0x1b   :  { %204 = vmatpush3.bf16.msra.mxu0 %v219_v10 }
  0x1c   :  { %205 = vmatprep.subr.bf16.mxu0 %v223_v1 }
  0x1f   :  { %206 = vmatpush3.bf16.msra.mxu0 %v220_v11 }
  0x91   :  { %v24_v12 = vpop.xlane.xlu0 %23 }
  0x92   :  { %v29_v13 = vmul.f32 0.03125, %v24_v12 }
  0x94   :  { %v31_v15 = vmul.f32 %v29_v13, %v29_v13  ;;  %v34_v20 = vsub.f32 %v22_v2, %v29_v13 }
  0x95   :  { %v27_v14 = vpop.xlane.xlu0 %26 }
  0x96   :  { %v30_v16 = vmul.f32 0.03125, %v27_v14 }
  0x98   :  { %v32_v17 = vsub.f32 %v30_v16, %v31_v15 }
  0x9a   :  { %v33_v18 = vmax.f32 %v32_v17, 0.0 }
  0x9c   :  { %v35_v19 = vadd.f32 1e-05, %v33_v18 }
  0x9e   :  { %221 = vrsqrt.f32 %v35_v19 }
  0xa8   :  { %v222_v21 = vpop.eup %221 }
  0xa9   :  { %v37_v23 = vmul.f32 %v222_v21, %v34_v20 }
  0xab   :  { %v45_v25 = vmul.f32 %v171_v22, %v37_v23 }
  0xad   :  { %v53_v26 = vadd.f32 %v172_v24, %v45_v25 }
  0xaf   :  { %v54_v27 = vpack.c.bf16 %v53_v26, %v53_v26 }
  0xb1   :  { %208 = vmatmul.mubr.bf16.vlgmr.msra.gmra.mrb[0].mxu0 %v54_v27 }
 0x184   :  { %v160_v29 = vpop.f32.mrb[0].mxu0 }
 0x185   :  { %v161_v30 = vadd.f32 %v173_v28, %v160_v29  ;;  %v209_v31 = vpop.f32.mrb[1].mxu0 }
 0x186   :  { %v163_v32 = vpop.f32.mrb[2].mxu0 }
 0x187   :  { %166 = vst [vmem:[%s299_s5] sm:$0xff] %v161_v30  ;;  %v210_v33 = vpop.f32.mrb[3].mxu0 }

</bundles_post_ra>
